<compile_context>
chip_gen: v5e
topology: v5e:2x2
jax: 0.10.0
libtpu: 0.0.40
codegen_flags: <defaults>
</compile_context>

<pallas_src>
import math

import jax
import jax.numpy as jnp
from jax.experimental import pallas as pl
from jax.experimental.pallas import tpu as pltpu

HIDDEN = 512
LEAKY_SLOPE = 0.01        # torch.nn.functional.leaky_relu default negative_slope
LANE = 128                # TPU lane width
SUBLANE = 8               # f32 sublane width
K_ALIGN = 32              # bf16 sublane pack for the layer-1 K dimension


def _round_up(x, m):
    return ((x + m - 1) // m) * m


def _leaky_relu(v):
    return jnp.where(v > 0, v, LEAKY_SLOPE * v)


def actor_kernel(x_ref,
                 w1_ref, b1_ref,
                 w2_ref, b2_ref,
                 w3_ref, b3_ref,
                 w4_ref, b4_ref,
                 out_ref):
    # bf16 operands into the MXU, f32 accumulation, f32 biases/activations.
    h = jnp.dot(x_ref[...], w1_ref[...],
                preferred_element_type=jnp.float32) + b1_ref[...]
    h = _leaky_relu(h)
    h = jnp.dot(h.astype(jnp.bfloat16), w2_ref[...],
                preferred_element_type=jnp.float32) + b2_ref[...]
    h = _leaky_relu(h)
    h = jnp.dot(h.astype(jnp.bfloat16), w3_ref[...],
                preferred_element_type=jnp.float32) + b3_ref[...]
    h = _leaky_relu(h)
    a = jnp.tanh(jnp.dot(h.astype(jnp.bfloat16), w4_ref[...],
                         preferred_element_type=jnp.float32) + b4_ref[...])
    out_ref[...] = a.astype(out_ref.dtype)


def actor_forward(x, params, *, tile_b=None):
    """x: (B, state_dim) f32.  params: dict of (w1,b1,...,w4,b4)."""
    B, state_dim = x.shape
    action_dim = params["w4"].shape[1]
    out_pad = _round_up(max(action_dim, 1), LANE)   # lane-dense output slab
    k_pad = _round_up(max(state_dim, 1), K_ALIGN)   # clean bf16 K layout for w1/x

    # ---- batch tiling -------------------------------------------------------
    b_pad = _round_up(B, SUBLANE)
    if tile_b is None:
        # Single tile up to 1024 rows (no 2-TC weight-DMA duplication, no extra
        # grid-step overhead); 512-row tiles for replay-buffer-sized batches.
        tile_b = b_pad if b_pad <= 1024 else 512
    tile_b = max(SUBLANE, min(_round_up(tile_b, SUBLANE), b_pad))
    b_pad = _round_up(b_pad, tile_b)
    grid = (b_pad // tile_b,)

    # ---- operand prep (wrapper-side casts / padding) ------------------------
    # bf16 x, zero-padded batch rows and K columns.
    x = jnp.pad(x.astype(jnp.bfloat16),
                ((0, b_pad - B), (0, k_pad - state_dim)))

    # bf16 weights; f32 biases. w1 padded on K, layer 4 padded to lane-dense N.
    w1 = jnp.pad(params["w1"].astype(jnp.bfloat16),
                 ((0, k_pad - state_dim), (0, 0)))
    w2 = params["w2"].astype(jnp.bfloat16)
    w3 = params["w3"].astype(jnp.bfloat16)
    w4 = jnp.pad(params["w4"].astype(jnp.bfloat16),
                 ((0, 0), (0, out_pad - action_dim)))
    b1 = params["b1"].astype(jnp.float32)
    b2 = params["b2"].astype(jnp.float32)
    b3 = params["b3"].astype(jnp.float32)
    b4 = jnp.pad(params["b4"].astype(jnp.float32),
                 ((0, 0), (0, out_pad - action_dim)))

    flops = 2 * b_pad * (k_pad * HIDDEN + 2 * HIDDEN * HIDDEN + HIDDEN * out_pad)
    weight_bytes = 2 * (w1.size + w2.size + w3.size + w4.size) \
        + 4 * (b1.size + b2.size + b3.size + b4.size)
    bytes_accessed = int(weight_bytes + 2 * x.size + 4 * b_pad * out_pad)
    vmem_limit = (32 << 20) if tile_b >= 512 else (16 << 20)

    def _in_specs(single_buffer_weights):
        def resident(shape):
            # Constant block index -> DMA'd once, stays VMEM-resident across
            # every batch tile. Single buffering drops the unused second copy.
            idx = lambda i: (0, 0)
            if single_buffer_weights:
                return pl.BlockSpec(shape, idx, pipeline_mode=pl.Buffered(1))
            return pl.BlockSpec(shape, idx)
        return [
            pl.BlockSpec((tile_b, k_pad), lambda i: (i, 0)),   # x: batch-tiled
            resident(w1.shape), resident(b1.shape),
            resident(w2.shape), resident(b2.shape),
            resident(w3.shape), resident(b3.shape),
            resident(w4.shape), resident(b4.shape),
        ]

    def _run(single_buffer_weights):
        return pl.pallas_call(
            actor_kernel,
            out_shape=jax.ShapeDtypeStruct((b_pad, out_pad), jnp.float32),
            grid=grid,
            in_specs=_in_specs(single_buffer_weights),
            out_specs=pl.BlockSpec((tile_b, out_pad), lambda i: (i, 0)),
            compiler_params=pltpu.CompilerParams(
                dimension_semantics=("parallel",),   # batch tiles are independent
                vmem_limit_bytes=vmem_limit,
            ),
            cost_estimate=pl.CostEstimate(
                flops=int(flops),
                transcendentals=int(b_pad * out_pad),
                bytes_accessed=bytes_accessed,
            ),
        )(x, w1, b1, w2, b2, w3, b3, w4, b4)

    try:
        out_padded = _run(True)
    except Exception:
        # pl.Buffered(1) not accepted by this jax build -> default buffering.
        out_padded = _run(False)

    return out_padded[:B, :action_dim]


def xavier_uniform(key, fan_in, fan_out):
    """Matches torch.nn.init.xavier_uniform_ (gain=1); stored (in, out) as bf16."""
    limit = math.sqrt(6.0 / (fan_in + fan_out))
    w = jax.random.uniform(key, (fan_in, fan_out), jnp.float32,
                           minval=-limit, maxval=limit)
    return w.astype(jnp.bfloat16)


def init_params(key, state_dim, action_dim):
    k1, k2, k3, k4 = jax.random.split(key, 4)
    return {
        "w1": xavier_uniform(k1, state_dim, HIDDEN),
        "b1": jnp.full((1, HIDDEN), 0.01, jnp.float32),
        "w2": xavier_uniform(k2, HIDDEN, HIDDEN),
        "b2": jnp.full((1, HIDDEN), 0.01, jnp.float32),
        "w3": xavier_uniform(k3, HIDDEN, HIDDEN),
        "b3": jnp.full((1, HIDDEN), 0.01, jnp.float32),
        "w4": xavier_uniform(k4, HIDDEN, action_dim),
        "b4": jnp.full((1, action_dim), 0.01, jnp.float32),
    }


def actor_reference(x, p):
    """Pure-JAX f32 reference of the same forward pass (weights upcast)."""
    w1 = p["w1"].astype(jnp.float32)
    w2 = p["w2"].astype(jnp.float32)
    w3 = p["w3"].astype(jnp.float32)
    w4 = p["w4"].astype(jnp.float32)
    h = _leaky_relu(x @ w1 + p["b1"])
    h = _leaky_relu(h @ w2 + p["b2"])
    h = _leaky_relu(h @ w3 + p["b3"])
    return jnp.tanh(h @ w4 + p["b4"])


# TODO(synk): ActorNetwork.sample_normal uses torch.distributions sampling and is
# not part of the deterministic forward pass implemented here.

if __name__ == "__main__":
    key = jax.random.PRNGKey(0)
    kx, kp = jax.random.split(key)

    state_dim = 24   # e.g. laser-scan + goal + velocity features
    action_dim = 2   # (linear velocity, angular velocity)
    params = init_params(kp, state_dim, action_dim)

    # Small per-step RL batch: grid collapses to a single tile.
    batch = 2
    x = jax.random.normal(kx, (batch, state_dim), jnp.float32)
    out = jax.block_until_ready(actor_forward(x, params))
    ref = actor_reference(x, params)
    assert out.shape == (batch, action_dim)
    assert jnp.allclose(out, ref, atol=2e-2, rtol=2e-2), \
        f"mismatch (B=2): max abs err {jnp.max(jnp.abs(out - ref))}"

    # Medium batch: still one tile (weights DMA'd once, no 2-TC duplication).
    batch_mid = 256
    xm = jax.random.normal(kx, (batch_mid, state_dim), jnp.float32)
    out_m = jax.block_until_ready(actor_forward(xm, params))
    ref_m = actor_reference(xm, params)
    assert out_m.shape == (batch_mid, action_dim)
    assert jnp.allclose(out_m, ref_m, atol=2e-2, rtol=2e-2), \
        f"mismatch (B=256): max abs err {jnp.max(jnp.abs(out_m - ref_m))}"

    # Replay-buffer-ish batch: exercises the tiled grid (512-row tiles,
    # batch padding, VMEM-resident weights across tiles).
    batch_big = 1500
    xb = jax.random.normal(kx, (batch_big, state_dim), jnp.float32)
    out_b = jax.block_until_ready(actor_forward(xb, params))
    ref_b = actor_reference(xb, params)
    assert out_b.shape == (batch_big, action_dim)
    assert jnp.allclose(out_b, ref_b, atol=2e-2, rtol=2e-2), \
        f"mismatch (B=1500): max abs err {jnp.max(jnp.abs(out_b - ref_b))}"

    print("KERNEL_OK")
</pallas_src>

<mosaic_0001>
module attributes {stable_mosaic.version = 11 : i64} {
  func.func @actor_kernel(%arg0: i32, %arg1: memref<8x32xbf16, #tpu.memory_space<vmem>>, %arg2: memref<32x512xbf16, #tpu.memory_space<vmem>>, %arg3: memref<1x512xf32, #tpu.memory_space<vmem>>, %arg4: memref<512x512xbf16, #tpu.memory_space<vmem>>, %arg5: memref<1x512xf32, #tpu.memory_space<vmem>>, %arg6: memref<512x512xbf16, #tpu.memory_space<vmem>>, %arg7: memref<1x512xf32, #tpu.memory_space<vmem>>, %arg8: memref<512x128xbf16, #tpu.memory_space<vmem>>, %arg9: memref<1x128xf32, #tpu.memory_space<vmem>>, %arg10: memref<8x128xf32, #tpu.memory_space<vmem>>) attributes {dimension_semantics = [#tpu.dimension_semantics<parallel>], iteration_bounds = array<i64: 1>, scalar_prefetch = 0 : i64, scratch_operands = 0 : i64, tpu.core_type = #tpu.core_type<tc>, window_params = [{transform_indices = @transform_0, window_bounds = array<i64: 8, 32>}, {pipeline_mode = #tpu.pipeline_mode<synchronous>, transform_indices = @transform_1, window_bounds = array<i64: 32, 512>}, {pipeline_mode = #tpu.pipeline_mode<synchronous>, transform_indices = @transform_2, window_bounds = array<i64: 1, 512>}, {pipeline_mode = #tpu.pipeline_mode<synchronous>, transform_indices = @transform_3, window_bounds = array<i64: 512, 512>}, {pipeline_mode = #tpu.pipeline_mode<synchronous>, transform_indices = @transform_4, window_bounds = array<i64: 1, 512>}, {pipeline_mode = #tpu.pipeline_mode<synchronous>, transform_indices = @transform_5, window_bounds = array<i64: 512, 512>}, {pipeline_mode = #tpu.pipeline_mode<synchronous>, transform_indices = @transform_6, window_bounds = array<i64: 1, 512>}, {pipeline_mode = #tpu.pipeline_mode<synchronous>, transform_indices = @transform_7, window_bounds = array<i64: 512, 128>}, {pipeline_mode = #tpu.pipeline_mode<synchronous>, transform_indices = @transform_8, window_bounds = array<i64: 1, 128>}, {transform_indices = @transform_9, window_bounds = array<i64: 8, 128>}]} {
    %c0 = arith.constant 0 : index
    %c0_0 = arith.constant 0 : index
    %0 = vector.load %arg1[%c0, %c0_0] : memref<8x32xbf16, #tpu.memory_space<vmem>>, vector<8x32xbf16>
    %c0_1 = arith.constant 0 : index
    %c0_2 = arith.constant 0 : index
    %1 = vector.load %arg2[%c0_1, %c0_2] : memref<32x512xbf16, #tpu.memory_space<vmem>>, vector<32x512xbf16>
    %cst = arith.constant dense<0.000000e+00> : vector<8x512xf32>
    %2 = tpu.matmul %0, %1, %cst {dimension_numbers = #tpu.dot_dimension_numbers<[1], [0], [0], [1], [0, 0, 1, 1], [], []>} : vector<8x32xbf16>, vector<32x512xbf16>, vector<8x512xf32> -> vector<8x512xf32>
    %c0_3 = arith.constant 0 : index
    %c0_4 = arith.constant 0 : index
    %3 = vector.load %arg3[%c0_3, %c0_4] : memref<1x512xf32, #tpu.memory_space<vmem>>, vector<1x512xf32>
    %4 = vector.broadcast %3 : vector<1x512xf32> to vector<8x512xf32>
    %5 = arith.addf %2, %4 : vector<8x512xf32>
    %cst_5 = arith.constant 0.000000e+00 : f32
    %6 = vector.broadcast %cst_5 : f32 to vector<8x512xf32>
    %7 = arith.cmpf ogt, %5, %6 : vector<8x512xf32>
    %cst_6 = arith.constant 0.00999999977 : f32
    %8 = vector.broadcast %cst_6 : f32 to vector<8x512xf32>
    %9 = arith.mulf %8, %5 : vector<8x512xf32>
    %10 = arith.select %7, %5, %9 : vector<8x512xi1>, vector<8x512xf32>
    %11 = arith.truncf %10 : vector<8x512xf32> to vector<8x512xbf16>
    %c0_7 = arith.constant 0 : index
    %c0_8 = arith.constant 0 : index
    %12 = vector.load %arg4[%c0_7, %c0_8] : memref<512x512xbf16, #tpu.memory_space<vmem>>, vector<512x512xbf16>
    %cst_9 = arith.constant dense<0.000000e+00> : vector<8x512xf32>
    %13 = tpu.matmul %11, %12, %cst_9 {dimension_numbers = #tpu.dot_dimension_numbers<[1], [0], [0], [1], [0, 0, 1, 1], [], []>} : vector<8x512xbf16>, vector<512x512xbf16>, vector<8x512xf32> -> vector<8x512xf32>
    %c0_10 = arith.constant 0 : index
    %c0_11 = arith.constant 0 : index
    %14 = vector.load %arg5[%c0_10, %c0_11] : memref<1x512xf32, #tpu.memory_space<vmem>>, vector<1x512xf32>
    %15 = vector.broadcast %14 : vector<1x512xf32> to vector<8x512xf32>
    %16 = arith.addf %13, %15 : vector<8x512xf32>
    %cst_12 = arith.constant 0.000000e+00 : f32
    %17 = vector.broadcast %cst_12 : f32 to vector<8x512xf32>
    %18 = arith.cmpf ogt, %16, %17 : vector<8x512xf32>
    %cst_13 = arith.constant 0.00999999977 : f32
    %19 = vector.broadcast %cst_13 : f32 to vector<8x512xf32>
    %20 = arith.mulf %19, %16 : vector<8x512xf32>
    %21 = arith.select %18, %16, %20 : vector<8x512xi1>, vector<8x512xf32>
    %22 = arith.truncf %21 : vector<8x512xf32> to vector<8x512xbf16>
    %c0_14 = arith.constant 0 : index
    %c0_15 = arith.constant 0 : index
    %23 = vector.load %arg6[%c0_14, %c0_15] : memref<512x512xbf16, #tpu.memory_space<vmem>>, vector<512x512xbf16>
    %cst_16 = arith.constant dense<0.000000e+00> : vector<8x512xf32>
    %24 = tpu.matmul %22, %23, %cst_16 {dimension_numbers = #tpu.dot_dimension_numbers<[1], [0], [0], [1], [0, 0, 1, 1], [], []>} : vector<8x512xbf16>, vector<512x512xbf16>, vector<8x512xf32> -> vector<8x512xf32>
    %c0_17 = arith.constant 0 : index
    %c0_18 = arith.constant 0 : index
    %25 = vector.load %arg7[%c0_17, %c0_18] : memref<1x512xf32, #tpu.memory_space<vmem>>, vector<1x512xf32>
    %26 = vector.broadcast %25 : vector<1x512xf32> to vector<8x512xf32>
    %27 = arith.addf %24, %26 : vector<8x512xf32>
    %cst_19 = arith.constant 0.000000e+00 : f32
    %28 = vector.broadcast %cst_19 : f32 to vector<8x512xf32>
    %29 = arith.cmpf ogt, %27, %28 : vector<8x512xf32>
    %cst_20 = arith.constant 0.00999999977 : f32
    %30 = vector.broadcast %cst_20 : f32 to vector<8x512xf32>
    %31 = arith.mulf %30, %27 : vector<8x512xf32>
    %32 = arith.select %29, %27, %31 : vector<8x512xi1>, vector<8x512xf32>
    %33 = arith.truncf %32 : vector<8x512xf32> to vector<8x512xbf16>
    %c0_21 = arith.constant 0 : index
    %c0_22 = arith.constant 0 : index
    %34 = vector.load %arg8[%c0_21, %c0_22] : memref<512x128xbf16, #tpu.memory_space<vmem>>, vector<512x128xbf16>
    %cst_23 = arith.constant dense<0.000000e+00> : vector<8x128xf32>
    %35 = tpu.matmul %33, %34, %cst_23 {dimension_numbers = #tpu.dot_dimension_numbers<[1], [0], [0], [1], [0, 0, 1, 1], [], []>} : vector<8x512xbf16>, vector<512x128xbf16>, vector<8x128xf32> -> vector<8x128xf32>
    %c0_24 = arith.constant 0 : index
    %c0_25 = arith.constant 0 : index
    %36 = vector.load %arg9[%c0_24, %c0_25] : memref<1x128xf32, #tpu.memory_space<vmem>>, vector<1x128xf32>
    %37 = vector.broadcast %36 : vector<1x128xf32> to vector<8x128xf32>
    %38 = arith.addf %35, %37 : vector<8x128xf32>
    %39 = math.tanh %38 : vector<8x128xf32>
    %c0_26 = arith.constant 0 : index
    %c0_27 = arith.constant 0 : index
    %40 = vector.load %arg10[%c0_26, %c0_27] : memref<8x128xf32, #tpu.memory_space<vmem>>, vector<8x128xf32>
    tpu.vector_store %arg10[%c0_26, %c0_27], %39 {strides = array<i32>} : memref<8x128xf32, #tpu.memory_space<vmem>>, vector<8x128xf32>,
    return
  }
  func.func @transform_0(%arg0: i32) -> (i32, i32) {
    %c0_i32 = arith.constant 0 : i32
    %c0_i32_0 = arith.constant 0 : i32
    return %arg0, %c0_i32 : i32, i32
  }
  func.func @transform_1(%arg0: i32) -> (i32, i32) {
    %c0_i32 = arith.constant 0 : i32
    %c0_i32_0 = arith.constant 0 : i32
    %c0_i32_1 = arith.constant 0 : i32
    return %c0_i32, %c0_i32_0 : i32, i32
  }
  func.func @transform_2(%arg0: i32) -> (i32, i32) {
    %c0_i32 = arith.constant 0 : i32
    %c0_i32_0 = arith.constant 0 : i32
    %c0_i32_1 = arith.constant 0 : i32
    return %c0_i32, %c0_i32_0 : i32, i32
  }
  func.func @transform_3(%arg0: i32) -> (i32, i32) {
    %c0_i32 = arith.constant 0 : i32
    %c0_i32_0 = arith.constant 0 : i32
    %c0_i32_1 = arith.constant 0 : i32
    return %c0_i32, %c0_i32_0 : i32, i32
  }
  func.func @transform_4(%arg0: i32) -> (i32, i32) {
    %c0_i32 = arith.constant 0 : i32
    %c0_i32_0 = arith.constant 0 : i32
    %c0_i32_1 = arith.constant 0 : i32
    return %c0_i32, %c0_i32_0 : i32, i32
  }
  func.func @transform_5(%arg0: i32) -> (i32, i32) {
    %c0_i32 = arith.constant 0 : i32
    %c0_i32_0 = arith.constant 0 : i32
    %c0_i32_1 = arith.constant 0 : i32
    return %c0_i32, %c0_i32_0 : i32, i32
  }
  func.func @transform_6(%arg0: i32) -> (i32, i32) {
    %c0_i32 = arith.constant 0 : i32
    %c0_i32_0 = arith.constant 0 : i32
    %c0_i32_1 = arith.constant 0 : i32
    return %c0_i32, %c0_i32_0 : i32, i32
  }
  func.func @transform_7(%arg0: i32) -> (i32, i32) {
    %c0_i32 = arith.constant 0 : i32
    %c0_i32_0 = arith.constant 0 : i32
    %c0_i32_1 = arith.constant 0 : i32
    return %c0_i32, %c0_i32_0 : i32, i32
  }
  func.func @transform_8(%arg0: i32) -> (i32, i32) {
    %c0_i32 = arith.constant 0 : i32
    %c0_i32_0 = arith.constant 0 : i32
    %c0_i32_1 = arith.constant 0 : i32
    return %c0_i32, %c0_i32_0 : i32, i32
  }
  func.func @transform_9(%arg0: i32) -> (i32, i32) {
    %c0_i32 = arith.constant 0 : i32
    %c0_i32_0 = arith.constant 0 : i32
    return %arg0, %c0_i32 : i32, i32
  }
}

module attributes {stable_mosaic.version = 11 : i64} {
  func.func @actor_kernel(%arg0: i32, %arg1: memref<8x32xbf16, #tpu.memory_space<vmem>>, %arg2: memref<32x512xbf16, #tpu.memory_space<vmem>>, %arg3: memref<1x512xf32, #tpu.memory_space<vmem>>, %arg4: memref<512x512xbf16, #tpu.memory_space<vmem>>, %arg5: memref<1x512xf32, #tpu.memory_space<vmem>>, %arg6: memref<512x512xbf16, #tpu.memory_space<vmem>>, %arg7: memref<1x512xf32, #tpu.memory_space<vmem>>, %arg8: memref<512x128xbf16, #tpu.memory_space<vmem>>, %arg9: memref<1x128xf32, #tpu.memory_space<vmem>>, %arg10: memref<8x128xf32, #tpu.memory_space<vmem>>) attributes {dimension_semantics = [#tpu.dimension_semantics<parallel>], iteration_bounds = array<i64: 1>, scalar_prefetch = 0 : i64, scratch_operands = 0 : i64, tpu.core_type = #tpu.core_type<tc>, window_params = [{transform_indices = @transform_0, window_bounds = array<i64: 8, 32>}, {pipeline_mode = #tpu.pipeline_mode<synchronous>, transform_indices = @transform_1, window_bounds = array<i64: 32, 512>}, {pipeline_mode = #tpu.pipeline_mode<synchronous>, transform_indices = @transform_2, window_bounds = array<i64: 1, 512>}, {pipeline_mode = #tpu.pipeline_mode<synchronous>, transform_indices = @transform_3, window_bounds = array<i64: 512, 512>}, {pipeline_mode = #tpu.pipeline_mode<synchronous>, transform_indices = @transform_4, window_bounds = array<i64: 1, 512>}, {pipeline_mode = #tpu.pipeline_mode<synchronous>, transform_indices = @transform_5, window_bounds = array<i64: 512, 512>}, {pipeline_mode = #tpu.pipeline_mode<synchronous>, transform_indices = @transform_6, window_bounds = array<i64: 1, 512>}, {pipeline_mode = #tpu.pipeline_mode<synchronous>, transform_indices = @transform_7, window_bounds = array<i64: 512, 128>}, {pipeline_mode = #tpu.pipeline_mode<synchronous>, transform_indices = @transform_8, window_bounds = array<i64: 1, 128>}, {transform_indices = @transform_9, window_bounds = array<i64: 8, 128>}]} {
    %c0 = arith.constant 0 : index
    %c0_0 = arith.constant 0 : index
    %0 = vector.load %arg1[%c0, %c0_0] : memref<8x32xbf16, #tpu.memory_space<vmem>>, vector<8x32xbf16>
    %c0_1 = arith.constant 0 : index
    %c0_2 = arith.constant 0 : index
    %1 = vector.load %arg2[%c0_1, %c0_2] : memref<32x512xbf16, #tpu.memory_space<vmem>>, vector<32x512xbf16>
    %cst = arith.constant dense<0.000000e+00> : vector<8x512xf32>
    %2 = tpu.matmul %0, %1, %cst {dimension_numbers = #tpu.dot_dimension_numbers<[1], [0], [0], [1], [0, 0, 1, 1], [], []>} : vector<8x32xbf16>, vector<32x512xbf16>, vector<8x512xf32> -> vector<8x512xf32>
    %c0_3 = arith.constant 0 : index
    %c0_4 = arith.constant 0 : index
    %3 = vector.load %arg3[%c0_3, %c0_4] : memref<1x512xf32, #tpu.memory_space<vmem>>, vector<1x512xf32>
    %4 = vector.broadcast %3 : vector<1x512xf32> to vector<8x512xf32>
    %5 = arith.addf %2, %4 : vector<8x512xf32>
    %cst_5 = arith.constant 0.000000e+00 : f32
    %6 = vector.broadcast %cst_5 : f32 to vector<8x512xf32>
    %7 = arith.cmpf ogt, %5, %6 : vector<8x512xf32>
    %cst_6 = arith.constant 0.00999999977 : f32
    %8 = vector.broadcast %cst_6 : f32 to vector<8x512xf32>
    %9 = arith.mulf %8, %5 : vector<8x512xf32>
    %10 = arith.select %7, %5, %9 : vector<8x512xi1>, vector<8x512xf32>
    %11 = arith.truncf %10 : vector<8x512xf32> to vector<8x512xbf16>
    %c0_7 = arith.constant 0 : index
    %c0_8 = arith.constant 0 : index
    %12 = vector.load %arg4[%c0_7, %c0_8] : memref<512x512xbf16, #tpu.memory_space<vmem>>, vector<512x512xbf16>
    %cst_9 = arith.constant dense<0.000000e+00> : vector<8x512xf32>
    %13 = tpu.matmul %11, %12, %cst_9 {dimension_numbers = #tpu.dot_dimension_numbers<[1], [0], [0], [1], [0, 0, 1, 1], [], []>} : vector<8x512xbf16>, vector<512x512xbf16>, vector<8x512xf32> -> vector<8x512xf32>
    %c0_10 = arith.constant 0 : index
    %c0_11 = arith.constant 0 : index
    %14 = vector.load %arg5[%c0_10, %c0_11] : memref<1x512xf32, #tpu.memory_space<vmem>>, vector<1x512xf32>
    %15 = vector.broadcast %14 : vector<1x512xf32> to vector<8x512xf32>
    %16 = arith.addf %13, %15 : vector<8x512xf32>
    %cst_12 = arith.constant 0.000000e+00 : f32
    %17 = vector.broadcast %cst_12 : f32 to vector<8x512xf32>
    %18 = arith.cmpf ogt, %16, %17 : vector<8x512xf32>
    %cst_13 = arith.constant 0.00999999977 : f32
    %19 = vector.broadcast %cst_13 : f32 to vector<8x512xf32>
    %20 = arith.mulf %19, %16 : vector<8x512xf32>
    %21 = arith.select %18, %16, %20 : vector<8x512xi1>, vector<8x512xf32>
    %22 = arith.truncf %21 : vector<8x512xf32> to vector<8x512xbf16>
    %c0_14 = arith.constant 0 : index
    %c0_15 = arith.constant 0 : index
    %23 = vector.load %arg6[%c0_14, %c0_15] : memref<512x512xbf16, #tpu.memory_space<vmem>>, vector<512x512xbf16>
    %cst_16 = arith.constant dense<0.000000e+00> : vector<8x512xf32>
    %24 = tpu.matmul %22, %23, %cst_16 {dimension_numbers = #tpu.dot_dimension_numbers<[1], [0], [0], [1], [0, 0, 1, 1], [], []>} : vector<8x512xbf16>, vector<512x512xbf16>, vector<8x512xf32> -> vector<8x512xf32>
    %c0_17 = arith.constant 0 : index
    %c0_18 = arith.constant 0 : index
    %25 = vector.load %arg7[%c0_17, %c0_18] : memref<1x512xf32, #tpu.memory_space<vmem>>, vector<1x512xf32>
    %26 = vector.broadcast %25 : vector<1x512xf32> to vector<8x512xf32>
    %27 = arith.addf %24, %26 : vector<8x512xf32>
    %cst_19 = arith.constant 0.000000e+00 : f32
    %28 = vector.broadcast %cst_19 : f32 to vector<8x512xf32>
    %29 = arith.cmpf ogt, %27, %28 : vector<8x512xf32>
    %cst_20 = arith.constant 0.00999999977 : f32
    %30 = vector.broadcast %cst_20 : f32 to vector<8x512xf32>
    %31 = arith.mulf %30, %27 : vector<8x512xf32>
    %32 = arith.select %29, %27, %31 : vector<8x512xi1>, vector<8x512xf32>
    %33 = arith.truncf %32 : vector<8x512xf32> to vector<8x512xbf16>
    %c0_21 = arith.constant 0 : index
    %c0_22 = arith.constant 0 : index
    %34 = vector.load %arg8[%c0_21, %c0_22] : memref<512x128xbf16, #tpu.memory_space<vmem>>, vector<512x128xbf16>
    %cst_23 = arith.constant dense<0.000000e+00> : vector<8x128xf32>
    %35 = tpu.matmul %33, %34, %cst_23 {dimension_numbers = #tpu.dot_dimension_numbers<[1], [0], [0], [1], [0, 0, 1, 1], [], []>} : vector<8x512xbf16>, vector<512x128xbf16>, vector<8x128xf32> -> vector<8x128xf32>
    %c0_24 = arith.constant 0 : index
    %c0_25 = arith.constant 0 : index
    %36 = vector.load %arg9[%c0_24, %c0_25] : memref<1x128xf32, #tpu.memory_space<vmem>>, vector<1x128xf32>
    %37 = vector.broadcast %36 : vector<1x128xf32> to vector<8x128xf32>
    %38 = arith.addf %35, %37 : vector<8x128xf32>
    %39 = math.tanh %38 : vector<8x128xf32>
    %c0_26 = arith.constant 0 : index
    %c0_27 = arith.constant 0 : index
    %40 = vector.load %arg10[%c0_26, %c0_27] : memref<8x128xf32, #tpu.memory_space<vmem>>, vector<8x128xf32>
    tpu.vector_store %arg10[%c0_26, %c0_27], %39 {strides = array<i32>} : memref<8x128xf32, #tpu.memory_space<vmem>>, vector<8x128xf32>,
    return
  }
  func.func @transform_0(%arg0: i32) -> (i32, i32) {
    %c0_i32 = arith.constant 0 : i32
    %c0_i32_0 = arith.constant 0 : i32
    return %arg0, %c0_i32 : i32, i32
  }
  func.func @transform_1(%arg0: i32) -> (i32, i32) {
    %c0_i32 = arith.constant 0 : i32
    %c0_i32_0 = arith.constant 0 : i32
    %c0_i32_1 = arith.constant 0 : i32
    return %c0_i32, %c0_i32_0 : i32, i32
  }
  func.func @transform_2(%arg0: i32) -> (i32, i32) {
    %c0_i32 = arith.constant 0 : i32
    %c0_i32_0 = arith.constant 0 : i32
    %c0_i32_1 = arith.constant 0 : i32
    return %c0_i32, %c0_i32_0 : i32, i32
  }
  func.func @transform_3(%arg0: i32) -> (i32, i32) {
    %c0_i32 = arith.constant 0 : i32
    %c0_i32_0 = arith.constant 0 : i32
    %c0_i32_1 = arith.constant 0 : i32
    return %c0_i32, %c0_i32_0 : i32, i32
  }
  func.func @transform_4(%arg0: i32) -> (i32, i32) {
    %c0_i32 = arith.constant 0 : i32
    %c0_i32_0 = arith.constant 0 : i32
    %c0_i32_1 = arith.constant 0 : i32
    return %c0_i32, %c0_i32_0 : i32, i32
  }
  func.func @transform_5(%arg0: i32) -> (i32, i32) {
    %c0_i32 = arith.constant 0 : i32
    %c0_i32_0 = arith.constant 0 : i32
    %c0_i32_1 = arith.constant 0 : i32
    return %c0_i32, %c0_i32_0 : i32, i32
  }
  func.func @transform_6(%arg0: i32) -> (i32, i32) {
    %c0_i32 = arith.constant 0 : i32
    %c0_i32_0 = arith.constant 0 : i32
    %c0_i32_1 = arith.constant 0 : i32
    return %c0_i32, %c0_i32_0 : i32, i32
  }
  func.func @transform_7(%arg0: i32) -> (i32, i32) {
    %c0_i32 = arith.constant 0 : i32
    %c0_i32_0 = arith.constant 0 : i32
    %c0_i32_1 = arith.constant 0 : i32
    return %c0_i32, %c0_i32_0 : i32, i32
  }
  func.func @transform_8(%arg0: i32) -> (i32, i32) {
    %c0_i32 = arith.constant 0 : i32
    %c0_i32_0 = arith.constant 0 : i32
    %c0_i32_1 = arith.constant 0 : i32
    return %c0_i32, %c0_i32_0 : i32, i32
  }
  func.func @transform_9(%arg0: i32) -> (i32, i32) {
    %c0_i32 = arith.constant 0 : i32
    %c0_i32_0 = arith.constant 0 : i32
    return %arg0, %c0_i32 : i32, i32
  }
}

</mosaic_0001>

<bundles_post_ra>
// kernel: tpu_custom_call.1
= control target key start
LH: loop header
LB: loop body
LE: loop exit
PB: predicated region body
PF: predicated region fallthrough
CT: control target
= control target key end

     0   :  { %14 = vsyncpa [#allocation3], 0  ;;  %s4478_s0 = inlined_call_operand.hbm [shape: bf16[8,32], index: 0, kind: input, shape index: {}]   ;;  %s4479_s1 = inlined_call_operand.hbm [shape: bf16[32,512], index: 1, kind: input, shape index: {}]   ;;  %s4480_s2 = inlined_call_operand.hbm [shape: f32[1,512], index: 2, kind: input, shape index: {}]   ;;  %s4481_s3 = inlined_call_operand.hbm [shape: bf16[512,512], index: 3, kind: input, shape index: {}]   ;;  %s4482_s4 = inlined_call_operand.hbm [shape: f32[1,512], index: 4, kind: input, shape index: {}]   ;;  %s4483_s5 = inlined_call_operand.hbm [shape: bf16[512,512], index: 5, kind: input, shape index: {}]   ;;  %s4484_s6 = inlined_call_operand.vmem [shape: f32[1,512], index: 6, kind: input, shape index: {}]   ;;  %s4485_s7 = inlined_call_operand.hbm [shape: bf16[512,128], index: 7, kind: input, shape index: {}]   ;;  %s4486_s8 = inlined_call_operand.vmem [shape: f32[1,128], index: 8, kind: input, shape index: {}]   ;;  %s4487_s9 = inlined_call_operand.hbm [shape: f32[8,128], index: 9, kind: output, shape index: {}]  }
   0x1   :  { %15 = vsyncpa [#allocation6], 0 }
   0x2   :  { %16 = vsyncpa [#allocation9], 0 }
   0x3   :  { %17 = vsyncpa [#allocation12], 0  ;;  %s34_s11 = sshll.u32 %s4479_s1, 4  ;;  %s35_s11 = int_to_ptr.hbm [resolvable:$true] %s34_s11 }
   0x4   :  { %18 = vsyncpa [#allocation4], 0  ;;  %s4307_s12 = smov [#allocation5]   ;;  %s58_s16 = sshll.u32 %s4481_s3, 4  ;;  %s59_s16 = int_to_ptr.hbm [resolvable:$true] %s58_s16 }
   0x5   :  { %s36_s13 = sshll.u32 %s4307_s12, 4  ;;  %s4308_s17 = smov 256   ;;  %s37_s13 = int_to_ptr.vmem [resolvable:$true] %s36_s13 }
   0x6   :  { %s4309_s18 = smov 16   ;;  %s4310_s19 = smov [#allocation8]  }
   0x7   :  { %42 = dma.hbm_to_vmem [thread:$0]  %s35_s11, 1024, %s37_s13, [#allocation6], %s4308_s17, %s4308_s17, %s4309_s18  }
   0x8   :  { %s60_s20 = sshll.u32 %s4310_s19, 4  ;;  %s82_s23 = sshll.u32 %s4483_s5, 4  ;;  %s61_s20 = int_to_ptr.vmem [resolvable:$true] %s60_s20  ;;  %s83_s23 = int_to_ptr.hbm [resolvable:$true] %s82_s23 }
   0x9   :  { %66 = dma.hbm_to_vmem [thread:$0]  %s59_s16, 16384, %s61_s20, [#allocation9], %s4308_s17, %s4308_s17, %s4309_s18  }
   0xa   :  { %s24_s25 = sshll.u32 %s4478_s0, 4  ;;  %s4311_s26 = smov [#allocation11]   ;;  %s25_s25 = int_to_ptr.hbm [resolvable:$true] %s24_s25 }
   0xb   :  { %s84_s27 = sshll.u32 %s4311_s26, 4  ;;  %s4312_s3 = smov [#allocation2]   ;;  %s85_s27 = int_to_ptr.vmem [resolvable:$true] %s84_s27 }
   0xc   :  { %90 = dma.hbm_to_vmem [thread:$0]  %s83_s23, 16384, %s85_s27, [#allocation12], %s4308_s17, %s4308_s17, %s4309_s18  }
   0xd   :  { %s26_s28 = sshll.u32 %s4312_s3, 4  ;;  %s48_s10 = sshll.u32 %s4480_s2, 4  ;;  %s27_s28 = int_to_ptr.vmem [resolvable:$true] %s26_s28  ;;  %s49_s10 = int_to_ptr.hbm [resolvable:$true] %s48_s10 }
   0xe   :  { %29 = dma.hbm_to_vmem [thread:$0]  %s25_s25, 64, %s27_s28, [#allocation3]  }
   0xf   :  { %s72_s12 = sshll.u32 %s4482_s4, 4  ;;  %s4313_s13 = smov [#allocation7]   ;;  %s73_s12 = int_to_ptr.hbm [resolvable:$true] %s72_s12 }
  0x10   :  { %s50_s0 = sshll.u32 %s4313_s13, 4  ;;  %s4314_s14 = smov [#allocation10]   ;;  %s51_s0 = int_to_ptr.vmem [resolvable:$true] %s50_s0 }
  0x11   :  { %53 = dma.hbm_to_vmem [thread:$0]  %s49_s10, 64, %s51_s0, [#allocation6]  }
  0x12   :  { %s74_s15 = sshll.u32 %s4314_s14, 4  ;;  %s97_s18 = sshll.u32 %s4485_s7, 4  ;;  %s75_s15 = int_to_ptr.vmem [resolvable:$true] %s74_s15  ;;  %s98_s18 = int_to_ptr.hbm [resolvable:$true] %s97_s18 }
  0x13   :  { %77 = dma.hbm_to_vmem [thread:$0]  %s73_s12, 64, %s75_s15, [#allocation9]  }
  0x14   :  { %s4315_s2 = smov [#allocation13]   ;;  %s4316_s20 = smov 64  }
  0x15   :  { %s99_s19 = sshll.u32 %s4315_s2, 4  ;;  %s4317_s21 = smov 4   ;;  %s100_s19 = int_to_ptr.vmem [resolvable:$true] %s99_s19 }
  0x16   :  { %105 = dma.hbm_to_vmem [thread:$0]  %s98_s18, 4096, %s100_s19, [#allocation12], %s4316_s20, %s4316_s20, %s4317_s21  }
  0x17   :  { %4297 = dma.done.wait [#allocation3], 64  }
  0x18   :  { %4298 = vsyncadd [#allocation3], 4294967232 }
  0x19   :  { %4299 = dma.done.wait [#allocation6], 1088  }
  0x1a   :  { %4300 = vsyncadd [#allocation6], 4294966208 }
  0x1b   :  { %4301 = dma.done.wait [#allocation9], 16448  }
  0x1c   :  { %4302 = vsyncadd [#allocation9], 4294950848 }
  0x1d   :  { %4303 = dma.done.wait [#allocation12], 20480  }
  0x1e   :  { %4304 = vsyncadd [#allocation12], 4294946816  ;;  %vm196_vm0 = vcmask 261120   ;;  %v2624_v0 = vld [vmem:[#allocation5 + $0x20] sm:$0xf]  ;;  %s4318_s23 = smov [#allocation14]  }
  0x1f   :  { %v3800_v1 = vld [vmem:[#allocation5 + $0x2c] sm:$0xf0]  ;;  %v3798_v2 = vld [vmem:[#allocation5 + $0x24] sm:$0xf]  ;;  %v2626_v4 = vld [vmem:[#allocation5 + $0x30] sm:$0xf0] }
  0x20   :  { %v2625_v3 = vor.u32 %v3800_v1, %v2624_v0  ;;  %v2632_v5 = vld [vmem:[#allocation5 + $0x28] sm:$0xf]  ;;  %v3801_v6 = vld [vmem:[#allocation5 + $0x34] sm:$0xf0]  ;;  %v2629_v7 = vor.u32 %v3798_v2, %v2626_v4  ;;  %v3799_v9 = vld [vmem:[#allocation5 + $0x2c] sm:$0xf] }
  0x21   :  { %v2633_v8 = vor.u32 %v3801_v6, %v2632_v5  ;;  %v2634_v10 = vld [vmem:[#allocation5 + $0x38] sm:$0xf0]  ;;  %v2608_v11 = vld [vmem:[#allocation5] sm:$0xf]  ;;  %v3796_v13 = vld [vmem:[#allocation5 + $0xc] sm:$0xf0] }
  0x22   :  { %206 = vmatpush.bf16.msra.mxu0 %v2625_v3  ;;  %v2637_v12 = vor.u32 %v3799_v9, %v2634_v10  ;;  %v3794_v14 = vld [vmem:[#allocation5 + $0x4] sm:$0xf]  ;;  %v2610_v15 = vld [vmem:[#allocation5 + $0x10] sm:$0xf0]  ;;  %219 = vmatpush.bf16.msra.mxu1 %v2629_v7  ;;  %v2609_v16 = vor.u32 %v3796_v13, %v2608_v11  ;;  %v2616_v18 = vld [vmem:[#allocation5 + $0x8] sm:$0xf] }
  0x23   :  { %232 = vmatpush.bf16.msra.mxu2 %v2633_v8  ;;  %v2613_v17 = vor.u32 %v3794_v14, %v2610_v15  ;;  %v3797_v19 = vld [vmem:[#allocation5 + $0x14] sm:$0xf0]  ;;  %v3795_v20 = vld [vmem:[#allocation5 + $0xc] sm:$0xf]  ;;  %v2618_v22 = vld [vmem:[#allocation5 + $0x18] sm:$0xf0] }
  0x24   :  { %245 = vmatpush.bf16.msra.mxu3 %v2637_v12  ;;  %v2617_v21 = vor.u32 %v3797_v19, %v2616_v18  ;;  %v137_v23 = vld [vmem:[#allocation2] sm:$0xf]  ;;  %v2756_v24 = vld [vmem:[#allocation8 + $0xe0] sm:$0xf]  ;;  %v2621_v25 = vor.u32 %v3795_v20, %v2618_v22  ;;  %v3832_v26 = vld [vmem:[#allocation8 + $0xec] sm:$0xf0] }
  0x25   :  { %v2884_v27 = vld [vmem:[#allocation8 + $0x1e0] sm:$0xf]  ;;  %v3864_v28 = vld [vmem:[#allocation8 + $0x1ec] sm:$0xf0]  ;;  %v2757_v29 = vor.u32 %v3832_v26, %v2756_v24  ;;  %s2591_s1 = sshll.u32 %s4318_s23, 4  ;;  %s2593_s26 = sshll.u32 %s4487_s9, 4  ;;  %s2592_s1 = int_to_ptr.vmem [resolvable:$true] %s2591_s1  ;;  %s2594_s26 = int_to_ptr.hbm [resolvable:$true] %s2593_s26 }
  0x26   :  { %207 = vmatpush.bf16.msra.mxu0 %v2609_v16  ;;  %v2885_v30 = vor.u32 %v3864_v28, %v2884_v27  ;;  %v2740_v31 = vld [vmem:[#allocation8 + $0xc0] sm:$0xf]  ;;  %v3828_v32 = vld [vmem:[#allocation8 + $0xcc] sm:$0xf0]  ;;  %220 = vmatpush.bf16.msra.mxu1 %v2613_v17 }
  0x27   :  { %v2868_v33 = vld [vmem:[#allocation8 + $0x1c0] sm:$0xf]  ;;  %233 = vmatpush.bf16.msra.mxu2 %v2617_v21  ;;  %v3860_v34 = vld [vmem:[#allocation8 + $0x1cc] sm:$0xf0]  ;;  %v2741_v37 = vor.u32 %v3828_v32, %v2740_v31 }
  0x28   :  { %v3012_v35 = vld [vmem:[#allocation8 + $0x2e0] sm:$0xf]  ;;  %v3896_v36 = vld [vmem:[#allocation8 + $0x2ec] sm:$0xf0]  ;;  %246 = vmatpush.bf16.msra.mxu3 %v2621_v25  ;;  %v2869_v42 = vor.u32 %v3860_v34, %v2868_v33 }
  0x29   :  { %v3013_v38 = vor.u32 %v3896_v36, %v3012_v35  ;;  %v3140_v39 = vld [vmem:[#allocation8 + $0x3e0] sm:$0xf]  ;;  %v3928_v40 = vld [vmem:[#allocation8 + $0x3ec] sm:$0xf0]  ;;  %2638 = vmatmul.msk.bf16.vlgmr.msra.gmra.mxu0 %vm196_vm0, %v137_v23  ;;  %2639 = vmatmul.msk.bf16.vlgmr.msra.gmra.mxu1 %vm196_vm0, %v137_v23 }
  0x2a   :  { %1046 = vmatpush.bf16.msrb.mxu0 %v2757_v29  ;;  %v2724_v41 = vld [vmem:[#allocation8 + $0xa0] sm:$0xf]  ;;  %1059 = vmatpush.bf16.msrb.mxu1 %v2885_v30  ;;  %v3141_v43 = vor.u32 %v3928_v40, %v3140_v39  ;;  %v3824_v44 = vld [vmem:[#allocation8 + $0xac] sm:$0xf0] }
  0x2b   :  { %v2852_v45 = vld [vmem:[#allocation8 + $0x1a0] sm:$0xf]  ;;  %v3856_v46 = vld [vmem:[#allocation8 + $0x1ac] sm:$0xf0]  ;;  %2640 = vmatmul.msk.bf16.vlgmr.msra.gmra.mxu2 %vm196_vm0, %v137_v23  ;;  %2641 = vmatmul.msk.bf16.vlgmr.msra.gmra.mxu3 %vm196_vm0, %v137_v23  ;;  %v2725_v52 = vor.u32 %v3824_v44, %v2724_v41 }
  0x2c   :  { %v2996_v47 = vld [vmem:[#allocation8 + $0x2c0] sm:$0xf]  ;;  %v3892_v48 = vld [vmem:[#allocation8 + $0x2cc] sm:$0xf0]  ;;  %1072 = vmatpush.bf16.msrb.mxu2 %v3013_v38  ;;  %1085 = vmatpush.bf16.msrb.mxu3 %v3141_v43  ;;  %v2853_v57 = vor.u32 %v3856_v46, %v2852_v45 }
  0x2d   :  { %v3124_v49 = vld [vmem:[#allocation8 + $0x3c0] sm:$0xf]  ;;  %v2997_v50 = vor.u32 %v3892_v48, %v2996_v47  ;;  %v3924_v51 = vld [vmem:[#allocation8 + $0x3cc] sm:$0xf0]  ;;  %v3830_v47 = vld [vmem:[#allocation8 + $0xe4] sm:$0xf] }
  0x2e   :  { %1047 = vmatpush.bf16.msrb.mxu0 %v2741_v37  ;;  %v3125_v53 = vor.u32 %v3924_v51, %v3124_v49  ;;  %v2708_v54 = vld [vmem:[#allocation8 + $0x80] sm:$0xf]  ;;  %v3820_v55 = vld [vmem:[#allocation8 + $0x8c] sm:$0xf0]  ;;  %1060 = vmatpush.bf16.msrb.mxu1 %v2869_v42  ;;  %v2758_v48 = vld [vmem:[#allocation8 + $0xf0] sm:$0xf0] }
  0x2f   :  { %v2980_v56 = vld [vmem:[#allocation8 + $0x2a0] sm:$0xf]  ;;  %v3888_v58 = vld [vmem:[#allocation8 + $0x2ac] sm:$0xf0]  ;;  %v2709_v0 = vor.u32 %v3820_v55, %v2708_v54  ;;  %v3862_v49 = vld [vmem:[#allocation8 + $0x1e4] sm:$0xf] }
  0x30   :  { %v3108_v59 = vld [vmem:[#allocation8 + $0x3a0] sm:$0xf]  ;;  %v3920_v60 = vld [vmem:[#allocation8 + $0x3ac] sm:$0xf0]  ;;  %1073 = vmatpush.bf16.msrb.mxu2 %v2997_v50  ;;  %v2981_v63 = vor.u32 %v3888_v58, %v2980_v56  ;;  %1086 = vmatpush.bf16.msrb.mxu3 %v3125_v53  ;;  %v2886_v50 = vld [vmem:[#allocation8 + $0x1f0] sm:$0xf0] }
  0x31   :  { %v2836_v61 = vld [vmem:[#allocation8 + $0x180] sm:$0xf]  ;;  %v3852_v62 = vld [vmem:[#allocation8 + $0x18c] sm:$0xf0]  ;;  %v3109_v1 = vor.u32 %v3920_v60, %v3108_v59  ;;  %v3826_v54 = vld [vmem:[#allocation8 + $0xc4] sm:$0xf]  ;;  %v2761_v59 = vor.u32 %v3830_v47, %v2758_v48 }
  0x32   :  { %1048 = vmatpush.bf16.msrb.mxu0 %v2725_v52  ;;  %v2692_v2 = vld [vmem:[#allocation8 + $0x60] sm:$0xf]  ;;  %v3884_v4 = vld [vmem:[#allocation8 + $0x28c] sm:$0xf0]  ;;  %1061 = vmatpush.bf16.msrb.mxu1 %v2853_v57  ;;  %v2837_v5 = vor.u32 %v3852_v62, %v2836_v61  ;;  %v3894_v61 = vld [vmem:[#allocation8 + $0x2e4] sm:$0xf] }
  0x33   :  { %v2964_v3 = vld [vmem:[#allocation8 + $0x280] sm:$0xf]  ;;  %v3816_v6 = vld [vmem:[#allocation8 + $0x6c] sm:$0xf0]  ;;  %v3014_v62 = vld [vmem:[#allocation8 + $0x2f0] sm:$0xf0] }
  0x34   :  { %v3092_v7 = vld [vmem:[#allocation8 + $0x380] sm:$0xf]  ;;  %v3916_v8 = vld [vmem:[#allocation8 + $0x38c] sm:$0xf0]  ;;  %1074 = vmatpush.bf16.msrb.mxu2 %v2981_v63  ;;  %v2965_v11 = vor.u32 %v3884_v4, %v2964_v3  ;;  %1087 = vmatpush.bf16.msrb.mxu3 %v3109_v1  ;;  %v2693_v12 = vor.u32 %v3816_v6, %v2692_v2  ;;  %v2889_v63 = vor.u32 %v3862_v49, %v2886_v50  ;;  %v3926_v1 = vld [vmem:[#allocation8 + $0x3e4] sm:$0xf] }
  0x35   :  { %v2820_v9 = vld [vmem:[#allocation8 + $0x160] sm:$0xf]  ;;  %v3848_v10 = vld [vmem:[#allocation8 + $0x16c] sm:$0xf0]  ;;  %v3093_v13 = vor.u32 %v3916_v8, %v3092_v7  ;;  %v3142_v2 = vld [vmem:[#allocation8 + $0x3f0] sm:$0xf0]  ;;  %v3017_v7 = vor.u32 %v3894_v61, %v3014_v62 }
  0x36   :  { %1049 = vmatpush.bf16.msrb.mxu0 %v2709_v0  ;;  %v2676_v14 = vld [vmem:[#allocation8 + $0x40] sm:$0xf]  ;;  %v3880_v16 = vld [vmem:[#allocation8 + $0x26c] sm:$0xf0]  ;;  %1062 = vmatpush.bf16.msrb.mxu1 %v2837_v5  ;;  %v2821_v17 = vor.u32 %v3848_v10, %v2820_v9  ;;  %v2742_v0 = vld [vmem:[#allocation8 + $0xd0] sm:$0xf0]  ;;  %v3145_v9 = vor.u32 %v3926_v1, %v3142_v2 }
  0x37   :  { %v2948_v15 = vld [vmem:[#allocation8 + $0x260] sm:$0xf]  ;;  %v3812_v18 = vld [vmem:[#allocation8 + $0x4c] sm:$0xf0]  ;;  %v3858_v3 = vld [vmem:[#allocation8 + $0x1c4] sm:$0xf]  ;;  %v2745_v8 = vor.u32 %v3826_v54, %v2742_v0 }
  0x38   :  { %v3076_v19 = vld [vmem:[#allocation8 + $0x360] sm:$0xf]  ;;  %v3912_v20 = vld [vmem:[#allocation8 + $0x36c] sm:$0xf0]  ;;  %1075 = vmatpush.bf16.msrb.mxu2 %v2965_v11  ;;  %v2949_v23 = vor.u32 %v3880_v16, %v2948_v15  ;;  %1088 = vmatpush.bf16.msrb.mxu3 %v3093_v13  ;;  %v2677_v24 = vor.u32 %v3812_v18, %v2676_v14  ;;  %v2870_v4 = vld [vmem:[#allocation8 + $0x1d0] sm:$0xf0] }
  0x39   :  { %v2804_v21 = vld [vmem:[#allocation8 + $0x140] sm:$0xf]  ;;  %v3844_v22 = vld [vmem:[#allocation8 + $0x14c] sm:$0xf0]  ;;  %v3077_v25 = vor.u32 %v3912_v20, %v3076_v19  ;;  %v3822_v10 = vld [vmem:[#allocation8 + $0xa4] sm:$0xf]  ;;  %v2873_v13 = vor.u32 %v3858_v3, %v2870_v4 }
  0x3a   :  { %1050 = vmatpush.bf16.msrb.mxu0 %v2693_v12  ;;  %v2660_v26 = vld [vmem:[#allocation8 + $0x20] sm:$0xf]  ;;  %v3876_v28 = vld [vmem:[#allocation8 + $0x24c] sm:$0xf0]  ;;  %1063 = vmatpush.bf16.msrb.mxu1 %v2821_v17  ;;  %v2805_v29 = vor.u32 %v3844_v22, %v2804_v21  ;;  %v3890_v11 = vld [vmem:[#allocation8 + $0x2c4] sm:$0xf] }
  0x3b   :  { %v2932_v27 = vld [vmem:[#allocation8 + $0x240] sm:$0xf]  ;;  %v3808_v30 = vld [vmem:[#allocation8 + $0x2c] sm:$0xf0]  ;;  %v2998_v12 = vld [vmem:[#allocation8 + $0x2d0] sm:$0xf0] }
  0x3c   :  { %v3060_v31 = vld [vmem:[#allocation8 + $0x340] sm:$0xf]  ;;  %v3908_v32 = vld [vmem:[#allocation8 + $0x34c] sm:$0xf0]  ;;  %1076 = vmatpush.bf16.msrb.mxu2 %v2949_v23  ;;  %v2933_v35 = vor.u32 %v3876_v28, %v2932_v27  ;;  %1089 = vmatpush.bf16.msrb.mxu3 %v3077_v25  ;;  %v2661_v37 = vor.u32 %v3808_v30, %v2660_v26  ;;  %v2726_v14 = vld [vmem:[#allocation8 + $0xb0] sm:$0xf0]  ;;  %v3001_v19 = vor.u32 %v3890_v11, %v2998_v12 }
  0x3d   :  { %v2788_v33 = vld [vmem:[#allocation8 + $0x120] sm:$0xf]  ;;  %v3840_v34 = vld [vmem:[#allocation8 + $0x12c] sm:$0xf0]  ;;  %v3061_v38 = vor.u32 %v3908_v32, %v3060_v31  ;;  %v3922_v15 = vld [vmem:[#allocation8 + $0x3c4] sm:$0xf]  ;;  %v2729_v20 = vor.u32 %v3822_v10, %v2726_v14 }
  0x3e   :  { %v2644_v36 = vld [vmem:[#allocation8] sm:$0xf]  ;;  %1051 = vmatpush.bf16.msrb.mxu0 %v2677_v24  ;;  %v3804_v39 = vld [vmem:[#allocation8 + $0xc] sm:$0xf0]  ;;  %1064 = vmatpush.bf16.msrb.mxu1 %v2805_v29  ;;  %v2789_v42 = vor.u32 %v3840_v34, %v2788_v33  ;;  %v3126_v16 = vld [vmem:[#allocation8 + $0x3d0] sm:$0xf0] }
  0x3f   :  { %v2916_v40 = vld [vmem:[#allocation8 + $0x220] sm:$0xf]  ;;  %v3872_v41 = vld [vmem:[#allocation8 + $0x22c] sm:$0xf0]  ;;  %v2645_v52 = vor.u32 %v3804_v39, %v2644_v36  ;;  %v3854_v17 = vld [vmem:[#allocation8 + $0x1a4] sm:$0xf]  ;;  %v3129_v21 = vor.u32 %v3922_v15, %v3126_v16 }
  0x40   :  { %v2772_v43 = vld [vmem:[#allocation8 + $0x100] sm:$0xf]  ;;  %v3904_v45 = vld [vmem:[#allocation8 + $0x32c] sm:$0xf0]  ;;  %1077 = vmatpush.bf16.msrb.mxu2 %v2933_v35  ;;  %v2917_v51 = vor.u32 %v3872_v41, %v2916_v40  ;;  %1090 = vmatpush.bf16.msrb.mxu3 %v3061_v38  ;;  %v2854_v18 = vld [vmem:[#allocation8 + $0x1b0] sm:$0xf0] }
  0x41   :  { %v3044_v44 = vld [vmem:[#allocation8 + $0x320] sm:$0xf]  ;;  %v3836_v46 = vld [vmem:[#allocation8 + $0x10c] sm:$0xf0]  ;;  %v3818_v22 = vld [vmem:[#allocation8 + $0x84] sm:$0xf]  ;;  %v2857_v25 = vor.u32 %v3854_v17, %v2854_v18 }
  0x42   :  { %1052 = vmatpush.bf16.msrb.mxu0 %v2661_v37  ;;  %v3045_v53 = vor.u32 %v3904_v45, %v3044_v44  ;;  %v2900_v55 = vld [vmem:[#allocation8 + $0x200] sm:$0xf]  ;;  %v3868_v56 = vld [vmem:[#allocation8 + $0x20c] sm:$0xf0]  ;;  %1065 = vmatpush.bf16.msrb.mxu1 %v2789_v42  ;;  %v2773_v58 = vor.u32 %v3836_v46, %v2772_v43  ;;  %v3886_v23 = vld [vmem:[#allocation8 + $0x2a4] sm:$0xf] }
  0x43   :  { %v3028_v57 = vld [vmem:[#allocation8 + $0x300] sm:$0xf]  ;;  %v3900_v60 = vld [vmem:[#allocation8 + $0x30c] sm:$0xf0]  ;;  %v2901_v5 = vor.u32 %v3868_v56, %v2900_v55  ;;  %v2982_v24 = vld [vmem:[#allocation8 + $0x2b0] sm:$0xf0] }
  0x44   :  { %1078 = vmatpush.bf16.msrb.mxu2 %v2917_v51  ;;  %1091 = vmatpush.bf16.msrb.mxu3 %v3045_v53  ;;  %v3029_v6 = vor.u32 %v3900_v60, %v3028_v57  ;;  %v2710_v26 = vld [vmem:[#allocation8 + $0x90] sm:$0xf0]  ;;  %v3918_v27 = vld [vmem:[#allocation8 + $0x3a4] sm:$0xf]  ;;  %v2985_v31 = vor.u32 %v3886_v23, %v2982_v24 }
  0x45   :  { %v3110_v28 = vld [vmem:[#allocation8 + $0x3b0] sm:$0xf0]  ;;  %v3850_v29 = vld [vmem:[#allocation8 + $0x184] sm:$0xf]  ;;  %v2713_v32 = vor.u32 %v3818_v22, %v2710_v26 }
  0x46   :  { %1053 = vmatpush.bf16.msrb.mxu0 %v2645_v52  ;;  %1066 = vmatpush.bf16.msrb.mxu1 %v2773_v58  ;;  %v2838_v30 = vld [vmem:[#allocation8 + $0x190] sm:$0xf0]  ;;  %v3113_v33 = vor.u32 %v3918_v27, %v3110_v28  ;;  %v3814_v34 = vld [vmem:[#allocation8 + $0x64] sm:$0xf] }
  0x47   :  { %v3882_v35 = vld [vmem:[#allocation8 + $0x284] sm:$0xf]  ;;  %v2966_v36 = vld [vmem:[#allocation8 + $0x290] sm:$0xf0]  ;;  %v2841_v37 = vor.u32 %v3850_v29, %v2838_v30 }
  0x48   :  { %1079 = vmatpush.bf16.msrb.mxu2 %v2901_v5  ;;  %1092 = vmatpush.bf16.msrb.mxu3 %v3029_v6  ;;  %v2694_v38 = vld [vmem:[#allocation8 + $0x70] sm:$0xf0]  ;;  %v3914_v39 = vld [vmem:[#allocation8 + $0x384] sm:$0xf]  ;;  %v2969_v43 = vor.u32 %v3882_v35, %v2966_v36  ;;  %v3865_v36 = vld [vmem:[#allocation8 + $0x1f4] sm:$0xf0] }
  0x49   :  { %v3094_v40 = vld [vmem:[#allocation8 + $0x390] sm:$0xf0]  ;;  %v3846_v41 = vld [vmem:[#allocation8 + $0x164] sm:$0xf]  ;;  %v2697_v44 = vor.u32 %v3814_v34, %v2694_v38  ;;  %v2892_v34 = vld [vmem:[#allocation8 + $0x1e8] sm:$0xf] }
  0x4a   :  { %1098 = vmatpush.bf16.msra.mxu0 %v2761_v59  ;;  %1111 = vmatpush.bf16.msra.mxu1 %v2889_v63  ;;  %v2822_v42 = vld [vmem:[#allocation8 + $0x170] sm:$0xf0]  ;;  %v3097_v45 = vor.u32 %v3914_v39, %v3094_v40  ;;  %v3810_v47 = vld [vmem:[#allocation8 + $0x44] sm:$0xf] }
  0x4b   :  { %v2825_v46 = vor.u32 %v3846_v41, %v2822_v42  ;;  %v2678_v48 = vld [vmem:[#allocation8 + $0x50] sm:$0xf0]  ;;  %v3842_v49 = vld [vmem:[#allocation8 + $0x144] sm:$0xf] }
  0x4c   :  { %1124 = vmatpush.bf16.msra.mxu2 %v3017_v7  ;;  %1137 = vmatpush.bf16.msra.mxu3 %v3145_v9  ;;  %v2806_v50 = vld [vmem:[#allocation8 + $0x150] sm:$0xf0]  ;;  %v2681_v51 = vor.u32 %v3810_v47, %v2678_v48  ;;  %v3878_v53 = vld [vmem:[#allocation8 + $0x264] sm:$0xf] }
  0x4d   :  { %v2809_v52 = vor.u32 %v3842_v49, %v2806_v50  ;;  %v2950_v54 = vld [vmem:[#allocation8 + $0x270] sm:$0xf0]  ;;  %v3910_v55 = vld [vmem:[#allocation8 + $0x364] sm:$0xf]  ;;  %v2876_v49 = vld [vmem:[#allocation8 + $0x1c8] sm:$0xf] }
  0x4e   :  { %1099 = vmatpush.bf16.msra.mxu0 %v2745_v8  ;;  %1112 = vmatpush.bf16.msra.mxu1 %v2873_v13  ;;  %v2953_v56 = vor.u32 %v3878_v53, %v2950_v54  ;;  %v3078_v57 = vld [vmem:[#allocation8 + $0x370] sm:$0xf0]  ;;  %v3806_v59 = vld [vmem:[#allocation8 + $0x24] sm:$0xf]  ;;  %v3861_v50 = vld [vmem:[#allocation8 + $0x1d4] sm:$0xf0] }
  0x4f   :  { %v3081_v58 = vor.u32 %v3910_v55, %v3078_v57  ;;  %v2662_v60 = vld [vmem:[#allocation8 + $0x30] sm:$0xf0]  ;;  %v3838_v61 = vld [vmem:[#allocation8 + $0x124] sm:$0xf]  ;;  %v3020_v54 = vld [vmem:[#allocation8 + $0x2e8] sm:$0xf] }
  0x50   :  { %1125 = vmatpush.bf16.msra.mxu2 %v3001_v19  ;;  %1138 = vmatpush.bf16.msra.mxu3 %v3129_v21  ;;  %v2665_v62 = vor.u32 %v3806_v59, %v2662_v60  ;;  %v2790_v63 = vld [vmem:[#allocation8 + $0x130] sm:$0xf0]  ;;  %v3874_v1 = vld [vmem:[#allocation8 + $0x244] sm:$0xf]  ;;  %v3897_v55 = vld [vmem:[#allocation8 + $0x2f4] sm:$0xf0] }
  0x51   :  { %v2793_v0 = vor.u32 %v3838_v61, %v2790_v63  ;;  %v2934_v2 = vld [vmem:[#allocation8 + $0x250] sm:$0xf0]  ;;  %v3906_v3 = vld [vmem:[#allocation8 + $0x344] sm:$0xf]  ;;  %v3929_v60 = vld [vmem:[#allocation8 + $0x3f4] sm:$0xf0] }
  0x52   :  { %1100 = vmatpush.bf16.msra.mxu0 %v2729_v20  ;;  %1113 = vmatpush.bf16.msra.mxu1 %v2857_v25  ;;  %v2937_v4 = vor.u32 %v3874_v1, %v2934_v2  ;;  %v3062_v5 = vld [vmem:[#allocation8 + $0x350] sm:$0xf0]  ;;  %v3802_v7 = vld [vmem:[#allocation8 + $0x4] sm:$0xf]  ;;  %v146_v25 = vld [vmem:[#allocation7] sm:$0xf] }
  0x53   :  { %v3065_v6 = vor.u32 %v3906_v3, %v3062_v5  ;;  %v2646_v8 = vld [vmem:[#allocation8 + $0x10] sm:$0xf0]  ;;  %v3834_v9 = vld [vmem:[#allocation8 + $0x104] sm:$0xf]  ;;  %v148_v26 = vperm.slane %v146_v25, 0  ;;  %v149_v27 = vperm.slane %v146_v25, 1  ;;  %v3021_v5 = vor.u32 %v3897_v55, %v3020_v54 }
  0x54   :  { %1126 = vmatpush.bf16.msra.mxu2 %v2985_v31  ;;  %1139 = vmatpush.bf16.msra.mxu3 %v3113_v33  ;;  %v2649_v10 = vor.u32 %v3802_v7, %v2646_v8  ;;  %v2774_v11 = vld [vmem:[#allocation8 + $0x110] sm:$0xf0]  ;;  %v3870_v13 = vld [vmem:[#allocation8 + $0x224] sm:$0xf]  ;;  %v3833_v33 = vld [vmem:[#allocation8 + $0xf4] sm:$0xf0] }
  0x55   :  { %v2777_v12 = vor.u32 %v3834_v9, %v2774_v11  ;;  %v2918_v14 = vld [vmem:[#allocation8 + $0x230] sm:$0xf0]  ;;  %v3902_v15 = vld [vmem:[#allocation8 + $0x324] sm:$0xf]  ;;  %v150_v38 = vperm.slane %v146_v25, 2  ;;  %v151_v40 = vperm.slane %v146_v25, 3 }
  0x56   :  { %1101 = vmatpush.bf16.msra.mxu0 %v2713_v32  ;;  %1114 = vmatpush.bf16.msra.mxu1 %v2841_v37  ;;  %v2921_v16 = vor.u32 %v3870_v13, %v2918_v14  ;;  %v3046_v17 = vld [vmem:[#allocation8 + $0x330] sm:$0xf0]  ;;  %v3866_v19 = vld [vmem:[#allocation8 + $0x204] sm:$0xf]  ;;  %v2764_v32 = vld [vmem:[#allocation8 + $0xe8] sm:$0xf] }
  0x57   :  { %v3049_v18 = vor.u32 %v3902_v15, %v3046_v17  ;;  %v2902_v20 = vld [vmem:[#allocation8 + $0x210] sm:$0xf0]  ;;  %v3898_v22 = vld [vmem:[#allocation8 + $0x304] sm:$0xf]  ;;  %v2765_v41 = vor.u32 %v3833_v33, %v2764_v32  ;;  %v2732_v61 = vld [vmem:[#allocation8 + $0xa8] sm:$0xf] }
  0x58   :  { %1127 = vmatpush.bf16.msra.mxu2 %v2969_v43  ;;  %1140 = vmatpush.bf16.msra.mxu3 %v3097_v45  ;;  %v2905_v21 = vor.u32 %v3866_v19, %v2902_v20  ;;  %v3030_v23 = vld [vmem:[#allocation8 + $0x310] sm:$0xf0]  ;;  %v2748_v45 = vld [vmem:[#allocation8 + $0xc8] sm:$0xf]  ;;  %v3857_v3 = vld [vmem:[#allocation8 + $0x1b4] sm:$0xf0] }
  0x59   :  { %v3033_v24 = vor.u32 %v3898_v22, %v3030_v23  ;;  %v2860_v1 = vld [vmem:[#allocation8 + $0x1a8] sm:$0xf]  ;;  %v3893_v11 = vld [vmem:[#allocation8 + $0x2d4] sm:$0xf0] }
  0x5a   :  { %1102 = vmatpush.bf16.msra.mxu0 %v2697_v44  ;;  %1115 = vmatpush.bf16.msra.mxu1 %v2825_v46  ;;  %v2893_v44 = vor.u32 %v3865_v36, %v2892_v34  ;;  %v3829_v46 = vld [vmem:[#allocation8 + $0xd4] sm:$0xf0]  ;;  %v2861_v14 = vor.u32 %v3857_v3, %v2860_v1  ;;  %v2844_v19 = vld [vmem:[#allocation8 + $0x188] sm:$0xf] }
  0x5b   :  { %v2749_v59 = vor.u32 %v3829_v46, %v2748_v45  ;;  %v3925_v15 = vld [vmem:[#allocation8 + $0x3d4] sm:$0xf0]  ;;  %v2988_v25 = vld [vmem:[#allocation8 + $0x2a8] sm:$0xf] }
  0x5c   :  { %1128 = vmatpush.bf16.msra.mxu2 %v2953_v56  ;;  %1141 = vmatpush.bf16.msra.mxu3 %v3081_v58  ;;  %v3148_v56 = vld [vmem:[#allocation8 + $0x3e8] sm:$0xf]  ;;  %v3821_v17 = vld [vmem:[#allocation8 + $0x94] sm:$0xf0] }
  0x5d   :  { %v3149_v8 = vor.u32 %v3929_v60, %v3148_v56  ;;  %v3853_v20 = vld [vmem:[#allocation8 + $0x194] sm:$0xf0]  ;;  %v2828_v32 = vld [vmem:[#allocation8 + $0x168] sm:$0xf] }
  0x5e   :  { %1103 = vmatpush.bf16.msra.mxu0 %v2681_v51  ;;  %1116 = vmatpush.bf16.msra.mxu1 %v2809_v52  ;;  %v3849_v33 = vld [vmem:[#allocation8 + $0x174] sm:$0xf0]  ;;  %v2972_v36 = vld [vmem:[#allocation8 + $0x288] sm:$0xf] }
  0x5f   :  { %v2812_v45 = vld [vmem:[#allocation8 + $0x148] sm:$0xf]  ;;  %v3845_v46 = vld [vmem:[#allocation8 + $0x154] sm:$0xf0] }
  0x60   :  { %1129 = vmatpush.bf16.msra.mxu2 %v2937_v4  ;;  %1142 = vmatpush.bf16.msra.mxu3 %v3065_v6  ;;  %v3084_v54 = vld [vmem:[#allocation8 + $0x368] sm:$0xf]  ;;  %v3913_v55 = vld [vmem:[#allocation8 + $0x374] sm:$0xf0] }
  0x61   :  { %v2668_v56 = vld [vmem:[#allocation8 + $0x28] sm:$0xf]  ;;  %v3909_v3 = vld [vmem:[#allocation8 + $0x354] sm:$0xf0] }
  0x62   :  { %1104 = vmatpush.bf16.msra.mxu0 %v2665_v62  ;;  %1117 = vmatpush.bf16.msra.mxu1 %v2793_v0  ;;  %v3825_v62 = vld [vmem:[#allocation8 + $0xb4] sm:$0xf0]  ;;  %v2877_v0 = vor.u32 %v3861_v50, %v2876_v49  ;;  %v2956_v50 = vld [vmem:[#allocation8 + $0x268] sm:$0xf] }
  0x63   :  { %v2733_v9 = vor.u32 %v3825_v62, %v2732_v61  ;;  %v3085_v61 = vor.u32 %v3913_v55, %v3084_v54  ;;  %v2940_v62 = vld [vmem:[#allocation8 + $0x248] sm:$0xf]  ;;  %v3923_v54 = vld [vmem:[#allocation8 + $0x3cc] sm:$0xf]  ;;  %v3134_v55 = vld [vmem:[#allocation8 + $0x3d8] sm:$0xf0] }
  0x64   :  { %1130 = vmatpush.bf16.msra.mxu2 %v2921_v16  ;;  %1143 = vmatpush.bf16.msra.mxu3 %v3049_v18  ;;  %v2716_v16 = vld [vmem:[#allocation8 + $0x88] sm:$0xf] }
  0x66   :  { %1105 = vmatpush.bf16.msra.mxu0 %v2649_v10  ;;  %1118 = vmatpush.bf16.msra.mxu1 %v2777_v12  ;;  %v3004_v10 = vld [vmem:[#allocation8 + $0x2c8] sm:$0xf] }
  0x67   :  { %v3132_v12 = vld [vmem:[#allocation8 + $0x3c8] sm:$0xf]  ;;  %v3005_v22 = vor.u32 %v3893_v11, %v3004_v10  ;;  %v2766_v11 = vld [vmem:[#allocation8 + $0xf8] sm:$0xf0] }
  0x68   :  { %1131 = vmatpush.bf16.msra.mxu2 %v2905_v21  ;;  %1144 = vmatpush.bf16.msra.mxu3 %v3033_v24  ;;  %v3133_v23 = vor.u32 %v3925_v15, %v3132_v12  ;;  %v2717_v24 = vor.u32 %v3821_v17, %v2716_v16  ;;  %v3863_v12 = vld [vmem:[#allocation8 + $0x1ec] sm:$0xf]  ;;  %v2924_v16 = vld [vmem:[#allocation8 + $0x228] sm:$0xf]  ;;  %v3873_v17 = vld [vmem:[#allocation8 + $0x234] sm:$0xf0] }
  0xa6   :  { %v209_v28 = vpop.f32.mrf.mxu0  ;;  %v222_v30 = vpop.f32.mrf.mxu1 }
  0xa7   :  { %v210_v29 = vadd.f32 %v209_v28, %v148_v26  ;;  %v223_v31 = vadd.f32 %v222_v30, %v149_v27  ;;  %v3889_v26 = vld [vmem:[#allocation8 + $0x2b4] sm:$0xf0]  ;;  %v2845_v27 = vor.u32 %v3853_v20, %v2844_v19  ;;  %v3116_v28 = vld [vmem:[#allocation8 + $0x3a8] sm:$0xf] }
  0xa8   :  { %v2700_v30 = vld [vmem:[#allocation8 + $0x68] sm:$0xf]  ;;  %v2989_v34 = vor.u32 %v3889_v26, %v2988_v25  ;;  %v2925_v25 = vor.u32 %v3873_v17, %v2924_v16  ;;  %v2750_v26 = vld [vmem:[#allocation8 + $0xd8] sm:$0xf0]  ;;  %v3915_v16 = vld [vmem:[#allocation8 + $0x38c] sm:$0xf] }
  0xa9   :  { %vm252_vm1 = vcmp.gt.f32.partialorder %v210_v29, 0.0  ;;  %v256_v35 = vmul.f32 0.01, %v210_v29  ;;  %vm253_vm2 = vcmp.gt.f32.partialorder %v223_v31, 0.0  ;;  %v257_v37 = vmul.f32 0.01, %v223_v31 }
  0xaa   :  { %v3052_v20 = vld [vmem:[#allocation8 + $0x328] sm:$0xf]  ;;  %v3102_v17 = vld [vmem:[#allocation8 + $0x398] sm:$0xf0] }
  0xab   :  { %v260_v39 = vsel %vm252_vm1, %v210_v29, %v256_v35  ;;  %v261_v43 = vsel %vm253_vm2, %v223_v31, %v257_v37  ;;  %v3921_v29 = vld [vmem:[#allocation8 + $0x3b4] sm:$0xf0] }
  0xac   :  { %v4394_v42 = vpack.c.bf16 %v260_v39, %v260_v39  ;;  %v4396_v47 = vpack.c.bf16 %v261_v43, %v261_v43  ;;  %v3817_v31 = vld [vmem:[#allocation8 + $0x74] sm:$0xf0]  ;;  %v3117_v35 = vor.u32 %v3921_v29, %v3116_v28  ;;  %v2829_v39 = vor.u32 %v3849_v33, %v2828_v32  ;;  %v2684_v43 = vld [vmem:[#allocation8 + $0x48] sm:$0xf]  ;;  %v2878_v28 = vld [vmem:[#allocation8 + $0x1d8] sm:$0xf0] }
  0xad   :  { %v3885_v37 = vld [vmem:[#allocation8 + $0x294] sm:$0xf0]  ;;  %v3036_v32 = vld [vmem:[#allocation8 + $0x308] sm:$0xf] }
  0xae   :  { %v235_v48 = vpop.f32.mrf.mxu2  ;;  %v248_v52 = vpop.f32.mrf.mxu3  ;;  %1054 = vmatmul.bf16.vlgmr.msrb.gmra.mxu0 %v4394_v42  ;;  %1067 = vmatmul.bf16.vlgmr.msrb.gmra.mxu1 %v4396_v47  ;;  %v3901_v33 = vld [vmem:[#allocation8 + $0x314] sm:$0xf0] }
  0xaf   :  { %v236_v51 = vadd.f32 %v235_v48, %v150_v38  ;;  %v211_v53 = vpop.f32.mrf.mxu0  ;;  %v249_v57 = vadd.f32 %v248_v52, %v151_v40  ;;  %1150 = vmatpush.bf16.msrb.mxu0 %v2765_v41  ;;  %v224_v58 = vpop.f32.mrf.mxu1  ;;  %1163 = vmatpush.bf16.msrb.mxu1 %v2893_v44  ;;  %v2701_v38 = vor.u32 %v3817_v31, %v2700_v30  ;;  %v3100_v40 = vld [vmem:[#allocation8 + $0x388] sm:$0xf]  ;;  %v3917_v41 = vld [vmem:[#allocation8 + $0x394] sm:$0xf0] }
  0xb0   :  { %v3813_v44 = vld [vmem:[#allocation8 + $0x54] sm:$0xf0]  ;;  %v2973_v48 = vor.u32 %v3885_v37, %v2972_v36  ;;  %v3101_v49 = vor.u32 %v3917_v41, %v3100_v40  ;;  %v2813_v53 = vor.u32 %v3845_v46, %v2812_v45  ;;  %v2796_v58 = vld [vmem:[#allocation8 + $0x128] sm:$0xf]  ;;  %v3823_v40 = vld [vmem:[#allocation8 + $0xac] sm:$0xf]  ;;  %v3037_v46 = vor.u32 %v3901_v33, %v3036_v32 }
  0xb1   :  { %vm254_vm3 = vcmp.gt.f32.partialorder %v236_v51, 0.0  ;;  %v258_v63 = vmul.f32 0.01, %v236_v51  ;;  %vm255_vm4 = vcmp.gt.f32.partialorder %v249_v57, 0.0  ;;  %v259_v2 = vmul.f32 0.01, %v249_v57 }
  0xb2   :  { %v2685_v52 = vor.u32 %v3813_v44, %v2684_v43  ;;  %v2908_v30 = vld [vmem:[#allocation8 + $0x208] sm:$0xf]  ;;  %v3869_v31 = vld [vmem:[#allocation8 + $0x214] sm:$0xf0]  ;;  %v2734_v43 = vld [vmem:[#allocation8 + $0xb8] sm:$0xf0] }
  0xb3   :  { %v262_v4 = vsel %vm254_vm3, %v236_v51, %v258_v63  ;;  %v263_v7 = vsel %vm255_vm4, %v249_v57, %v259_v2  ;;  %1151 = vmatpush.bf16.msrb.mxu0 %v2749_v59  ;;  %1164 = vmatpush.bf16.msrb.mxu1 %v2877_v0  ;;  %v3881_v51 = vld [vmem:[#allocation8 + $0x274] sm:$0xf0]  ;;  %v3068_v0 = vld [vmem:[#allocation8 + $0x348] sm:$0xf]  ;;  %v2909_v41 = vor.u32 %v3869_v31, %v2908_v30  ;;  %v3855_v44 = vld [vmem:[#allocation8 + $0x1ac] sm:$0xf] }
  0xb4   :  { %v4400_v6 = vpack.c.bf16 %v262_v4, %v262_v4  ;;  %v4402_v13 = vpack.c.bf16 %v263_v7, %v263_v7  ;;  %v3809_v57 = vld [vmem:[#allocation8 + $0x34] sm:$0xf0]  ;;  %v2957_v60 = vor.u32 %v3881_v51, %v2956_v50  ;;  %v2652_v4 = vld [vmem:[#allocation8 + $0x8] sm:$0xf]  ;;  %v3069_v15 = vor.u32 %v3909_v3, %v3068_v0  ;;  %v2862_v45 = vld [vmem:[#allocation8 + $0x1b8] sm:$0xf0] }
  0xb5   :  { %v3841_v59 = vld [vmem:[#allocation8 + $0x134] sm:$0xf0]  ;;  %v2669_v1 = vor.u32 %v3809_v57, %v2668_v56  ;;  %v2780_v7 = vld [vmem:[#allocation8 + $0x108] sm:$0xf]  ;;  %v3891_v50 = vld [vmem:[#allocation8 + $0x2cc] sm:$0xf] }
  0xb6   :  { %v237_v18 = vpop.f32.mrf.mxu2  ;;  %1080 = vmatmul.bf16.vlgmr.msrb.gmra.mxu2 %v4400_v6  ;;  %v250_v21 = vpop.f32.mrf.mxu3  ;;  %1093 = vmatmul.bf16.vlgmr.msrb.gmra.mxu3 %v4402_v13  ;;  %v3877_v63 = vld [vmem:[#allocation8 + $0x254] sm:$0xf0]  ;;  %v2797_v2 = vor.u32 %v3841_v59, %v2796_v58  ;;  %v3006_v51 = vld [vmem:[#allocation8 + $0x2d8] sm:$0xf0]  ;;  %v3819_v56 = vld [vmem:[#allocation8 + $0x8c] sm:$0xf] }
  0xb7   :  { %1176 = vmatpush.bf16.msrb.mxu2 %v3021_v5  ;;  %1189 = vmatpush.bf16.msrb.mxu3 %v3149_v8  ;;  %v3805_v5 = vld [vmem:[#allocation8 + $0x14] sm:$0xf0]  ;;  %v2941_v10 = vor.u32 %v3877_v63, %v2940_v62  ;;  %v2718_v57 = vld [vmem:[#allocation8 + $0x98] sm:$0xf0]  ;;  %v3851_v58 = vld [vmem:[#allocation8 + $0x18c] sm:$0xf] }
  0xb8   :  { %1152 = vmatpush.bf16.msrb.mxu0 %v2733_v9  ;;  %1165 = vmatpush.bf16.msrb.mxu1 %v2861_v14  ;;  %v3837_v8 = vld [vmem:[#allocation8 + $0x114] sm:$0xf0]  ;;  %v3831_v9 = vld [vmem:[#allocation8 + $0xec] sm:$0xf]  ;;  %v2894_v14 = vld [vmem:[#allocation8 + $0x1f8] sm:$0xf0]  ;;  %v2653_v18 = vor.u32 %v3805_v5, %v2652_v4  ;;  %v2721_v0 = vor.u32 %v3819_v56, %v2718_v57 }
  0xb9   :  { %v2781_v19 = vor.u32 %v3837_v8, %v2780_v7  ;;  %v3905_v21 = vld [vmem:[#allocation8 + $0x334] sm:$0xf0]  ;;  %v2846_v59 = vld [vmem:[#allocation8 + $0x198] sm:$0xf0]  ;;  %v3887_v62 = vld [vmem:[#allocation8 + $0x2ac] sm:$0xf] }
  0xba   :  { %v3053_v29 = vor.u32 %v3905_v21, %v3052_v20  ;;  %v2990_v63 = vld [vmem:[#allocation8 + $0x2b8] sm:$0xf0]  ;;  %v3815_v4 = vld [vmem:[#allocation8 + $0x6c] sm:$0xf] }
  0xbb   :  { %1177 = vmatpush.bf16.msrb.mxu2 %v3005_v22  ;;  %1190 = vmatpush.bf16.msrb.mxu3 %v3133_v23  ;;  %v2769_v22 = vor.u32 %v3831_v9, %v2766_v11  ;;  %v2897_v23 = vor.u32 %v3863_v12, %v2894_v14  ;;  %v3118_v3 = vld [vmem:[#allocation8 + $0x3b8] sm:$0xf0]  ;;  %v3847_v7 = vld [vmem:[#allocation8 + $0x16c] sm:$0xf]  ;;  %v2993_v9 = vor.u32 %v3887_v62, %v2990_v63 }
  0xbc   :  { %1153 = vmatpush.bf16.msrb.mxu0 %v2717_v24  ;;  %1166 = vmatpush.bf16.msrb.mxu1 %v2845_v27  ;;  %v3827_v24 = vld [vmem:[#allocation8 + $0xcc] sm:$0xf]  ;;  %v2702_v5 = vld [vmem:[#allocation8 + $0x78] sm:$0xf0] }
  0xbd   :  { %v3859_v27 = vld [vmem:[#allocation8 + $0x1cc] sm:$0xf]  ;;  %v2753_v36 = vor.u32 %v3827_v24, %v2750_v26  ;;  %v2830_v8 = vld [vmem:[#allocation8 + $0x178] sm:$0xf0]  ;;  %v2705_v14 = vor.u32 %v3815_v4, %v2702_v5 }
  0xbe   :  { %1106 = vmatmul.bf16.vlgmr.msra.gmra.mxu0 %v4394_v42  ;;  %1119 = vmatmul.bf16.vlgmr.msra.gmra.mxu1 %v4396_v47  ;;  %v2881_v37 = vor.u32 %v3859_v27, %v2878_v28  ;;  %v3883_v11 = vld [vmem:[#allocation8 + $0x28c] sm:$0xf]  ;;  %v2974_v12 = vld [vmem:[#allocation8 + $0x298] sm:$0xf0] }
  0xbf   :  { %1178 = vmatpush.bf16.msrb.mxu2 %v2989_v34  ;;  %1191 = vmatpush.bf16.msrb.mxu3 %v3117_v35  ;;  %v3895_v34 = vld [vmem:[#allocation8 + $0x2ec] sm:$0xf]  ;;  %v3022_v35 = vld [vmem:[#allocation8 + $0x2f8] sm:$0xf0] }
  0xc0   :  { %1154 = vmatpush.bf16.msrb.mxu0 %v2701_v38  ;;  %1167 = vmatpush.bf16.msrb.mxu1 %v2829_v39  ;;  %v3927_v38 = vld [vmem:[#allocation8 + $0x3ec] sm:$0xf]  ;;  %v3150_v39 = vld [vmem:[#allocation8 + $0x3f8] sm:$0xf0] }
  0xc1   :  { %v3843_v20 = vld [vmem:[#allocation8 + $0x14c] sm:$0xf]  ;;  %v2814_v21 = vld [vmem:[#allocation8 + $0x158] sm:$0xf0] }
  0xc2   :  { %v3879_v24 = vld [vmem:[#allocation8 + $0x26c] sm:$0xf]  ;;  %v2817_v27 = vor.u32 %v3843_v20, %v2814_v21  ;;  %v2670_v31 = vld [vmem:[#allocation8 + $0x38] sm:$0xf0] }
  0xc3   :  { %1179 = vmatpush.bf16.msrb.mxu2 %v2973_v48  ;;  %1192 = vmatpush.bf16.msrb.mxu3 %v3101_v49  ;;  %v3025_v48 = vor.u32 %v3895_v34, %v3022_v35  ;;  %v3153_v49 = vor.u32 %v3927_v38, %v3150_v39  ;;  %v3911_v28 = vld [vmem:[#allocation8 + $0x36c] sm:$0xf]  ;;  %v2798_v33 = vld [vmem:[#allocation8 + $0x138] sm:$0xf0] }
  0xc4   :  { %1155 = vmatpush.bf16.msrb.mxu0 %v2685_v52  ;;  %1168 = vmatpush.bf16.msrb.mxu1 %v2813_v53  ;;  %v2737_v52 = vor.u32 %v3823_v40, %v2734_v43  ;;  %v2865_v53 = vor.u32 %v3855_v44, %v2862_v45  ;;  %v3807_v30 = vld [vmem:[#allocation8 + $0x2c] sm:$0xf]  ;;  %v2654_v44 = vld [vmem:[#allocation8 + $0x18] sm:$0xf0] }
  0xc5   :  { %v3839_v32 = vld [vmem:[#allocation8 + $0x12c] sm:$0xf]  ;;  %v2673_v39 = vor.u32 %v3807_v30, %v2670_v31  ;;  %v2910_v5 = vld [vmem:[#allocation8 + $0x218] sm:$0xf0]  ;;  %v3976_v30 = vld [vmem:[#allocation11 + $0x16c] sm:$0xf0] }
  0xc6   :  { %1132 = vmatmul.bf16.vlgmr.msra.gmra.mxu2 %v4400_v6  ;;  %1145 = vmatmul.bf16.vlgmr.msra.gmra.mxu3 %v4402_v13  ;;  %v3907_v38 = vld [vmem:[#allocation8 + $0x34c] sm:$0xf]  ;;  %v2801_v40 = vor.u32 %v3839_v32, %v2798_v33  ;;  %v3188_v32 = vld [vmem:[#allocation11 + $0x40] sm:$0xf]  ;;  %v3940_v33 = vld [vmem:[#allocation11 + $0x4c] sm:$0xf0] }
  0xc7   :  { %1180 = vmatpush.bf16.msrb.mxu2 %v2957_v60  ;;  %1193 = vmatpush.bf16.msrb.mxu3 %v3085_v61  ;;  %v3009_v60 = vor.u32 %v3891_v50, %v3006_v51  ;;  %v3137_v61 = vor.u32 %v3923_v54, %v3134_v55  ;;  %v3803_v43 = vld [vmem:[#allocation8 + $0xc] sm:$0xf]  ;;  %v3960_v50 = vld [vmem:[#allocation11 + $0xec] sm:$0xf0]  ;;  %v3396_v51 = vld [vmem:[#allocation11 + $0x1e0] sm:$0xf] }
  0xc8   :  { %1156 = vmatpush.bf16.msrb.mxu0 %v2669_v1  ;;  %1169 = vmatpush.bf16.msrb.mxu1 %v2797_v2  ;;  %v2849_v1 = vor.u32 %v3851_v58, %v2846_v59  ;;  %v3919_v2 = vld [vmem:[#allocation8 + $0x3ac] sm:$0xf]  ;;  %v2926_v55 = vld [vmem:[#allocation8 + $0x238] sm:$0xf0]  ;;  %v2657_v56 = vor.u32 %v3803_v43, %v2654_v44  ;;  %v3954_v44 = vld [vmem:[#allocation11 + $0xc4] sm:$0xf] }
  0xc9   :  { %v3835_v45 = vld [vmem:[#allocation8 + $0x10c] sm:$0xf]  ;;  %v3054_v59 = vld [vmem:[#allocation8 + $0x338] sm:$0xf0] }
  0xca   :  { %v3871_v54 = vld [vmem:[#allocation8 + $0x22c] sm:$0xf] }
  0xcb   :  { %1181 = vmatpush.bf16.msrb.mxu2 %v2941_v10  ;;  %1194 = vmatpush.bf16.msrb.mxu3 %v3069_v15  ;;  %v3121_v10 = vor.u32 %v3919_v2, %v3118_v3  ;;  %v2833_v15 = vor.u32 %v3847_v7, %v2830_v8  ;;  %v3903_v58 = vld [vmem:[#allocation8 + $0x32c] sm:$0xf]  ;;  %v2929_v63 = vor.u32 %v3871_v54, %v2926_v55  ;;  %v3988_v2 = vld [vmem:[#allocation11 + $0x1cc] sm:$0xf0]  ;;  %v3038_v8 = vld [vmem:[#allocation8 + $0x318] sm:$0xf0] }
  0xcc   :  { %1157 = vmatpush.bf16.msrb.mxu0 %v2653_v18  ;;  %1170 = vmatpush.bf16.msrb.mxu1 %v2781_v19  ;;  %v3811_v18 = vld [vmem:[#allocation8 + $0x4c] sm:$0xf]  ;;  %v2686_v19 = vld [vmem:[#allocation8 + $0x58] sm:$0xf0]  ;;  %v3057_v3 = vor.u32 %v3903_v58, %v3054_v59  ;;  %v3238_v54 = vld [vmem:[#allocation11 + $0xb0] sm:$0xf0] }
  0xcd   :  { %v2689_v26 = vor.u32 %v3811_v18, %v2686_v19  ;;  %v3867_v4 = vld [vmem:[#allocation8 + $0x20c] sm:$0xf]  ;;  %v3364_v18 = vld [vmem:[#allocation11 + $0x1a0] sm:$0xf]  ;;  %v3984_v19 = vld [vmem:[#allocation11 + $0x1ac] sm:$0xf0] }
  0xce   :  { %v3899_v7 = vld [vmem:[#allocation8 + $0x30c] sm:$0xf]  ;;  %v3968_v58 = vld [vmem:[#allocation11 + $0x12c] sm:$0xf0]  ;;  %v3492_v59 = vld [vmem:[#allocation11 + $0x2a0] sm:$0xf] }
  0xcf   :  { %1182 = vmatpush.bf16.msrb.mxu2 %v2925_v25  ;;  %1195 = vmatpush.bf16.msrb.mxu3 %v3053_v29  ;;  %v2958_v25 = vld [vmem:[#allocation8 + $0x278] sm:$0xf0] }
  0xd0   :  { %1202 = vmatpush.bf16.msra.mxu0 %v2769_v22  ;;  %1215 = vmatpush.bf16.msra.mxu1 %v2897_v23  ;;  %v2977_v22 = vor.u32 %v3883_v11, %v2974_v12  ;;  %v3105_v23 = vor.u32 %v3915_v16, %v3102_v17  ;;  %v3086_v29 = vld [vmem:[#allocation8 + $0x378] sm:$0xf0]  ;;  %v2961_v34 = vor.u32 %v3879_v24, %v2958_v25  ;;  %v3952_v16 = vld [vmem:[#allocation11 + $0xac] sm:$0xf0]  ;;  %v3348_v25 = vld [vmem:[#allocation11 + $0x180] sm:$0xf] }
  0xd1   :  { %1158 = vmatmul.bf16.vlgmr.msrb.gmra.mxu0 %v4394_v42  ;;  %1171 = vmatmul.bf16.vlgmr.msrb.gmra.mxu1 %v4396_v47  ;;  %v3089_v35 = vor.u32 %v3911_v28, %v3086_v29  ;;  %v3041_v17 = vor.u32 %v3899_v7, %v3038_v8  ;;  %v3365_v24 = vor.u32 %v3984_v19, %v3364_v18  ;;  %v3944_v28 = vld [vmem:[#allocation11 + $0x6c] sm:$0xf0]  ;;  %v3332_v29 = vld [vmem:[#allocation11 + $0x160] sm:$0xf]  ;;  %v3942_v8 = vld [vmem:[#allocation11 + $0x64] sm:$0xf] }
  0xd2   :  { %v4012_v7 = vld [vmem:[#allocation11 + $0x28c] sm:$0xf0]  ;;  %v3938_v19 = vld [vmem:[#allocation11 + $0x44] sm:$0xf] }
  0xd3   :  { %1183 = vmatpush.bf16.msrb.mxu2 %v2909_v41  ;;  %1196 = vmatpush.bf16.msrb.mxu3 %v3037_v46  ;;  %v3070_v41 = vld [vmem:[#allocation8 + $0x358] sm:$0xf0] }
  0xd4   :  { %1203 = vmatpush.bf16.msra.mxu0 %v2753_v36  ;;  %1216 = vmatpush.bf16.msra.mxu1 %v2881_v37  ;;  %v3875_v36 = vld [vmem:[#allocation8 + $0x24c] sm:$0xf]  ;;  %v2942_v37 = vld [vmem:[#allocation8 + $0x258] sm:$0xf0] }
  0xd5   :  { %v2782_v46 = vld [vmem:[#allocation8 + $0x118] sm:$0xf0] }
  0xd6   :  { %1184 = vmatmul.bf16.vlgmr.msrb.gmra.mxu2 %v4400_v6  ;;  %1197 = vmatmul.bf16.vlgmr.msrb.gmra.mxu3 %v4402_v13  ;;  %v2785_v57 = vor.u32 %v3835_v45, %v2782_v46  ;;  %v3254_v45 = vld [vmem:[#allocation11 + $0xd0] sm:$0xf0] }
  0xd7   :  { %1228 = vmatpush.bf16.msra.mxu2 %v3025_v48  ;;  %1241 = vmatpush.bf16.msra.mxu3 %v3153_v49  ;;  %v3268_v48 = vld [vmem:[#allocation11 + $0xe0] sm:$0xf]  ;;  %v2945_v49 = vor.u32 %v3875_v36, %v2942_v37  ;;  %v3257_v46 = vor.u32 %v3954_v44, %v3254_v45  ;;  %v4056_v44 = vld [vmem:[#allocation11 + $0x3ec] sm:$0xf0]  ;;  %v3974_v45 = vld [vmem:[#allocation11 + $0x164] sm:$0xf] }
  0xd8   :  { %1204 = vmatpush.bf16.msra.mxu0 %v2737_v52  ;;  %1217 = vmatpush.bf16.msra.mxu1 %v2865_v53  ;;  %v3992_v52 = vld [vmem:[#allocation11 + $0x1ec] sm:$0xf0]  ;;  %v3073_v53 = vor.u32 %v3907_v38, %v3070_v41  ;;  %v3172_v36 = vld [vmem:[#allocation11 + $0x20] sm:$0xf] }
  0xd9   :  { %v3397_v62 = vor.u32 %v3992_v52, %v3396_v51  ;;  %v3932_v38 = vld [vmem:[#allocation11 + $0xc] sm:$0xf0] }
  0xda   :  { %v4020_v52 = vld [vmem:[#allocation11 + $0x2cc] sm:$0xf0] }
  0xdb   :  { %1229 = vmatpush.bf16.msra.mxu2 %v3009_v60  ;;  %1242 = vmatpush.bf16.msra.mxu3 %v3137_v61  ;;  %v3269_v60 = vor.u32 %v3960_v50, %v3268_v48  ;;  %v3252_v61 = vld [vmem:[#allocation11 + $0xc0] sm:$0xf] }
  0xdc   :  { %1205 = vmatpush.bf16.msra.mxu0 %v2721_v0  ;;  %1218 = vmatpush.bf16.msra.mxu1 %v2849_v1  ;;  %v3956_v0 = vld [vmem:[#allocation11 + $0xcc] sm:$0xf0]  ;;  %v3380_v1 = vld [vmem:[#allocation11 + $0x1c0] sm:$0xf] }
  0xdd   :  { %v3253_v11 = vor.u32 %v3956_v0, %v3252_v61  ;;  %v3381_v12 = vor.u32 %v3988_v2, %v3380_v1  ;;  %v3316_v48 = vld [vmem:[#allocation11 + $0x140] sm:$0xf]  ;;  %v4016_v61 = vld [vmem:[#allocation11 + $0x2ac] sm:$0xf0] }
  0xde   :  { %v3508_v50 = vld [vmem:[#allocation11 + $0x2c0] sm:$0xf]  ;;  %v3493_v0 = vor.u32 %v4016_v61, %v3492_v59 }
  0xdf   :  { %1230 = vmatpush.bf16.msra.mxu2 %v2993_v9  ;;  %1243 = vmatpush.bf16.msra.mxu3 %v3121_v10  ;;  %v3524_v9 = vld [vmem:[#allocation11 + $0x2e0] sm:$0xf]  ;;  %v4024_v10 = vld [vmem:[#allocation11 + $0x2ec] sm:$0xf0]  ;;  %v3509_v55 = vor.u32 %v4020_v52, %v3508_v50  ;;  %v4022_v50 = vld [vmem:[#allocation11 + $0x2e4] sm:$0xf] }
  0xe0   :  { %1206 = vmatpush.bf16.msra.mxu0 %v2705_v14  ;;  %1219 = vmatpush.bf16.msra.mxu1 %v2833_v15  ;;  %v2913_v14 = vor.u32 %v3867_v4, %v2910_v5  ;;  %v3236_v15 = vld [vmem:[#allocation11 + $0xa0] sm:$0xf]  ;;  %v3525_v20 = vor.u32 %v4024_v10, %v3524_v9  ;;  %v3206_v9 = vld [vmem:[#allocation11 + $0x70] sm:$0xf0] }
  0xe1   :  { %v3237_v21 = vor.u32 %v3952_v16, %v3236_v15  ;;  %v3284_v2 = vld [vmem:[#allocation11 + $0x100] sm:$0xf] }
  0xe2   :  { %v3476_v4 = vld [vmem:[#allocation11 + $0x280] sm:$0xf] }
  0xe3   :  { %1231 = vmatpush.bf16.msra.mxu2 %v2977_v22  ;;  %1244 = vmatpush.bf16.msra.mxu3 %v3105_v23  ;;  %v3220_v22 = vld [vmem:[#allocation11 + $0x80] sm:$0xf]  ;;  %v3948_v23 = vld [vmem:[#allocation11 + $0x8c] sm:$0xf0]  ;;  %v3477_v10 = vor.u32 %v4012_v7, %v3476_v4  ;;  %v3966_v4 = vld [vmem:[#allocation11 + $0x124] sm:$0xf] }
  0xe4   :  { %1207 = vmatpush.bf16.msra.mxu0 %v2689_v26  ;;  %1220 = vmatpush.bf16.msra.mxu1 %v2817_v27  ;;  %v3980_v26 = vld [vmem:[#allocation11 + $0x18c] sm:$0xf0]  ;;  %v3204_v27 = vld [vmem:[#allocation11 + $0x60] sm:$0xf]  ;;  %v4014_v7 = vld [vmem:[#allocation11 + $0x2a4] sm:$0xf] }
  0xe5   :  { %v3205_v31 = vor.u32 %v3944_v28, %v3204_v27  ;;  %v3460_v16 = vld [vmem:[#allocation11 + $0x260] sm:$0xf]  ;;  %v3934_v27 = vld [vmem:[#allocation11 + $0x24] sm:$0xf]  ;;  %v3174_v28 = vld [vmem:[#allocation11 + $0x30] sm:$0xf0] }
  0xe7   :  { %1232 = vmatpush.bf16.msra.mxu2 %v2961_v34  ;;  %1245 = vmatpush.bf16.msra.mxu3 %v3089_v35  ;;  %v3333_v34 = vor.u32 %v3976_v30, %v3332_v29  ;;  %v3189_v35 = vor.u32 %v3940_v33, %v3188_v32  ;;  %v3177_v29 = vor.u32 %v3934_v27, %v3174_v28  ;;  %v3366_v30 = vld [vmem:[#allocation11 + $0x1b0] sm:$0xf0]  ;;  %v3428_v32 = vld [vmem:[#allocation11 + $0x220] sm:$0xf]  ;;  %v4000_v33 = vld [vmem:[#allocation11 + $0x22c] sm:$0xf0] }
  0xe8   :  { %1208 = vmatpush.bf16.msra.mxu0 %v2673_v39  ;;  %1221 = vmatpush.bf16.msra.mxu1 %v2801_v40  ;;  %v3958_v39 = vld [vmem:[#allocation11 + $0xe4] sm:$0xf]  ;;  %v3270_v40 = vld [vmem:[#allocation11 + $0xf0] sm:$0xf0] }
  0xe9   :  { %v3273_v43 = vor.u32 %v3958_v39, %v3270_v40  ;;  %v3412_v39 = vld [vmem:[#allocation11 + $0x200] sm:$0xf]  ;;  %v3996_v40 = vld [vmem:[#allocation11 + $0x20c] sm:$0xf0]  ;;  %v4006_v27 = vld [vmem:[#allocation11 + $0x264] sm:$0xf] }
  0xea   :  { %v3462_v28 = vld [vmem:[#allocation11 + $0x270] sm:$0xf0] }
  0xeb   :  { %1233 = vmatpush.bf16.msra.mxu2 %v2945_v49  ;;  %1246 = vmatpush.bf16.msra.mxu3 %v3073_v53  ;;  %v3972_v49 = vld [vmem:[#allocation11 + $0x14c] sm:$0xf0]  ;;  %v3950_v53 = vld [vmem:[#allocation11 + $0xa4] sm:$0xf] }
  0xec   :  { %1209 = vmatpush.bf16.msra.mxu0 %v2657_v56  ;;  %1222 = vmatpush.bf16.msra.mxu1 %v2785_v57  ;;  %v3317_v51 = vor.u32 %v3972_v49, %v3316_v48  ;;  %v3241_v56 = vor.u32 %v3950_v53, %v3238_v54  ;;  %v3300_v57 = vld [vmem:[#allocation11 + $0x120] sm:$0xf]  ;;  %v4052_v54 = vld [vmem:[#allocation11 + $0x3cc] sm:$0xf0] }
  0xed   :  { %v3636_v53 = vld [vmem:[#allocation11 + $0x3c0] sm:$0xf] }
  0xef   :  { %1234 = vmatpush.bf16.msra.mxu2 %v2929_v63  ;;  %1247 = vmatpush.bf16.msra.mxu3 %v3057_v3  ;;  %v3222_v63 = vld [vmem:[#allocation11 + $0x90] sm:$0xf0]  ;;  %v3964_v3 = vld [vmem:[#allocation11 + $0x10c] sm:$0xf0] }
  0xf0   :  { %2048 = vmatpush.bf16.msrb.mxu0 %v3269_v60  ;;  %2061 = vmatpush.bf16.msrb.mxu1 %v3397_v62  ;;  %v3301_v60 = vor.u32 %v3968_v58, %v3300_v57  ;;  %v3946_v62 = vld [vmem:[#allocation11 + $0x84] sm:$0xf]  ;;  %v3285_v5 = vor.u32 %v3964_v3, %v3284_v2  ;;  %v3318_v57 = vld [vmem:[#allocation11 + $0x150] sm:$0xf0] }
  0xf1   :  { %1210 = vmatmul.bf16.vlgmr.msra.gmra.mxu0 %v4394_v42  ;;  %1223 = vmatmul.bf16.vlgmr.msra.gmra.mxu1 %v4396_v47  ;;  %v3221_v42 = vor.u32 %v3948_v23, %v3220_v22  ;;  %v3349_v47 = vor.u32 %v3980_v26, %v3348_v25  ;;  %v3225_v1 = vor.u32 %v3946_v62, %v3222_v63  ;;  %v3382_v23 = vld [vmem:[#allocation11 + $0x1d0] sm:$0xf0]  ;;  %v3444_v25 = vld [vmem:[#allocation11 + $0x240] sm:$0xf]  ;;  %v4004_v26 = vld [vmem:[#allocation11 + $0x24c] sm:$0xf0] }
  0xf2   :  { %v4018_v58 = vld [vmem:[#allocation11 + $0x2c4] sm:$0xf]  ;;  %v4418_v62 = vld [vmem:[#allocation10] sm:$0xf] }
  0xf3   :  { %1235 = vmatpush.bf16.msra.mxu2 %v2913_v14  ;;  %1248 = vmatpush.bf16.msra.mxu3 %v3041_v17  ;;  %v3398_v14 = vld [vmem:[#allocation11 + $0x1f0] sm:$0xf0]  ;;  %v4008_v17 = vld [vmem:[#allocation11 + $0x26c] sm:$0xf0] }
  0xf4   :  { %2049 = vmatpush.bf16.msrb.mxu0 %v3253_v11  ;;  %2062 = vmatpush.bf16.msrb.mxu1 %v3381_v12  ;;  %v3209_v11 = vor.u32 %v3942_v8, %v3206_v9  ;;  %v3990_v12 = vld [vmem:[#allocation11 + $0x1e4] sm:$0xf]  ;;  %v3461_v18 = vor.u32 %v4008_v17, %v3460_v16  ;;  %v3494_v9 = vld [vmem:[#allocation11 + $0x2b0] sm:$0xf0] }
  0xf5   :  { %v3401_v15 = vor.u32 %v3990_v12, %v3398_v14  ;;  %v3604_v12 = vld [vmem:[#allocation11 + $0x380] sm:$0xf]  ;;  %v4044_v14 = vld [vmem:[#allocation11 + $0x38c] sm:$0xf0]  ;;  %v3962_v16 = vld [vmem:[#allocation11 + $0x104] sm:$0xf] }
  0xf6   :  { %1236 = vmatmul.bf16.vlgmr.msra.gmra.mxu2 %v4400_v6  ;;  %1249 = vmatmul.bf16.vlgmr.msra.gmra.mxu3 %v4402_v13  ;;  %v3936_v6 = vld [vmem:[#allocation11 + $0x2c] sm:$0xf0]  ;;  %v3156_v13 = vld [vmem:[#allocation11] sm:$0xf]  ;;  %v3286_v17 = vld [vmem:[#allocation11 + $0x110] sm:$0xf0] }
  0xf7   :  { %2074 = vmatpush.bf16.msrb.mxu2 %v3525_v20  ;;  %v3173_v37 = vor.u32 %v3936_v6, %v3172_v36  ;;  %v3157_v41 = vor.u32 %v3932_v38, %v3156_v13  ;;  %v3190_v20 = vld [vmem:[#allocation11 + $0x50] sm:$0xf0]  ;;  %v3978_v6 = vld [vmem:[#allocation11 + $0x184] sm:$0xf] }
  0xf8   :  { %2050 = vmatpush.bf16.msrb.mxu0 %v3237_v21  ;;  %2063 = vmatpush.bf16.msrb.mxu1 %v3365_v24  ;;  %v3986_v21 = vld [vmem:[#allocation11 + $0x1c4] sm:$0xf]  ;;  %v3193_v22 = vor.u32 %v3938_v19, %v3190_v20  ;;  %v3158_v36 = vld [vmem:[#allocation11 + $0x10] sm:$0xf0]  ;;  %v3289_v19 = vor.u32 %v3962_v16, %v3286_v17 }
  0xf9   :  { %v3385_v24 = vor.u32 %v3986_v21, %v3382_v23  ;;  %v3350_v13 = vld [vmem:[#allocation11 + $0x190] sm:$0xf0] }
  0xfa   :  { %v3353_v38 = vor.u32 %v3978_v6, %v3350_v13  ;;  %v3478_v20 = vld [vmem:[#allocation11 + $0x290] sm:$0xf0] }
  0xfb   :  { %2075 = vmatpush.bf16.msrb.mxu2 %v3509_v55  ;;  %v3637_v55 = vor.u32 %v4052_v54, %v3636_v53  ;;  %v3260_v54 = vld [vmem:[#allocation11 + $0xc8] sm:$0xf] }
  0xfc   :  { %2051 = vmatpush.bf16.msrb.mxu0 %v3221_v42  ;;  %2064 = vmatpush.bf16.msrb.mxu1 %v3349_v47  ;;  %v3445_v42 = vor.u32 %v4004_v26, %v3444_v25  ;;  %v3982_v47 = vld [vmem:[#allocation11 + $0x1a4] sm:$0xf]  ;;  %v4040_v25 = vld [vmem:[#allocation11 + $0x36c] sm:$0xf0] }
  0xff   :  { %2076 = vmatpush.bf16.msrb.mxu2 %v3493_v0  ;;  %v3620_v0 = vld [vmem:[#allocation11 + $0x3a0] sm:$0xf] }
 0x100   :  { %2052 = vmatpush.bf16.msrb.mxu0 %v3205_v31  ;;  %2065 = vmatpush.bf16.msrb.mxu1 %v3333_v34  ;;  %v3369_v31 = vor.u32 %v3982_v47, %v3366_v30  ;;  %v3429_v34 = vor.u32 %v4000_v33, %v3428_v32  ;;  %v3465_v47 = vor.u32 %v4006_v27, %v3462_v28  ;;  %v3572_v30 = vld [vmem:[#allocation11 + $0x340] sm:$0xf]  ;;  %v3212_v27 = vld [vmem:[#allocation11 + $0x68] sm:$0xf]  ;;  %v3945_v28 = vld [vmem:[#allocation11 + $0x74] sm:$0xf0] }
 0x103   :  { %2077 = vmatpush.bf16.msrb.mxu2 %v3477_v10  ;;  %v3497_v10 = vor.u32 %v4014_v7, %v3494_v9  ;;  %v3244_v9 = vld [vmem:[#allocation11 + $0xa8] sm:$0xf] }
 0x104   :  { %2053 = vmatpush.bf16.msrb.mxu0 %v3189_v35  ;;  %2066 = vmatpush.bf16.msrb.mxu1 %v3317_v51  ;;  %v3930_v35 = vld [vmem:[#allocation11 + $0x4] sm:$0xf]  ;;  %v3526_v51 = vld [vmem:[#allocation11 + $0x2f0] sm:$0xf0] }
 0x105   :  { %v3529_v52 = vor.u32 %v4022_v50, %v3526_v51  ;;  %v399_v51 = vperm.slane %v4418_v62, 1 }
 0x107   :  { %2078 = vmatpush.bf16.msrb.mxu2 %v3461_v18  ;;  %v4010_v18 = vld [vmem:[#allocation11 + $0x284] sm:$0xf] }
 0x108   :  { %2054 = vmatpush.bf16.msrb.mxu0 %v3173_v37  ;;  %2067 = vmatpush.bf16.msrb.mxu1 %v3301_v60  ;;  %v3161_v37 = vor.u32 %v3930_v35, %v3158_v36  ;;  %v3510_v60 = vld [vmem:[#allocation11 + $0x2d0] sm:$0xf0]  ;;  %v3481_v21 = vor.u32 %v4010_v18, %v3478_v20  ;;  %v3228_v18 = vld [vmem:[#allocation11 + $0x88] sm:$0xf]  ;;  %v3949_v20 = vld [vmem:[#allocation11 + $0x94] sm:$0xf0] }
 0x109   :  { %v3513_v61 = vor.u32 %v4018_v58, %v3510_v60  ;;  %v3446_v35 = vld [vmem:[#allocation11 + $0x250] sm:$0xf0]  ;;  %v3994_v60 = vld [vmem:[#allocation11 + $0x204] sm:$0xf] }
 0x10b   :  { %2079 = vmatpush.bf16.msrb.mxu2 %v3445_v42 }
 0x10c   :  { %2055 = vmatpush.bf16.msrb.mxu0 %v3157_v41  ;;  %2068 = vmatpush.bf16.msrb.mxu1 %v3285_v5  ;;  %v3652_v41 = vld [vmem:[#allocation11 + $0x3e0] sm:$0xf]  ;;  %v3302_v5 = vld [vmem:[#allocation11 + $0x130] sm:$0xf0] }
 0x10d   :  { %v3653_v48 = vor.u32 %v4056_v44, %v3652_v41  ;;  %v3305_v8 = vor.u32 %v3966_v4, %v3302_v5  ;;  %v4032_v41 = vld [vmem:[#allocation11 + $0x32c] sm:$0xf0]  ;;  %v3961_v44 = vld [vmem:[#allocation11 + $0xf4] sm:$0xf0] }
 0x10f   :  { %2080 = vmatpush.bf16.msrb.mxu2 %v3429_v34  ;;  %2087 = vmatpush.bf16.msrb.mxu3 %v3653_v48  ;;  %v4002_v34 = vld [vmem:[#allocation11 + $0x244] sm:$0xf]  ;;  %v3430_v48 = vld [vmem:[#allocation11 + $0x230] sm:$0xf0] }
 0x110   :  { %2100 = vmatpush.bf16.msra.mxu0 %v3273_v43  ;;  %2113 = vmatpush.bf16.msra.mxu1 %v3401_v15  ;;  %v3413_v43 = vor.u32 %v3996_v40, %v3412_v39  ;;  %v3605_v15 = vor.u32 %v4044_v14, %v3604_v12  ;;  %v3276_v39 = vld [vmem:[#allocation11 + $0xe8] sm:$0xf]  ;;  %v3556_v40 = vld [vmem:[#allocation11 + $0x320] sm:$0xf]  ;;  %v4050_v12 = vld [vmem:[#allocation11 + $0x3c4] sm:$0xf] }
 0x111   :  { %v3277_v53 = vor.u32 %v3961_v44, %v3276_v39  ;;  %v3638_v14 = vld [vmem:[#allocation11 + $0x3d0] sm:$0xf0]  ;;  %v3941_v39 = vld [vmem:[#allocation11 + $0x54] sm:$0xf0] }
 0x112   :  { %v3989_v44 = vld [vmem:[#allocation11 + $0x1d4] sm:$0xf0] }
 0x113   :  { %2081 = vmatpush.bf16.msrb.mxu2 %v3413_v43  ;;  %2088 = vmatpush.bf16.msrb.mxu3 %v3637_v55  ;;  %v3957_v55 = vld [vmem:[#allocation11 + $0xd4] sm:$0xf0] }
 0x114   :  { %2101 = vmatpush.bf16.msra.mxu0 %v3257_v46  ;;  %2114 = vmatpush.bf16.msra.mxu1 %v3385_v24  ;;  %v3334_v46 = vld [vmem:[#allocation11 + $0x170] sm:$0xf0]  ;;  %v3588_v24 = vld [vmem:[#allocation11 + $0x360] sm:$0xf] }
 0x115   :  { %v3337_v49 = vor.u32 %v3974_v45, %v3334_v46  ;;  %v3589_v42 = vor.u32 %v4040_v25, %v3588_v24  ;;  %v3557_v45 = vor.u32 %v4032_v41, %v3556_v40  ;;  %v3998_v46 = vld [vmem:[#allocation11 + $0x224] sm:$0xf]  ;;  %v3388_v40 = vld [vmem:[#allocation11 + $0x1c8] sm:$0xf] }
 0x116   :  { %v3433_v50 = vor.u32 %v3998_v46, %v3430_v48  ;;  %v3590_v46 = vld [vmem:[#allocation11 + $0x370] sm:$0xf0] }
 0x117   :  { %2126 = vmatpush.bf16.msra.mxu2 %v3529_v52 }
 0x118   :  { %2102 = vmatpush.bf16.msra.mxu0 %v3241_v56  ;;  %2115 = vmatpush.bf16.msra.mxu1 %v3369_v31  ;;  %v3970_v56 = vld [vmem:[#allocation11 + $0x144] sm:$0xf]  ;;  %v4036_v31 = vld [vmem:[#allocation11 + $0x34c] sm:$0xf0] }
 0x119   :  { %v3321_v59 = vor.u32 %v3970_v56, %v3318_v57  ;;  %v3573_v33 = vor.u32 %v4036_v31, %v3572_v30  ;;  %v3540_v56 = vld [vmem:[#allocation11 + $0x300] sm:$0xf]  ;;  %v3993_v30 = vld [vmem:[#allocation11 + $0x1f4] sm:$0xf0]  ;;  %v4042_v31 = vld [vmem:[#allocation11 + $0x384] sm:$0xf] }
 0x11b   :  { %2127 = vmatpush.bf16.msra.mxu2 %v3513_v61  ;;  %v3414_v61 = vld [vmem:[#allocation11 + $0x210] sm:$0xf0] }
 0x11c   :  { %2103 = vmatpush.bf16.msra.mxu0 %v3225_v1  ;;  %2116 = vmatpush.bf16.msra.mxu1 %v3353_v38  ;;  %v4048_v1 = vld [vmem:[#allocation11 + $0x3ac] sm:$0xf0] }
 0x11d   :  { %v3621_v3 = vor.u32 %v4048_v1, %v3620_v0  ;;  %v3417_v1 = vor.u32 %v3994_v60, %v3414_v61  ;;  %v3574_v60 = vld [vmem:[#allocation11 + $0x350] sm:$0xf0] }
 0x11f   :  { %2089 = vmatpush.bf16.msrb.mxu3 %v3621_v3  ;;  %2128 = vmatpush.bf16.msra.mxu2 %v3497_v10  ;;  %v3654_v3 = vld [vmem:[#allocation11 + $0x3f0] sm:$0xf0] }
 0x120   :  { %2104 = vmatpush.bf16.msra.mxu0 %v3209_v11  ;;  %2117 = vmatpush.bf16.msra.mxu1 %v3337_v49  ;;  %v398_v11 = vperm.slane %v4418_v62, 0 }
 0x123   :  { %2090 = vmatpush.bf16.msrb.mxu3 %v3605_v15  ;;  %2129 = vmatpush.bf16.msra.mxu2 %v3481_v21  ;;  %v3641_v15 = vor.u32 %v4050_v12, %v3638_v14  ;;  %v4046_v21 = vld [vmem:[#allocation11 + $0x3a4] sm:$0xf]  ;;  %v3959_v12 = vld [vmem:[#allocation11 + $0xec] sm:$0xf]  ;;  %v3278_v14 = vld [vmem:[#allocation11 + $0xf8] sm:$0xf0] }
 0x124   :  { %2105 = vmatpush.bf16.msra.mxu0 %v3193_v22  ;;  %2118 = vmatpush.bf16.msra.mxu1 %v3321_v59  ;;  %v4028_v59 = vld [vmem:[#allocation11 + $0x30c] sm:$0xf0] }
 0x125   :  { %v3541_v0 = vor.u32 %v4028_v59, %v3540_v56  ;;  %v4034_v59 = vld [vmem:[#allocation11 + $0x344] sm:$0xf] }
 0x127   :  { %2091 = vmatpush.bf16.msrb.mxu3 %v3589_v42  ;;  %2130 = vmatpush.bf16.msra.mxu2 %v3465_v47  ;;  %v3229_v42 = vor.u32 %v3949_v20, %v3228_v18  ;;  %v3404_v47 = vld [vmem:[#allocation11 + $0x1e8] sm:$0xf]  ;;  %v3977_v20 = vld [vmem:[#allocation11 + $0x174] sm:$0xf0] }
 0x128   :  { %2106 = vmatpush.bf16.msra.mxu0 %v3177_v29  ;;  %2119 = vmatpush.bf16.msra.mxu1 %v3305_v8  ;;  %v3261_v8 = vor.u32 %v3957_v55, %v3260_v54  ;;  %v3372_v54 = vld [vmem:[#allocation11 + $0x1a8] sm:$0xf] }
 0x12b   :  { %v1055_v63 = vpop.f32.mrf.mxu0  ;;  %v1068_v2 = vpop.f32.mrf.mxu1  ;;  %2092 = vmatpush.bf16.msrb.mxu3 %v3573_v33 }
 0x12c   :  { %2107 = vmatpush.bf16.msra.mxu0 %v3161_v37  ;;  %v1056_v22 = vadd.f32 %v1055_v63, %v398_v11  ;;  %2120 = vmatpush.bf16.msra.mxu1 %v3289_v19  ;;  %v3449_v37 = vor.u32 %v4002_v34, %v3446_v35  ;;  %v3953_v11 = vld [vmem:[#allocation11 + $0xb4] sm:$0xf0] }
 0x12d   :  { %v3245_v17 = vor.u32 %v3953_v11, %v3244_v9  ;;  %v3558_v9 = vld [vmem:[#allocation11 + $0x330] sm:$0xf0] }
 0x12e   :  { %v1069_v29 = vadd.f32 %v1068_v2, %v1056_v22  ;;  %2131 = vmatpush.bf16.msra.mxu2 %v3449_v37  ;;  %v4054_v2 = vld [vmem:[#allocation11 + $0x3e4] sm:$0xf]  ;;  %v3622_v22 = vld [vmem:[#allocation11 + $0x3b0] sm:$0xf0]  ;;  %v3213_v37 = vor.u32 %v3945_v28, %v3212_v27  ;;  %v3262_v27 = vld [vmem:[#allocation11 + $0xd8] sm:$0xf0] }
 0x12f   :  { %2093 = vmatpush.bf16.msrb.mxu3 %v3557_v45  ;;  %v3657_v4 = vor.u32 %v4054_v2, %v3654_v3  ;;  %v3625_v25 = vor.u32 %v4046_v21, %v3622_v22  ;;  %v4038_v45 = vld [vmem:[#allocation11 + $0x364] sm:$0xf]  ;;  %v3164_v2 = vld [vmem:[#allocation11 + $0x8] sm:$0xf]  ;;  %v3933_v3 = vld [vmem:[#allocation11 + $0x14] sm:$0xf0]  ;;  %v3281_v22 = vor.u32 %v3959_v12, %v3278_v14 }
 0x130   :  { %v3198_v12 = vld [vmem:[#allocation11 + $0x58] sm:$0xf0]  ;;  %v3987_v14 = vld [vmem:[#allocation11 + $0x1cc] sm:$0xf] }
 0x132   :  { %2132 = vmatpush.bf16.msra.mxu2 %v3433_v50 }
 0x133   :  { %v1057_v23 = vpop.f32.mrf.mxu0  ;;  %v1070_v26 = vpop.f32.mrf.mxu1  ;;  %2094 = vmatpush.bf16.msrb.mxu3 %v3541_v0 }
 0x136   :  { %2133 = vmatpush.bf16.msra.mxu2 %v3417_v1 }
 0x137   :  { %2139 = vmatpush.bf16.msra.mxu3 %v3657_v4  ;;  %v3356_v4 = vld [vmem:[#allocation11 + $0x188] sm:$0xf] }
 0x139   :  { %v1081_v32 = vpop.f32.mrf.mxu2  ;;  %v1094_v6 = vpop.f32.mrf.mxu3 }
 0x13a   :  { %v1082_v36 = vadd.f32 %v1081_v32, %v1069_v29  ;;  %v3606_v32 = vld [vmem:[#allocation11 + $0x390] sm:$0xf0] }
 0x13b   :  { %v1107_v38 = vpop.f32.mrf.mxu0  ;;  %v1120_v43 = vpop.f32.mrf.mxu1  ;;  %2140 = vmatpush.bf16.msra.mxu3 %v3641_v15  ;;  %v3609_v35 = vor.u32 %v4042_v31, %v3606_v32 }
 0x13c   :  { %v1095_v13 = vadd.f32 %v1094_v6, %v1082_v36  ;;  %v1108_v5 = vadd.f32 %v1107_v38, %v399_v51  ;;  %v400_v36 = vperm.slane %v4418_v62, 2  ;;  %v3196_v38 = vld [vmem:[#allocation11 + $0x48] sm:$0xf]  ;;  %v3389_v51 = vor.u32 %v3989_v44, %v3388_v40 }
 0x13d   :  { %v3197_v50 = vor.u32 %v3941_v39, %v3196_v38  ;;  %v3951_v38 = vld [vmem:[#allocation11 + $0xac] sm:$0xf]  ;;  %v3246_v39 = vld [vmem:[#allocation11 + $0xb8] sm:$0xf0] }
 0x13e   :  { %vm1254_vm5 = vcmp.gt.f32.partialorder %v1095_v13, 0.0  ;;  %v1258_v49 = vmul.f32 0.01, %v1095_v13  ;;  %v1121_v16 = vadd.f32 %v1120_v43, %v1108_v5  ;;  %v3249_v44 = vor.u32 %v3951_v38, %v3246_v39 }
 0x13f   :  { %2141 = vmatpush.bf16.msra.mxu3 %v3625_v25  ;;  %v3542_v25 = vld [vmem:[#allocation11 + $0x310] sm:$0xf0] }
 0x140   :  { %v1262_v52 = vsel %vm1254_vm5, %v1095_v13, %v1258_v49  ;;  %v3405_v13 = vor.u32 %v3993_v30, %v3404_v47  ;;  %v3593_v49 = vor.u32 %v4038_v45, %v3590_v46  ;;  %v3308_v45 = vld [vmem:[#allocation11 + $0x128] sm:$0xf]  ;;  %v3969_v46 = vld [vmem:[#allocation11 + $0x134] sm:$0xf0] }
 0x141   :  { %v4422_v57 = vpack.c.bf16 %v1262_v52, %v1262_v52  ;;  %v1083_v58 = vpop.f32.mrf.mxu2  ;;  %v1096_v63 = vpop.f32.mrf.mxu3  ;;  %v3180_v52 = vld [vmem:[#allocation11 + $0x28] sm:$0xf] }
 0x142   :  { %v3985_v58 = vld [vmem:[#allocation11 + $0x1b4] sm:$0xf0]  ;;  %v3577_v63 = vor.u32 %v4034_v59, %v3574_v60 }
 0x143   :  { %2056 = vmatmul.bf16.vlgmr.msrb.gmra.mxu0 %v4422_v57  ;;  %v1109_v7 = vpop.f32.mrf.mxu0  ;;  %v1122_v10 = vpop.f32.mrf.mxu1  ;;  %2142 = vmatpush.bf16.msra.mxu3 %v3609_v35  ;;  %v3373_v1 = vor.u32 %v3985_v58, %v3372_v54  ;;  %v3516_v35 = vld [vmem:[#allocation11 + $0x2c8] sm:$0xf]  ;;  %v4013_v60 = vld [vmem:[#allocation11 + $0x294] sm:$0xf0] }
 0x144   :  { %2152 = vmatpush.bf16.msrb.mxu0 %v3277_v53  ;;  %v3937_v53 = vld [vmem:[#allocation11 + $0x34] sm:$0xf0]  ;;  %v3484_v58 = vld [vmem:[#allocation11 + $0x288] sm:$0xf] }
 0x145   :  { %v3181_v0 = vor.u32 %v3937_v53, %v3180_v52  ;;  %v3981_v7 = vld [vmem:[#allocation11 + $0x194] sm:$0xf0]  ;;  %v3309_v52 = vor.u32 %v3969_v46, %v3308_v45 }
 0x146   :  { %v3357_v18 = vor.u32 %v3981_v7, %v3356_v4  ;;  %v401_v4 = vperm.slane %v4418_v62, 3  ;;  %v4057_v45 = vld [vmem:[#allocation11 + $0x3f4] sm:$0xf0] }
 0x147   :  { %2143 = vmatpush.bf16.msra.mxu3 %v3593_v49  ;;  %v4017_v49 = vld [vmem:[#allocation11 + $0x2b4] sm:$0xf0] }
 0x148   :  { %2153 = vmatpush.bf16.msrb.mxu0 %v3261_v8  ;;  %v4030_v8 = vld [vmem:[#allocation11 + $0x324] sm:$0xf] }
 0x149   :  { %v1133_v19 = vpop.f32.mrf.mxu2  ;;  %v1146_v24 = vpop.f32.mrf.mxu3  ;;  %v3561_v15 = vor.u32 %v4030_v8, %v3558_v9  ;;  %v3468_v8 = vld [vmem:[#allocation11 + $0x268] sm:$0xf] }
 0x14a   :  { %v1134_v23 = vadd.f32 %v1133_v19, %v1121_v16  ;;  %v3340_v19 = vld [vmem:[#allocation11 + $0x168] sm:$0xf] }
 0x14b   :  { %2144 = vmatpush.bf16.msra.mxu3 %v3577_v63  ;;  %v3214_v63 = vld [vmem:[#allocation11 + $0x78] sm:$0xf0] }
 0x14c   :  { %v1147_v26 = vadd.f32 %v1146_v24, %v1134_v23  ;;  %2154 = vmatpush.bf16.msrb.mxu0 %v3245_v17  ;;  %v3165_v17 = vor.u32 %v3933_v3, %v3164_v2  ;;  %v3532_v23 = vld [vmem:[#allocation11 + $0x2e8] sm:$0xf]  ;;  %v4026_v24 = vld [vmem:[#allocation11 + $0x304] sm:$0xf]  ;;  %v3406_v2 = vld [vmem:[#allocation11 + $0x1f8] sm:$0xf0] }
 0x14d   :  { %v3545_v28 = vor.u32 %v4026_v24, %v3542_v25  ;;  %v3983_v25 = vld [vmem:[#allocation11 + $0x1ac] sm:$0xf] }
 0x14e   :  { %v1159_v29 = vpop.f32.mrf.mxu0  ;;  %vm1255_vm6 = vcmp.gt.f32.partialorder %v1147_v26, 0.0  ;;  %v1259_v33 = vmul.f32 0.01, %v1147_v26  ;;  %v1172_v34 = vpop.f32.mrf.mxu1 }
 0x14f   :  { %v1160_v55 = vadd.f32 %v1159_v29, %v400_v36  ;;  %2145 = vmatpush.bf16.msra.mxu3 %v3561_v15  ;;  %v3341_v29 = vor.u32 %v3977_v20, %v3340_v19  ;;  %v3390_v15 = vld [vmem:[#allocation11 + $0x1d8] sm:$0xf0]  ;;  %v3452_v19 = vld [vmem:[#allocation11 + $0x248] sm:$0xf] }
 0x150   :  { %v1263_v6 = vsel %vm1255_vm6, %v1147_v26, %v1259_v33  ;;  %2155 = vmatpush.bf16.msrb.mxu0 %v3229_v42  ;;  %v4025_v26 = vld [vmem:[#allocation11 + $0x2f4] sm:$0xf0]  ;;  %v3955_v42 = vld [vmem:[#allocation11 + $0xcc] sm:$0xf]  ;;  %v3324_v33 = vld [vmem:[#allocation11 + $0x148] sm:$0xf]  ;;  %v3393_v20 = vor.u32 %v3987_v14, %v3390_v15 }
 0x151   :  { %v4426_v41 = vpack.c.bf16 %v1263_v6, %v1263_v6  ;;  %v1135_v43 = vpop.f32.mrf.mxu2  ;;  %v1148_v48 = vpop.f32.mrf.mxu3  ;;  %v1173_v5 = vadd.f32 %v1172_v34, %v1160_v55  ;;  %v3533_v31 = vor.u32 %v4025_v26, %v3532_v23  ;;  %v3265_v32 = vor.u32 %v3955_v42, %v3262_v27  ;;  %v3973_v34 = vld [vmem:[#allocation11 + $0x154] sm:$0xf0]  ;;  %v3292_v55 = vld [vmem:[#allocation11 + $0x108] sm:$0xf]  ;;  %v3182_v23 = vld [vmem:[#allocation11 + $0x38] sm:$0xf0] }
 0x152   :  { %v3325_v40 = vor.u32 %v3973_v34, %v3324_v33  ;;  %v3500_v48 = vld [vmem:[#allocation11 + $0x2a8] sm:$0xf]  ;;  %v3374_v26 = vld [vmem:[#allocation11 + $0x1b8] sm:$0xf0]  ;;  %v4015_v14 = vld [vmem:[#allocation11 + $0x2ac] sm:$0xf] }
 0x153   :  { %2069 = vmatmul.bf16.vlgmr.msrb.gmra.mxu1 %v4426_v41  ;;  %2108 = vmatmul.bf16.vlgmr.msra.gmra.mxu0 %v4422_v57  ;;  %v3501_v53 = vor.u32 %v4017_v49, %v3500_v48  ;;  %v3166_v33 = vld [vmem:[#allocation11 + $0x18] sm:$0xf0]  ;;  %v3975_v48 = vld [vmem:[#allocation11 + $0x16c] sm:$0xf] }
 0x154   :  { %2156 = vmatpush.bf16.msrb.mxu0 %v3213_v37  ;;  %2165 = vmatpush.bf16.msrb.mxu1 %v3405_v13  ;;  %v4021_v13 = vld [vmem:[#allocation11 + $0x2d4] sm:$0xf0]  ;;  %v3342_v49 = vld [vmem:[#allocation11 + $0x178] sm:$0xf0] }
 0x155   :  { %2146 = vmatpush.bf16.msra.mxu3 %v3545_v28  ;;  %v3517_v43 = vor.u32 %v4021_v13, %v3516_v35  ;;  %v3420_v13 = vld [vmem:[#allocation11 + $0x208] sm:$0xf]  ;;  %v3502_v15 = vld [vmem:[#allocation11 + $0x2b8] sm:$0xf0] }
 0x156   :  { %v1161_v56 = vpop.f32.mrf.mxu0  ;;  %v1174_v61 = vpop.f32.mrf.mxu1 }
 0x157   :  { %v3965_v56 = vld [vmem:[#allocation11 + $0x114] sm:$0xf0]  ;;  %v3943_v61 = vld [vmem:[#allocation11 + $0x6c] sm:$0xf] }
 0x158   :  { %2157 = vmatpush.bf16.msrb.mxu0 %v3197_v50  ;;  %2166 = vmatpush.bf16.msrb.mxu1 %v3389_v51  ;;  %v3947_v50 = vld [vmem:[#allocation11 + $0x8c] sm:$0xf]  ;;  %v3230_v51 = vld [vmem:[#allocation11 + $0x98] sm:$0xf0]  ;;  %v3293_v3 = vor.u32 %v3965_v56, %v3292_v55  ;;  %v3217_v7 = vor.u32 %v3943_v61, %v3214_v63  ;;  %v3644_v61 = vld [vmem:[#allocation11 + $0x3c8] sm:$0xf] }
 0x159   :  { %v1185_v10 = vpop.f32.mrf.mxu2  ;;  %v1198_v11 = vpop.f32.mrf.mxu3  ;;  %v3233_v54 = vor.u32 %v3947_v50, %v3230_v51  ;;  %v4023_v50 = vld [vmem:[#allocation11 + $0x2ec] sm:$0xf]  ;;  %v4053_v63 = vld [vmem:[#allocation11 + $0x3d4] sm:$0xf0] }
 0x15a   :  { %v1186_v16 = vadd.f32 %v1185_v10, %v1173_v5  ;;  %v3485_v5 = vor.u32 %v4013_v60, %v3484_v58  ;;  %v4009_v10 = vld [vmem:[#allocation11 + $0x274] sm:$0xf0] }
 0x15c   :  { %2158 = vmatpush.bf16.msrb.mxu0 %v3181_v0  ;;  %2167 = vmatpush.bf16.msrb.mxu1 %v3373_v1  ;;  %v1199_v21 = vadd.f32 %v1198_v11, %v1186_v16  ;;  %v3991_v1 = vld [vmem:[#allocation11 + $0x1ec] sm:$0xf] }
 0x15d   :  { %v3409_v9 = vor.u32 %v3991_v1, %v3406_v2  ;;  %v3939_v11 = vld [vmem:[#allocation11 + $0x4c] sm:$0xf]  ;;  %v3326_v2 = vld [vmem:[#allocation11 + $0x158] sm:$0xf0] }
 0x15e   :  { %vm1256_vm7 = vcmp.gt.f32.partialorder %v1199_v21, 0.0  ;;  %v1260_v47 = vmul.f32 0.01, %v1199_v21 }
 0x160   :  { %2159 = vmatpush.bf16.msrb.mxu0 %v3165_v17  ;;  %2168 = vmatpush.bf16.msrb.mxu1 %v3357_v18  ;;  %v1264_v30 = vsel %vm1256_vm7, %v1199_v21, %v1260_v47  ;;  %v3469_v17 = vor.u32 %v4009_v10, %v3468_v8  ;;  %v3201_v18 = vor.u32 %v3939_v11, %v3198_v12  ;;  %v4005_v21 = vld [vmem:[#allocation11 + $0x254] sm:$0xf0]  ;;  %v3436_v47 = vld [vmem:[#allocation11 + $0x228] sm:$0xf]  ;;  %v3967_v11 = vld [vmem:[#allocation11 + $0x12c] sm:$0xf] }
 0x161   :  { %v4430_v36 = vpack.c.bf16 %v1264_v30, %v1264_v30  ;;  %v1187_v6 = vpop.f32.mrf.mxu2  ;;  %v1200_v37 = vpop.f32.mrf.mxu3  ;;  %v3453_v27 = vor.u32 %v4005_v21, %v3452_v19  ;;  %v3377_v30 = vor.u32 %v3983_v25, %v3374_v26  ;;  %v4049_v10 = vld [vmem:[#allocation11 + $0x3b4] sm:$0xf0]  ;;  %v3310_v12 = vld [vmem:[#allocation11 + $0x138] sm:$0xf0]  ;;  %v4011_v21 = vld [vmem:[#allocation11 + $0x28c] sm:$0xf] }
 0x162   :  { %v3979_v6 = vld [vmem:[#allocation11 + $0x18c] sm:$0xf]  ;;  %v3358_v37 = vld [vmem:[#allocation11 + $0x198] sm:$0xf0]  ;;  %v4045_v19 = vld [vmem:[#allocation11 + $0x394] sm:$0xf0] }
 0x163   :  { %2121 = vmatmul.bf16.vlgmr.msra.gmra.mxu1 %v4426_v41  ;;  %2160 = vmatmul.bf16.vlgmr.msrb.gmra.mxu0 %v4422_v57  ;;  %v3361_v46 = vor.u32 %v3979_v6, %v3358_v37  ;;  %v3596_v26 = vld [vmem:[#allocation11 + $0x368] sm:$0xf]  ;;  %v4033_v37 = vld [vmem:[#allocation11 + $0x334] sm:$0xf0] }
 0x164   :  { %2204 = vmatpush.bf16.msra.mxu0 %v3281_v22  ;;  %2082 = vmatmul.bf16.vlgmr.msrb.gmra.mxu2 %v4430_v36  ;;  %v3935_v22 = vld [vmem:[#allocation11 + $0x2c] sm:$0xf]  ;;  %v3564_v6 = vld [vmem:[#allocation11 + $0x328] sm:$0xf] }
 0x165   :  { %2169 = vmatpush.bf16.msrb.mxu1 %v3341_v29  ;;  %2178 = vmatpush.bf16.msrb.mxu2 %v3533_v31  ;;  %v3185_v28 = vor.u32 %v3935_v22, %v3182_v23  ;;  %v4001_v31 = vld [vmem:[#allocation11 + $0x234] sm:$0xf0]  ;;  %v3486_v22 = vld [vmem:[#allocation11 + $0x298] sm:$0xf0] }
 0x166   :  { %v3437_v39 = vor.u32 %v4001_v31, %v3436_v47  ;;  %v3489_v25 = vor.u32 %v4011_v21, %v3486_v22  ;;  %v4037_v31 = vld [vmem:[#allocation11 + $0x354] sm:$0xf0] }
 0x167   :  { %v4073_v21 = vld [vmem:[#allocation13 + $0x78] sm:$0xff] }
 0x168   :  { %2205 = vmatpush.bf16.msra.mxu0 %v3265_v32  ;;  %v3931_v32 = vld [vmem:[#allocation11 + $0xc] sm:$0xf]  ;;  %v4061_v22 = vld [vmem:[#allocation13 + $0x18] sm:$0xff] }
 0x169   :  { %2170 = vmatpush.bf16.msrb.mxu1 %v3325_v40  ;;  %2179 = vmatpush.bf16.msrb.mxu2 %v3517_v43  ;;  %v3169_v40 = vor.u32 %v3931_v32, %v3166_v33  ;;  %v3997_v43 = vld [vmem:[#allocation11 + $0x214] sm:$0xf0]  ;;  %v4003_v32 = vld [vmem:[#allocation11 + $0x24c] sm:$0xf]  ;;  %v3454_v33 = vld [vmem:[#allocation11 + $0x258] sm:$0xf0] }
 0x16c   :  { %2206 = vmatpush.bf16.msra.mxu0 %v3249_v44  ;;  %v3660_v44 = vld [vmem:[#allocation11 + $0x3e8] sm:$0xf] }
 0x16d   :  { %2171 = vmatpush.bf16.msrb.mxu1 %v3309_v52  ;;  %2180 = vmatpush.bf16.msrb.mxu2 %v3501_v53  ;;  %v3534_v52 = vld [vmem:[#allocation11 + $0x2f8] sm:$0xf0]  ;;  %v3661_v55 = vor.u32 %v4057_v45, %v3660_v44  ;;  %v4029_v44 = vld [vmem:[#allocation11 + $0x314] sm:$0xf0]  ;;  %v3995_v45 = vld [vmem:[#allocation11 + $0x20c] sm:$0xf] }
 0x16e   :  { %v1211_v59 = vpop.f32.mrf.mxu0  ;;  %v1224_v0 = vpop.f32.mrf.mxu1  ;;  %v3537_v60 = vor.u32 %v4023_v50, %v3534_v52  ;;  %v4051_v52 = vld [vmem:[#allocation11 + $0x3cc] sm:$0xf] }
 0x16f   :  { %v1212_v16 = vadd.f32 %v1211_v59, %v401_v4  ;;  %v3345_v59 = vor.u32 %v3975_v48, %v3342_v49  ;;  %v3518_v4 = vld [vmem:[#allocation11 + $0x2d8] sm:$0xf0]  ;;  %v4055_v48 = vld [vmem:[#allocation11 + $0x3ec] sm:$0xf] }
 0x170   :  { %2207 = vmatpush.bf16.msra.mxu0 %v3233_v54  ;;  %v3421_v54 = vor.u32 %v3997_v43, %v3420_v13  ;;  %v3999_v13 = vld [vmem:[#allocation11 + $0x22c] sm:$0xf]  ;;  %v3548_v43 = vld [vmem:[#allocation11 + $0x308] sm:$0xf]  ;;  %v3662_v49 = vld [vmem:[#allocation11 + $0x3f8] sm:$0xf0] }
 0x171   :  { %2172 = vmatpush.bf16.msrb.mxu1 %v3293_v3  ;;  %2181 = vmatpush.bf16.msrb.mxu2 %v3485_v5  ;;  %v1225_v42 = vadd.f32 %v1224_v0, %v1212_v16  ;;  %v3971_v0 = vld [vmem:[#allocation11 + $0x14c] sm:$0xf]  ;;  %v3645_v5 = vor.u32 %v4053_v63, %v3644_v61  ;;  %v3549_v50 = vor.u32 %v4029_v44, %v3548_v43  ;;  %v3614_v61 = vld [vmem:[#allocation11 + $0x398] sm:$0xf0]  ;;  %v4078_v43 = vld [vmem:[#allocation13 + $0xa0] sm:$0xff] }
 0x172   :  { %v4019_v3 = vld [vmem:[#allocation11 + $0x2cc] sm:$0xf] }
 0x173   :  { %v3521_v8 = vor.u32 %v4019_v3, %v3518_v4  ;;  %v4035_v3 = vld [vmem:[#allocation11 + $0x34c] sm:$0xf]  ;;  %v3582_v4 = vld [vmem:[#allocation11 + $0x358] sm:$0xf0] }
 0x174   :  { %2208 = vmatpush.bf16.msra.mxu0 %v3217_v7  ;;  %2173 = vmatmul.bf16.vlgmr.msrb.gmra.mxu1 %v4426_v41  ;;  %v3329_v7 = vor.u32 %v3971_v0, %v3326_v2  ;;  %v4039_v0 = vld [vmem:[#allocation11 + $0x36c] sm:$0xf] }
 0x175   :  { %2217 = vmatpush.bf16.msra.mxu1 %v3409_v9  ;;  %2134 = vmatmul.bf16.vlgmr.msra.gmra.mxu2 %v4430_v36  ;;  %v3628_v9 = vld [vmem:[#allocation11 + $0x3a8] sm:$0xf] }
 0x176   :  { %v1213_v62 = vpop.f32.mrf.mxu0  ;;  %v1226_v24 = vpop.f32.mrf.mxu1  ;;  %2182 = vmatpush.bf16.msrb.mxu2 %v3469_v17  ;;  %v3629_v16 = vor.u32 %v4049_v10, %v3628_v9  ;;  %v3505_v17 = vor.u32 %v4015_v14, %v3502_v15  ;;  %v4027_v10 = vld [vmem:[#allocation11 + $0x30c] sm:$0xf]  ;;  %v4065_v15 = vld [vmem:[#allocation13 + $0x38] sm:$0xff] }
 0x177   :  { %v3963_v62 = vld [vmem:[#allocation11 + $0x10c] sm:$0xf] }
 0x178   :  { %2209 = vmatpush.bf16.msra.mxu0 %v3201_v18  ;;  %v3612_v18 = vld [vmem:[#allocation11 + $0x388] sm:$0xf] }
 0x179   :  { %2218 = vmatpush.bf16.msra.mxu1 %v3393_v20  ;;  %v1237_v29 = vpop.f32.mrf.mxu2  ;;  %v1250_v35 = vpop.f32.mrf.mxu3  ;;  %v3294_v20 = vld [vmem:[#allocation11 + $0x118] sm:$0xf0]  ;;  %v3613_v23 = vor.u32 %v4045_v19, %v3612_v18  ;;  %v4063_v18 = vld [vmem:[#allocation13 + $0x28] sm:$0xff]  ;;  %v4062_v19 = vld [vmem:[#allocation13 + $0x20] sm:$0xff] }
 0x17a   :  { %v1238_v34 = vadd.f32 %v1237_v29, %v1225_v42  ;;  %2183 = vmatpush.bf16.msrb.mxu2 %v3453_v27  ;;  %v3297_v24 = vor.u32 %v3963_v62, %v3294_v20  ;;  %v4041_v42 = vld [vmem:[#allocation11 + $0x374] sm:$0xf0]  ;;  %v4007_v27 = vld [vmem:[#allocation11 + $0x26c] sm:$0xf] }
 0x17b   :  { %v3597_v47 = vor.u32 %v4041_v42, %v3596_v26  ;;  %v4059_v26 = vld [vmem:[#allocation13 + $0x8] sm:$0xff] }
 0x17c   :  { %v1251_v38 = vadd.f32 %v1250_v35, %v1238_v34  ;;  %2210 = vmatpush.bf16.msra.mxu0 %v3185_v28  ;;  %v3470_v28 = vld [vmem:[#allocation11 + $0x278] sm:$0xf0]  ;;  %v3457_v35 = vor.u32 %v4003_v32, %v3454_v33  ;;  %v4071_v42 = vld [vmem:[#allocation13 + $0x68] sm:$0xff] }
 0x17d   :  { %2219 = vmatpush.bf16.msra.mxu1 %v3377_v30  ;;  %v3473_v29 = vor.u32 %v4007_v27, %v3470_v28  ;;  %v3580_v30 = vld [vmem:[#allocation11 + $0x348] sm:$0xf]  ;;  %v4058_v28 = vld [vmem:[#allocation13] sm:$0xff]  ;;  %v4081_v32 = vld [vmem:[#allocation13 + $0xb8] sm:$0xff] }
 0x17e   :  { %vm1257_vm8 = vcmp.gt.f32.partialorder %v1251_v38, 0.0  ;;  %v1261_v51 = vmul.f32 0.01, %v1251_v38  ;;  %2184 = vmatpush.bf16.msrb.mxu2 %v3437_v39  ;;  %v3581_v34 = vor.u32 %v4037_v31, %v3580_v30  ;;  %v3565_v39 = vor.u32 %v4033_v37, %v3564_v6  ;;  %v4069_v31 = vld [vmem:[#allocation13 + $0x58] sm:$0xff]  ;;  %v4067_v37 = vld [vmem:[#allocation13 + $0x48] sm:$0xff] }
 0x180   :  { %v1265_v53 = vsel %vm1257_vm8, %v1251_v38, %v1261_v51  ;;  %2211 = vmatpush.bf16.msra.mxu0 %v3169_v40  ;;  %v3438_v38 = vld [vmem:[#allocation11 + $0x238] sm:$0xf0]  ;;  %v3665_v51 = vor.u32 %v4055_v48, %v3662_v49  ;;  %v4076_v49 = vld [vmem:[#allocation13 + $0x90] sm:$0xff] }
 0x181   :  { %v4438_v56 = vpack.c.bf16 %v1265_v53, %v1265_v53  ;;  %2220 = vmatpush.bf16.msra.mxu1 %v3361_v46  ;;  %v1239_v58 = vpop.f32.mrf.mxu2  ;;  %v1252_v1 = vpop.f32.mrf.mxu3  ;;  %v3441_v40 = vor.u32 %v3999_v13, %v3438_v38  ;;  %v3422_v46 = vld [vmem:[#allocation11 + $0x218] sm:$0xf0]  ;;  %v4079_v13 = vld [vmem:[#allocation13 + $0xa8] sm:$0xff]  ;;  %v4459_v38 = vld [vmem:[%s4484_s6] sm:$0xf] }
 0x182   :  { %2185 = vmatpush.bf16.msrb.mxu2 %v3421_v54  ;;  %v3646_v53 = vld [vmem:[#allocation11 + $0x3d8] sm:$0xf0] }
 0x183   :  { %2095 = vmatmul.bf16.vlgmr.msrb.gmra.mxu3 %v4438_v56  ;;  %2212 = vmatmul.bf16.vlgmr.msra.gmra.mxu0 %v4422_v57  ;;  %v3313_v57 = vor.u32 %v3967_v11, %v3310_v12  ;;  %v3649_v54 = vor.u32 %v4051_v52, %v3646_v53  ;;  %v3630_v58 = vld [vmem:[#allocation11 + $0x3b8] sm:$0xf0] }
 0x184   :  { %2191 = vmatpush.bf16.msrb.mxu3 %v3661_v55  ;;  %v4047_v55 = vld [vmem:[#allocation11 + $0x3ac] sm:$0xf]  ;;  %v3598_v1 = vld [vmem:[#allocation11 + $0x378] sm:$0xf0]  ;;  %2532 = vmatpush.bf16.msrb.mxu0 %v4065_v15 }
 0x185   :  { %2221 = vmatpush.bf16.msra.mxu1 %v3345_v59  ;;  %2186 = vmatmul.bf16.vlgmr.msrb.gmra.mxu2 %v4430_v36  ;;  %v3633_v59 = vor.u32 %v4047_v55, %v3630_v58  ;;  %v3601_v2 = vor.u32 %v4039_v0, %v3598_v1  ;;  %v4085_v15 = vld [vmem:[#allocation13 + $0xd8] sm:$0xff] }
 0x186   :  { %2230 = vmatpush.bf16.msra.mxu2 %v3537_v60  ;;  %v4043_v60 = vld [vmem:[#allocation11 + $0x38c] sm:$0xf] }
 0x187   :  { %v3617_v63 = vor.u32 %v4043_v60, %v3614_v61  ;;  %v4074_v61 = vld [vmem:[#allocation13 + $0x80] sm:$0xff] }
 0x188   :  { %2192 = vmatpush.bf16.msrb.mxu3 %v3645_v5  ;;  %v3585_v5 = vor.u32 %v4035_v3, %v3582_v4  ;;  %v4088_v4 = vld [vmem:[#allocation13 + $0xf0] sm:$0xff] }
 0x189   :  { %2222 = vmatpush.bf16.msra.mxu1 %v3329_v7  ;;  %v4031_v7 = vld [vmem:[#allocation11 + $0x32c] sm:$0xf] }
 0x18a   :  { %2231 = vmatpush.bf16.msra.mxu2 %v3521_v8  ;;  %v3566_v8 = vld [vmem:[#allocation11 + $0x338] sm:$0xf0] }
 0x18b   :  { %v3569_v9 = vor.u32 %v4031_v7, %v3566_v8 }
 0x18c   :  { %2193 = vmatpush.bf16.msrb.mxu3 %v3629_v16  ;;  %v4064_v16 = vld [vmem:[#allocation13 + $0x30] sm:$0xff] }
 0x18d   :  { %2223 = vmatpush.bf16.msra.mxu1 %v3313_v57  ;;  %2533 = vmatpush.bf16.msrb.mxu0 %v4064_v16 }
 0x18e   :  { %2232 = vmatpush.bf16.msra.mxu2 %v3505_v17 }
 0x190   :  { %2194 = vmatpush.bf16.msrb.mxu3 %v3613_v23  ;;  %v4072_v23 = vld [vmem:[#allocation13 + $0x70] sm:$0xff] }
 0x191   :  { %2224 = vmatpush.bf16.msra.mxu1 %v3297_v24  ;;  %2534 = vmatpush.bf16.msrb.mxu0 %v4063_v18 }
 0x192   :  { %2233 = vmatpush.bf16.msra.mxu2 %v3489_v25 }
 0x193   :  { %2147 = vmatmul.bf16.vlgmr.msra.gmra.mxu3 %v4438_v56 }
 0x194   :  { %2195 = vmatpush.bf16.msrb.mxu3 %v3597_v47  ;;  %2225 = vmatmul.bf16.vlgmr.msra.gmra.mxu1 %v4426_v41  ;;  %v3425_v41 = vor.u32 %v3995_v45, %v3422_v46  ;;  %v4070_v47 = vld [vmem:[#allocation13 + $0x60] sm:$0xff]  ;;  %v1400_v45 = vperm.slane %v4459_v38, 0  ;;  %v4077_v46 = vld [vmem:[#allocation13 + $0x98] sm:$0xff] }
 0x195   :  { %2535 = vmatpush.bf16.msrb.mxu0 %v4062_v19  ;;  %2545 = vmatpush.bf16.msrb.mxu1 %v4073_v21 }
 0x196   :  { %2234 = vmatpush.bf16.msra.mxu2 %v3473_v29 }
 0x198   :  { %2196 = vmatpush.bf16.msrb.mxu3 %v3581_v34  ;;  %v4068_v34 = vld [vmem:[#allocation13 + $0x50] sm:$0xff] }
 0x199   :  { %2536 = vmatpush.bf16.msrb.mxu0 %v4061_v22  ;;  %2546 = vmatpush.bf16.msrb.mxu1 %v4072_v23  ;;  %v4083_v22 = vld [vmem:[#allocation13 + $0xc8] sm:$0xff] }
 0x19a   :  { %2235 = vmatpush.bf16.msra.mxu2 %v3457_v35  ;;  %v4080_v35 = vld [vmem:[#allocation13 + $0xb0] sm:$0xff] }
 0x19c   :  { %2197 = vmatpush.bf16.msrb.mxu3 %v3565_v39 }
 0x19d   :  { %2547 = vmatpush.bf16.msrb.mxu1 %v4071_v42 }
 0x19e   :  { %2236 = vmatpush.bf16.msra.mxu2 %v3441_v40  ;;  %v4066_v40 = vld [vmem:[#allocation13 + $0x40] sm:$0xff] }
 0x1a0   :  { %2198 = vmatpush.bf16.msrb.mxu3 %v3549_v50 }
 0x1a1   :  { %2548 = vmatpush.bf16.msrb.mxu1 %v4070_v47 }
 0x1a2   :  { %2237 = vmatpush.bf16.msra.mxu2 %v3425_v41 }
 0x1a3   :  { %2199 = vmatmul.bf16.vlgmr.msrb.gmra.mxu3 %v4438_v56 }
 0x1a4   :  { %2243 = vmatpush.bf16.msra.mxu3 %v3665_v51 }
 0x1a5   :  { %2238 = vmatmul.bf16.vlgmr.msra.gmra.mxu2 %v4430_v36  ;;  %v3550_v36 = vld [vmem:[#allocation11 + $0x318] sm:$0xf0]  ;;  %2549 = vmatpush.bf16.msrb.mxu1 %v4069_v31 }
 0x1a6   :  { %v3553_v11 = vor.u32 %v4027_v10, %v3550_v36  ;;  %2558 = vmatpush.bf16.msrb.mxu2 %v4081_v32  ;;  %v4086_v36 = vld [vmem:[#allocation13 + $0xe0] sm:$0xff]  ;;  %v1403_v32 = vperm.slane %v4459_v38, 3 }
 0x1a8   :  { %2244 = vmatpush.bf16.msra.mxu3 %v3649_v54  ;;  %v4075_v54 = vld [vmem:[#allocation13 + $0x88] sm:$0xff] }
 0x1a9   :  { %2550 = vmatpush.bf16.msrb.mxu1 %v4068_v34 }
 0x1aa   :  { %2559 = vmatpush.bf16.msrb.mxu2 %v4080_v35 }
 0x1ac   :  { %2245 = vmatpush.bf16.msra.mxu3 %v3633_v59 }
 0x1ad   :  { %2551 = vmatpush.bf16.msrb.mxu1 %v4067_v37 }
 0x1ae   :  { %2560 = vmatpush.bf16.msrb.mxu2 %v4079_v13 }
 0x1b0   :  { %2246 = vmatpush.bf16.msra.mxu3 %v3617_v63  ;;  %v4089_v63 = vld [vmem:[#allocation13 + $0xf8] sm:$0xff] }
 0x1b1   :  { %2552 = vmatpush.bf16.msrb.mxu1 %v4066_v40 }
 0x1b2   :  { %2561 = vmatpush.bf16.msrb.mxu2 %v4078_v43 }
 0x1b4   :  { %2247 = vmatpush.bf16.msra.mxu3 %v3601_v2  ;;  %v1401_v2 = vperm.slane %v4459_v38, 1 }
 0x1b6   :  { %2562 = vmatpush.bf16.msrb.mxu2 %v4077_v46 }
 0x1b8   :  { %2248 = vmatpush.bf16.msra.mxu3 %v3585_v5  ;;  %v4087_v5 = vld [vmem:[#allocation13 + $0xe8] sm:$0xff] }
 0x1ba   :  { %2563 = vmatpush.bf16.msrb.mxu2 %v4076_v49 }
 0x1bc   :  { %2249 = vmatpush.bf16.msra.mxu3 %v3569_v9 }
 0x1be   :  { %2564 = vmatpush.bf16.msrb.mxu2 %v4075_v54 }
 0x1c0   :  { %2250 = vmatpush.bf16.msra.mxu3 %v3553_v11  ;;  %v2057_v12 = vpop.f32.mrf.mxu0 }
 0x1c1   :  { %v2058_v50 = vadd.f32 %v2057_v12, %v1400_v45 }
 0x1c2   :  { %2565 = vmatpush.bf16.msrb.mxu2 %v4074_v61 }
 0x1c3   :  { %2251 = vmatmul.bf16.vlgmr.msra.gmra.mxu3 %v4438_v56  ;;  %v4060_v56 = vld [vmem:[#allocation13 + $0x10] sm:$0xff] }
 0x1c4   :  { %2537 = vmatpush.bf16.msrb.mxu0 %v4060_v56  ;;  %2571 = vmatpush.bf16.msrb.mxu3 %v4089_v63 }
 0x1c8   :  { %v2059_v14 = vpop.f32.mrf.mxu0  ;;  %2538 = vmatpush.bf16.msrb.mxu0 %v4059_v26  ;;  %2572 = vmatpush.bf16.msrb.mxu3 %v4088_v4  ;;  %v4082_v26 = vld [vmem:[#allocation13 + $0xc0] sm:$0xff] }
 0x1cc   :  { %2539 = vmatpush.bf16.msrb.mxu0 %v4058_v28  ;;  %2573 = vmatpush.bf16.msrb.mxu3 %v4087_v5 }
 0x1d0   :  { %v2070_v57 = vpop.f32.mrf.mxu1  ;;  %v4448_v17 = vpop.f32.mrf.mxu0  ;;  %2574 = vmatpush.bf16.msrb.mxu3 %v4086_v36 }
 0x1d1   :  { %v2071_v51 = vadd.f32 %v2070_v57, %v2058_v50  ;;  %v2110_v7 = vadd.f32 %v4448_v17, %v1401_v2  ;;  %v1402_v17 = vperm.slane %v4459_v38, 2  ;;  %v4102_v38 = vld [vmem:[%s4486_s8] ss:$0 sm:$0xff] }
 0x1d4   :  { %2575 = vmatpush.bf16.msrb.mxu3 %v4085_v15 }
 0x1d8   :  { %v2072_v62 = vpop.f32.mrf.mxu1  ;;  %v2111_v20 = vpop.f32.mrf.mxu0 }
 0x1d9   :  { %v4084_v62 = vld [vmem:[#allocation13 + $0xd0] sm:$0xff] }
 0x1da   :  { %2576 = vmatpush.bf16.msrb.mxu3 %v4084_v62 }
 0x1de   :  { %2577 = vmatpush.bf16.msrb.mxu3 %v4083_v22 }
 0x1e0   :  { %v4450_v24 = vpop.f32.mrf.mxu1  ;;  %v4452_v25 = vpop.f32.mrf.mxu0 }
 0x1e1   :  { %v2123_v10 = vadd.f32 %v4450_v24, %v2110_v7  ;;  %v2162_v21 = vadd.f32 %v4452_v25, %v1402_v17 }
 0x1e2   :  { %2578 = vmatpush.bf16.msrb.mxu3 %v4082_v26 }
 0x1e7   :  { %v2083_v27 = vpop.f32.mrf.mxu2 }
 0x1e8   :  { %v2124_v29 = vpop.f32.mrf.mxu1  ;;  %v2163_v30 = vpop.f32.mrf.mxu0  ;;  %v2084_v52 = vadd.f32 %v2083_v27, %v2071_v51 }
 0x1ef   :  { %v2085_v33 = vpop.f32.mrf.mxu2 }
 0x1f1   :  { %v4454_v6 = vpop.f32.mrf.mxu1 }
 0x1f2   :  { %v2175_v56 = vadd.f32 %v4454_v6, %v2162_v21 }
 0x1f8   :  { %v2135_v39 = vpop.f32.mrf.mxu2 }
 0x1f9   :  { %v2176_v44 = vpop.f32.mrf.mxu1  ;;  %v2136_v11 = vadd.f32 %v2135_v39, %v2123_v10 }
 0x200   :  { %v4462_v48 = vpop.f32.mrf.mxu0  ;;  %v2137_v41 = vpop.f32.mrf.mxu2 }
 0x201   :  { %v2214_v25 = vadd.f32 %v4462_v48, %v1403_v32 }
 0x206   :  { %v2096_v53 = vpop.f32.mrf.mxu3 }
 0x207   :  { %v2097_v55 = vadd.f32 %v2096_v53, %v2084_v52 }
 0x208   :  { %v2215_v58 = vpop.f32.mrf.mxu0  ;;  %v2187_v60 = vpop.f32.mrf.mxu2 }
 0x209   :  { %vm2256_vm9 = vcmp.gt.f32.partialorder %v2097_v55, 0.0  ;;  %v2260_v59 = vmul.f32 0.01, %v2097_v55  ;;  %v2188_v23 = vadd.f32 %v2187_v60, %v2175_v56 }
 0x20b   :  { %v2264_v0 = vsel %vm2256_vm9, %v2097_v55, %v2260_v59 }
 0x20c   :  { %v2268_v1 = vpack.c.bf16 %v2264_v0, %v2264_v0 }
 0x20e   :  { %v2098_v3 = vpop.f32.mrf.mxu3  ;;  %2540 = vmatmul.bf16.vlgmr.msrb.gmra.mxu0 %v2268_v1 }
 0x210   :  { %v2189_v9 = vpop.f32.mrf.mxu2 }
 0x211   :  { %v2226_v8 = vpop.f32.mrf.mxu1 }
 0x212   :  { %v2227_v33 = vadd.f32 %v2226_v8, %v2214_v25 }
 0x216   :  { %v2148_v12 = vpop.f32.mrf.mxu3 }
 0x217   :  { %v2149_v14 = vadd.f32 %v2148_v12, %v2136_v11 }
 0x219   :  { %vm2257_vm10 = vcmp.gt.f32.partialorder %v2149_v14, 0.0  ;;  %v2261_v16 = vmul.f32 0.01, %v2149_v14  ;;  %v2228_v57 = vpop.f32.mrf.mxu1 }
 0x21b   :  { %v2265_v18 = vsel %vm2257_vm10, %v2149_v14, %v2261_v16 }
 0x21c   :  { %v2269_v19 = vpack.c.bf16 %v2265_v18, %v2265_v18 }
 0x21e   :  { %v2150_v20 = vpop.f32.mrf.mxu3  ;;  %2553 = vmatmul.bf16.vlgmr.msrb.gmra.mxu1 %v2269_v19 }
 0x226   :  { %v2200_v24 = vpop.f32.mrf.mxu3 }
 0x227   :  { %v2201_v42 = vadd.f32 %v2200_v24, %v2188_v23 }
 0x228   :  { %v2239_v27 = vpop.f32.mrf.mxu2 }
 0x229   :  { %vm2258_vm11 = vcmp.gt.f32.partialorder %v2201_v42, 0.0  ;;  %v2262_v28 = vmul.f32 0.01, %v2201_v42  ;;  %v2240_v34 = vadd.f32 %v2239_v27, %v2227_v33 }
 0x22b   :  { %v2266_v47 = vsel %vm2258_vm11, %v2201_v42, %v2262_v28 }
 0x22c   :  { %v2270_v29 = vpack.c.bf16 %v2266_v47, %v2266_v47 }
 0x22e   :  { %v2202_v30 = vpop.f32.mrf.mxu3  ;;  %2566 = vmatmul.bf16.vlgmr.msrb.gmra.mxu2 %v2270_v29 }
 0x230   :  { %v2241_v31 = vpop.f32.mrf.mxu2 }
 0x246   :  { %v2252_v35 = vpop.f32.mrf.mxu3 }
 0x247   :  { %v2253_v6 = vadd.f32 %v2252_v35, %v2240_v34 }
 0x249   :  { %vm2259_vm12 = vcmp.gt.f32.partialorder %v2253_v6, 0.0  ;;  %v2263_v37 = vmul.f32 0.01, %v2253_v6 }
 0x24b   :  { %v2267_v13 = vsel %vm2259_vm12, %v2253_v6, %v2263_v37 }
 0x24c   :  { %v2271_v39 = vpack.c.bf16 %v2267_v13, %v2267_v13 }
 0x24e   :  { %v2254_v40 = vpop.f32.mrf.mxu3  ;;  %2579 = vmatmul.bf16.vlgmr.msrb.gmra.mxu3 %v2271_v39 }
 0x28b   :  { %v2541_v43 = vpop.f32.mrf.mxu0 }
 0x28c   :  { %v2542_v48 = vadd.f32 %v4102_v38, %v2541_v43 }
 0x293   :  { %v2543_v44 = vpop.f32.mrf.mxu0 }
 0x29b   :  { %v2554_v45 = vpop.f32.mrf.mxu1 }
 0x29c   :  { %v2555_v41 = vadd.f32 %v2554_v45, %v2542_v48 }
 0x2a3   :  { %v2556_v46 = vpop.f32.mrf.mxu1 }
 0x2b1   :  { %v2567_v49 = vpop.f32.mrf.mxu2 }
 0x2b2   :  { %v2568_v51 = vadd.f32 %v2567_v49, %v2555_v41 }
 0x2b9   :  { %v2569_v50 = vpop.f32.mrf.mxu2 }
 0x2d1   :  { %v2580_v52 = vpop.f32.mrf.mxu3 }
 0x2d2   :  { %v2581_v53 = vadd.f32 %v2580_v52, %v2568_v51 }
 0x2d4   :  { %4103 = vtanh.f32 %v2581_v53 }
 0x2d9   :  { %v2582_v54 = vpop.f32.mrf.mxu3 }
 0x2da   :  { %v4104_v55 = vpop.eup %4103 }
 0x2db   :  { %2585 = vst [vmem:[#allocation14] sm:$0xff] %v4104_v55 }
 0x2dc   :  { %2596 = dma.vmem_to_hbm [thread:$0]  %s2592_s1, 128, %s2594_s26, [#allocation4]  }
 0x2dd   :  { %4305 = dma.done.wait [#allocation4], 128  }
 0x2de   :  { %4306 = vsyncadd [#allocation4], 4294967168 }
 0x2df   :  { %2601 = vsyncpa [#allocation3], 1 }
 0x2e0   :  { %2602 = vsyncpa [#allocation6], 1 }
 0x2e1   :  { %2603 = vsyncpa [#allocation9], 1 }
 0x2e2   :  { %2604 = vsyncpa [#allocation12], 1 }
 0x2e3   :  { %2605 = vsyncpa [#allocation4], 1 }

// kernel: tpu_custom_call.1
= control target key start
LH: loop header
LB: loop body
LE: loop exit
PB: predicated region body
PF: predicated region fallthrough
CT: control target
= control target key end

     0   :  { %14 = vsyncpa [#allocation3], 0  ;;  %s4478_s0 = inlined_call_operand.hbm [shape: bf16[8,32], index: 0, kind: input, shape index: {}]   ;;  %s4479_s1 = inlined_call_operand.hbm [shape: bf16[32,512], index: 1, kind: input, shape index: {}]   ;;  %s4480_s2 = inlined_call_operand.hbm [shape: f32[1,512], index: 2, kind: input, shape index: {}]   ;;  %s4481_s3 = inlined_call_operand.hbm [shape: bf16[512,512], index: 3, kind: input, shape index: {}]   ;;  %s4482_s4 = inlined_call_operand.hbm [shape: f32[1,512], index: 4, kind: input, shape index: {}]   ;;  %s4483_s5 = inlined_call_operand.hbm [shape: bf16[512,512], index: 5, kind: input, shape index: {}]   ;;  %s4484_s6 = inlined_call_operand.vmem [shape: f32[1,512], index: 6, kind: input, shape index: {}]   ;;  %s4485_s7 = inlined_call_operand.hbm [shape: bf16[512,128], index: 7, kind: input, shape index: {}]   ;;  %s4486_s8 = inlined_call_operand.vmem [shape: f32[1,128], index: 8, kind: input, shape index: {}]   ;;  %s4487_s9 = inlined_call_operand.hbm [shape: f32[8,128], index: 9, kind: output, shape index: {}]  }
   0x1   :  { %15 = vsyncpa [#allocation6], 0 }
   0x2   :  { %16 = vsyncpa [#allocation9], 0 }
   0x3   :  { %17 = vsyncpa [#allocation12], 0  ;;  %s34_s11 = sshll.u32 %s4479_s1, 4  ;;  %s35_s11 = int_to_ptr.hbm [resolvable:$true] %s34_s11 }
   0x4   :  { %18 = vsyncpa [#allocation4], 0  ;;  %s4307_s12 = smov [#allocation5]   ;;  %s58_s16 = sshll.u32 %s4481_s3, 4  ;;  %s59_s16 = int_to_ptr.hbm [resolvable:$true] %s58_s16 }
   0x5   :  { %s36_s13 = sshll.u32 %s4307_s12, 4  ;;  %s4308_s17 = smov 256   ;;  %s37_s13 = int_to_ptr.vmem [resolvable:$true] %s36_s13 }
   0x6   :  { %s4309_s18 = smov 16   ;;  %s4310_s19 = smov [#allocation8]  }
   0x7   :  { %42 = dma.hbm_to_vmem [thread:$0]  %s35_s11, 1024, %s37_s13, [#allocation6], %s4308_s17, %s4308_s17, %s4309_s18  }
   0x8   :  { %s60_s20 = sshll.u32 %s4310_s19, 4  ;;  %s82_s23 = sshll.u32 %s4483_s5, 4  ;;  %s61_s20 = int_to_ptr.vmem [resolvable:$true] %s60_s20  ;;  %s83_s23 = int_to_ptr.hbm [resolvable:$true] %s82_s23 }
   0x9   :  { %66 = dma.hbm_to_vmem [thread:$0]  %s59_s16, 16384, %s61_s20, [#allocation9], %s4308_s17, %s4308_s17, %s4309_s18  }
   0xa   :  { %s24_s25 = sshll.u32 %s4478_s0, 4  ;;  %s4311_s26 = smov [#allocation11]   ;;  %s25_s25 = int_to_ptr.hbm [resolvable:$true] %s24_s25 }
   0xb   :  { %s84_s27 = sshll.u32 %s4311_s26, 4  ;;  %s4312_s3 = smov [#allocation2]   ;;  %s85_s27 = int_to_ptr.vmem [resolvable:$true] %s84_s27 }
   0xc   :  { %90 = dma.hbm_to_vmem [thread:$0]  %s83_s23, 16384, %s85_s27, [#allocation12], %s4308_s17, %s4308_s17, %s4309_s18  }
   0xd   :  { %s26_s28 = sshll.u32 %s4312_s3, 4  ;;  %s48_s10 = sshll.u32 %s4480_s2, 4  ;;  %s27_s28 = int_to_ptr.vmem [resolvable:$true] %s26_s28  ;;  %s49_s10 = int_to_ptr.hbm [resolvable:$true] %s48_s10 }
   0xe   :  { %29 = dma.hbm_to_vmem [thread:$0]  %s25_s25, 64, %s27_s28, [#allocation3]  }
   0xf   :  { %s72_s12 = sshll.u32 %s4482_s4, 4  ;;  %s4313_s13 = smov [#allocation7]   ;;  %s73_s12 = int_to_ptr.hbm [resolvable:$true] %s72_s12 }
  0x10   :  { %s50_s0 = sshll.u32 %s4313_s13, 4  ;;  %s4314_s14 = smov [#allocation10]   ;;  %s51_s0 = int_to_ptr.vmem [resolvable:$true] %s50_s0 }
  0x11   :  { %53 = dma.hbm_to_vmem [thread:$0]  %s49_s10, 64, %s51_s0, [#allocation6]  }
  0x12   :  { %s74_s15 = sshll.u32 %s4314_s14, 4  ;;  %s97_s18 = sshll.u32 %s4485_s7, 4  ;;  %s75_s15 = int_to_ptr.vmem [resolvable:$true] %s74_s15  ;;  %s98_s18 = int_to_ptr.hbm [resolvable:$true] %s97_s18 }
  0x13   :  { %77 = dma.hbm_to_vmem [thread:$0]  %s73_s12, 64, %s75_s15, [#allocation9]  }
  0x14   :  { %s4315_s2 = smov [#allocation13]   ;;  %s4316_s20 = smov 64  }
  0x15   :  { %s99_s19 = sshll.u32 %s4315_s2, 4  ;;  %s4317_s21 = smov 4   ;;  %s100_s19 = int_to_ptr.vmem [resolvable:$true] %s99_s19 }
  0x16   :  { %105 = dma.hbm_to_vmem [thread:$0]  %s98_s18, 4096, %s100_s19, [#allocation12], %s4316_s20, %s4316_s20, %s4317_s21  }
  0x17   :  { %4297 = dma.done.wait [#allocation3], 64  }
  0x18   :  { %4298 = vsyncadd [#allocation3], 4294967232 }
  0x19   :  { %4299 = dma.done.wait [#allocation6], 1088  }
  0x1a   :  { %4300 = vsyncadd [#allocation6], 4294966208 }
  0x1b   :  { %4301 = dma.done.wait [#allocation9], 16448  }
  0x1c   :  { %4302 = vsyncadd [#allocation9], 4294950848 }
  0x1d   :  { %4303 = dma.done.wait [#allocation12], 20480  }
  0x1e   :  { %4304 = vsyncadd [#allocation12], 4294946816  ;;  %vm196_vm0 = vcmask 261120   ;;  %v2624_v0 = vld [vmem:[#allocation5 + $0x20] sm:$0xf]  ;;  %s4318_s23 = smov [#allocation14]  }
  0x1f   :  { %v3800_v1 = vld [vmem:[#allocation5 + $0x2c] sm:$0xf0]  ;;  %v3798_v2 = vld [vmem:[#allocation5 + $0x24] sm:$0xf]  ;;  %v2626_v4 = vld [vmem:[#allocation5 + $0x30] sm:$0xf0] }
  0x20   :  { %v2625_v3 = vor.u32 %v3800_v1, %v2624_v0  ;;  %v2632_v5 = vld [vmem:[#allocation5 + $0x28] sm:$0xf]  ;;  %v3801_v6 = vld [vmem:[#allocation5 + $0x34] sm:$0xf0]  ;;  %v2629_v7 = vor.u32 %v3798_v2, %v2626_v4  ;;  %v3799_v9 = vld [vmem:[#allocation5 + $0x2c] sm:$0xf] }
  0x21   :  { %v2633_v8 = vor.u32 %v3801_v6, %v2632_v5  ;;  %v2634_v10 = vld [vmem:[#allocation5 + $0x38] sm:$0xf0]  ;;  %v2608_v11 = vld [vmem:[#allocation5] sm:$0xf]  ;;  %v3796_v13 = vld [vmem:[#allocation5 + $0xc] sm:$0xf0] }
  0x22   :  { %206 = vmatpush.bf16.msra.mxu0 %v2625_v3  ;;  %v2637_v12 = vor.u32 %v3799_v9, %v2634_v10  ;;  %v3794_v14 = vld [vmem:[#allocation5 + $0x4] sm:$0xf]  ;;  %v2610_v15 = vld [vmem:[#allocation5 + $0x10] sm:$0xf0]  ;;  %219 = vmatpush.bf16.msra.mxu1 %v2629_v7  ;;  %v2609_v16 = vor.u32 %v3796_v13, %v2608_v11  ;;  %v2616_v18 = vld [vmem:[#allocation5 + $0x8] sm:$0xf] }
  0x23   :  { %232 = vmatpush.bf16.msra.mxu2 %v2633_v8  ;;  %v2613_v17 = vor.u32 %v3794_v14, %v2610_v15  ;;  %v3797_v19 = vld [vmem:[#allocation5 + $0x14] sm:$0xf0]  ;;  %v3795_v20 = vld [vmem:[#allocation5 + $0xc] sm:$0xf]  ;;  %v2618_v22 = vld [vmem:[#allocation5 + $0x18] sm:$0xf0] }
  0x24   :  { %245 = vmatpush.bf16.msra.mxu3 %v2637_v12  ;;  %v2617_v21 = vor.u32 %v3797_v19, %v2616_v18  ;;  %v137_v23 = vld [vmem:[#allocation2] sm:$0xf]  ;;  %v2756_v24 = vld [vmem:[#allocation8 + $0xe0] sm:$0xf]  ;;  %v2621_v25 = vor.u32 %v3795_v20, %v2618_v22  ;;  %v3832_v26 = vld [vmem:[#allocation8 + $0xec] sm:$0xf0] }
  0x25   :  { %v2884_v27 = vld [vmem:[#allocation8 + $0x1e0] sm:$0xf]  ;;  %v3864_v28 = vld [vmem:[#allocation8 + $0x1ec] sm:$0xf0]  ;;  %v2757_v29 = vor.u32 %v3832_v26, %v2756_v24  ;;  %s2591_s1 = sshll.u32 %s4318_s23, 4  ;;  %s2593_s26 = sshll.u32 %s4487_s9, 4  ;;  %s2592_s1 = int_to_ptr.vmem [resolvable:$true] %s2591_s1  ;;  %s2594_s26 = int_to_ptr.hbm [resolvable:$true] %s2593_s26 }
  0x26   :  { %207 = vmatpush.bf16.msra.mxu0 %v2609_v16  ;;  %v2885_v30 = vor.u32 %v3864_v28, %v2884_v27  ;;  %v2740_v31 = vld [vmem:[#allocation8 + $0xc0] sm:$0xf]  ;;  %v3828_v32 = vld [vmem:[#allocation8 + $0xcc] sm:$0xf0]  ;;  %220 = vmatpush.bf16.msra.mxu1 %v2613_v17 }
  0x27   :  { %v2868_v33 = vld [vmem:[#allocation8 + $0x1c0] sm:$0xf]  ;;  %233 = vmatpush.bf16.msra.mxu2 %v2617_v21  ;;  %v3860_v34 = vld [vmem:[#allocation8 + $0x1cc] sm:$0xf0]  ;;  %v2741_v37 = vor.u32 %v3828_v32, %v2740_v31 }
  0x28   :  { %v3012_v35 = vld [vmem:[#allocation8 + $0x2e0] sm:$0xf]  ;;  %v3896_v36 = vld [vmem:[#allocation8 + $0x2ec] sm:$0xf0]  ;;  %246 = vmatpush.bf16.msra.mxu3 %v2621_v25  ;;  %v2869_v42 = vor.u32 %v3860_v34, %v2868_v33 }
  0x29   :  { %v3013_v38 = vor.u32 %v3896_v36, %v3012_v35  ;;  %v3140_v39 = vld [vmem:[#allocation8 + $0x3e0] sm:$0xf]  ;;  %v3928_v40 = vld [vmem:[#allocation8 + $0x3ec] sm:$0xf0]  ;;  %2638 = vmatmul.msk.bf16.vlgmr.msra.gmra.mxu0 %vm196_vm0, %v137_v23  ;;  %2639 = vmatmul.msk.bf16.vlgmr.msra.gmra.mxu1 %vm196_vm0, %v137_v23 }
  0x2a   :  { %1046 = vmatpush.bf16.msrb.mxu0 %v2757_v29  ;;  %v2724_v41 = vld [vmem:[#allocation8 + $0xa0] sm:$0xf]  ;;  %1059 = vmatpush.bf16.msrb.mxu1 %v2885_v30  ;;  %v3141_v43 = vor.u32 %v3928_v40, %v3140_v39  ;;  %v3824_v44 = vld [vmem:[#allocation8 + $0xac] sm:$0xf0] }
  0x2b   :  { %v2852_v45 = vld [vmem:[#allocation8 + $0x1a0] sm:$0xf]  ;;  %v3856_v46 = vld [vmem:[#allocation8 + $0x1ac] sm:$0xf0]  ;;  %2640 = vmatmul.msk.bf16.vlgmr.msra.gmra.mxu2 %vm196_vm0, %v137_v23  ;;  %2641 = vmatmul.msk.bf16.vlgmr.msra.gmra.mxu3 %vm196_vm0, %v137_v23  ;;  %v2725_v52 = vor.u32 %v3824_v44, %v2724_v41 }
  0x2c   :  { %v2996_v47 = vld [vmem:[#allocation8 + $0x2c0] sm:$0xf]  ;;  %v3892_v48 = vld [vmem:[#allocation8 + $0x2cc] sm:$0xf0]  ;;  %1072 = vmatpush.bf16.msrb.mxu2 %v3013_v38  ;;  %1085 = vmatpush.bf16.msrb.mxu3 %v3141_v43  ;;  %v2853_v57 = vor.u32 %v3856_v46, %v2852_v45 }
  0x2d   :  { %v3124_v49 = vld [vmem:[#allocation8 + $0x3c0] sm:$0xf]  ;;  %v2997_v50 = vor.u32 %v3892_v48, %v2996_v47  ;;  %v3924_v51 = vld [vmem:[#allocation8 + $0x3cc] sm:$0xf0]  ;;  %v3830_v47 = vld [vmem:[#allocation8 + $0xe4] sm:$0xf] }
  0x2e   :  { %1047 = vmatpush.bf16.msrb.mxu0 %v2741_v37  ;;  %v3125_v53 = vor.u32 %v3924_v51, %v3124_v49  ;;  %v2708_v54 = vld [vmem:[#allocation8 + $0x80] sm:$0xf]  ;;  %v3820_v55 = vld [vmem:[#allocation8 + $0x8c] sm:$0xf0]  ;;  %1060 = vmatpush.bf16.msrb.mxu1 %v2869_v42  ;;  %v2758_v48 = vld [vmem:[#allocation8 + $0xf0] sm:$0xf0] }
  0x2f   :  { %v2980_v56 = vld [vmem:[#allocation8 + $0x2a0] sm:$0xf]  ;;  %v3888_v58 = vld [vmem:[#allocation8 + $0x2ac] sm:$0xf0]  ;;  %v2709_v0 = vor.u32 %v3820_v55, %v2708_v54  ;;  %v3862_v49 = vld [vmem:[#allocation8 + $0x1e4] sm:$0xf] }
  0x30   :  { %v3108_v59 = vld [vmem:[#allocation8 + $0x3a0] sm:$0xf]  ;;  %v3920_v60 = vld [vmem:[#allocation8 + $0x3ac] sm:$0xf0]  ;;  %1073 = vmatpush.bf16.msrb.mxu2 %v2997_v50  ;;  %v2981_v63 = vor.u32 %v3888_v58, %v2980_v56  ;;  %1086 = vmatpush.bf16.msrb.mxu3 %v3125_v53  ;;  %v2886_v50 = vld [vmem:[#allocation8 + $0x1f0] sm:$0xf0] }
  0x31   :  { %v2836_v61 = vld [vmem:[#allocation8 + $0x180] sm:$0xf]  ;;  %v3852_v62 = vld [vmem:[#allocation8 + $0x18c] sm:$0xf0]  ;;  %v3109_v1 = vor.u32 %v3920_v60, %v3108_v59  ;;  %v3826_v54 = vld [vmem:[#allocation8 + $0xc4] sm:$0xf]  ;;  %v2761_v59 = vor.u32 %v3830_v47, %v2758_v48 }
  0x32   :  { %1048 = vmatpush.bf16.msrb.mxu0 %v2725_v52  ;;  %v2692_v2 = vld [vmem:[#allocation8 + $0x60] sm:$0xf]  ;;  %v3884_v4 = vld [vmem:[#allocation8 + $0x28c] sm:$0xf0]  ;;  %1061 = vmatpush.bf16.msrb.mxu1 %v2853_v57  ;;  %v2837_v5 = vor.u32 %v3852_v62, %v2836_v61  ;;  %v3894_v61 = vld [vmem:[#allocation8 + $0x2e4] sm:$0xf] }
  0x33   :  { %v2964_v3 = vld [vmem:[#allocation8 + $0x280] sm:$0xf]  ;;  %v3816_v6 = vld [vmem:[#allocation8 + $0x6c] sm:$0xf0]  ;;  %v3014_v62 = vld [vmem:[#allocation8 + $0x2f0] sm:$0xf0] }
  0x34   :  { %v3092_v7 = vld [vmem:[#allocation8 + $0x380] sm:$0xf]  ;;  %v3916_v8 = vld [vmem:[#allocation8 + $0x38c] sm:$0xf0]  ;;  %1074 = vmatpush.bf16.msrb.mxu2 %v2981_v63  ;;  %v2965_v11 = vor.u32 %v3884_v4, %v2964_v3  ;;  %1087 = vmatpush.bf16.msrb.mxu3 %v3109_v1  ;;  %v2693_v12 = vor.u32 %v3816_v6, %v2692_v2  ;;  %v2889_v63 = vor.u32 %v3862_v49, %v2886_v50  ;;  %v3926_v1 = vld [vmem:[#allocation8 + $0x3e4] sm:$0xf] }
  0x35   :  { %v2820_v9 = vld [vmem:[#allocation8 + $0x160] sm:$0xf]  ;;  %v3848_v10 = vld [vmem:[#allocation8 + $0x16c] sm:$0xf0]  ;;  %v3093_v13 = vor.u32 %v3916_v8, %v3092_v7  ;;  %v3142_v2 = vld [vmem:[#allocation8 + $0x3f0] sm:$0xf0]  ;;  %v3017_v7 = vor.u32 %v3894_v61, %v3014_v62 }
  0x36   :  { %1049 = vmatpush.bf16.msrb.mxu0 %v2709_v0  ;;  %v2676_v14 = vld [vmem:[#allocation8 + $0x40] sm:$0xf]  ;;  %v3880_v16 = vld [vmem:[#allocation8 + $0x26c] sm:$0xf0]  ;;  %1062 = vmatpush.bf16.msrb.mxu1 %v2837_v5  ;;  %v2821_v17 = vor.u32 %v3848_v10, %v2820_v9  ;;  %v2742_v0 = vld [vmem:[#allocation8 + $0xd0] sm:$0xf0]  ;;  %v3145_v9 = vor.u32 %v3926_v1, %v3142_v2 }
  0x37   :  { %v2948_v15 = vld [vmem:[#allocation8 + $0x260] sm:$0xf]  ;;  %v3812_v18 = vld [vmem:[#allocation8 + $0x4c] sm:$0xf0]  ;;  %v3858_v3 = vld [vmem:[#allocation8 + $0x1c4] sm:$0xf]  ;;  %v2745_v8 = vor.u32 %v3826_v54, %v2742_v0 }
  0x38   :  { %v3076_v19 = vld [vmem:[#allocation8 + $0x360] sm:$0xf]  ;;  %v3912_v20 = vld [vmem:[#allocation8 + $0x36c] sm:$0xf0]  ;;  %1075 = vmatpush.bf16.msrb.mxu2 %v2965_v11  ;;  %v2949_v23 = vor.u32 %v3880_v16, %v2948_v15  ;;  %1088 = vmatpush.bf16.msrb.mxu3 %v3093_v13  ;;  %v2677_v24 = vor.u32 %v3812_v18, %v2676_v14  ;;  %v2870_v4 = vld [vmem:[#allocation8 + $0x1d0] sm:$0xf0] }
  0x39   :  { %v2804_v21 = vld [vmem:[#allocation8 + $0x140] sm:$0xf]  ;;  %v3844_v22 = vld [vmem:[#allocation8 + $0x14c] sm:$0xf0]  ;;  %v3077_v25 = vor.u32 %v3912_v20, %v3076_v19  ;;  %v3822_v10 = vld [vmem:[#allocation8 + $0xa4] sm:$0xf]  ;;  %v2873_v13 = vor.u32 %v3858_v3, %v2870_v4 }
  0x3a   :  { %1050 = vmatpush.bf16.msrb.mxu0 %v2693_v12  ;;  %v2660_v26 = vld [vmem:[#allocation8 + $0x20] sm:$0xf]  ;;  %v3876_v28 = vld [vmem:[#allocation8 + $0x24c] sm:$0xf0]  ;;  %1063 = vmatpush.bf16.msrb.mxu1 %v2821_v17  ;;  %v2805_v29 = vor.u32 %v3844_v22, %v2804_v21  ;;  %v3890_v11 = vld [vmem:[#allocation8 + $0x2c4] sm:$0xf] }
  0x3b   :  { %v2932_v27 = vld [vmem:[#allocation8 + $0x240] sm:$0xf]  ;;  %v3808_v30 = vld [vmem:[#allocation8 + $0x2c] sm:$0xf0]  ;;  %v2998_v12 = vld [vmem:[#allocation8 + $0x2d0] sm:$0xf0] }
  0x3c   :  { %v3060_v31 = vld [vmem:[#allocation8 + $0x340] sm:$0xf]  ;;  %v3908_v32 = vld [vmem:[#allocation8 + $0x34c] sm:$0xf0]  ;;  %1076 = vmatpush.bf16.msrb.mxu2 %v2949_v23  ;;  %v2933_v35 = vor.u32 %v3876_v28, %v2932_v27  ;;  %1089 = vmatpush.bf16.msrb.mxu3 %v3077_v25  ;;  %v2661_v37 = vor.u32 %v3808_v30, %v2660_v26  ;;  %v2726_v14 = vld [vmem:[#allocation8 + $0xb0] sm:$0xf0]  ;;  %v3001_v19 = vor.u32 %v3890_v11, %v2998_v12 }
  0x3d   :  { %v2788_v33 = vld [vmem:[#allocation8 + $0x120] sm:$0xf]  ;;  %v3840_v34 = vld [vmem:[#allocation8 + $0x12c] sm:$0xf0]  ;;  %v3061_v38 = vor.u32 %v3908_v32, %v3060_v31  ;;  %v3922_v15 = vld [vmem:[#allocation8 + $0x3c4] sm:$0xf]  ;;  %v2729_v20 = vor.u32 %v3822_v10, %v2726_v14 }
  0x3e   :  { %v2644_v36 = vld [vmem:[#allocation8] sm:$0xf]  ;;  %1051 = vmatpush.bf16.msrb.mxu0 %v2677_v24  ;;  %v3804_v39 = vld [vmem:[#allocation8 + $0xc] sm:$0xf0]  ;;  %1064 = vmatpush.bf16.msrb.mxu1 %v2805_v29  ;;  %v2789_v42 = vor.u32 %v3840_v34, %v2788_v33  ;;  %v3126_v16 = vld [vmem:[#allocation8 + $0x3d0] sm:$0xf0] }
  0x3f   :  { %v2916_v40 = vld [vmem:[#allocation8 + $0x220] sm:$0xf]  ;;  %v3872_v41 = vld [vmem:[#allocation8 + $0x22c] sm:$0xf0]  ;;  %v2645_v52 = vor.u32 %v3804_v39, %v2644_v36  ;;  %v3854_v17 = vld [vmem:[#allocation8 + $0x1a4] sm:$0xf]  ;;  %v3129_v21 = vor.u32 %v3922_v15, %v3126_v16 }
  0x40   :  { %v2772_v43 = vld [vmem:[#allocation8 + $0x100] sm:$0xf]  ;;  %v3904_v45 = vld [vmem:[#allocation8 + $0x32c] sm:$0xf0]  ;;  %1077 = vmatpush.bf16.msrb.mxu2 %v2933_v35  ;;  %v2917_v51 = vor.u32 %v3872_v41, %v2916_v40  ;;  %1090 = vmatpush.bf16.msrb.mxu3 %v3061_v38  ;;  %v2854_v18 = vld [vmem:[#allocation8 + $0x1b0] sm:$0xf0] }
  0x41   :  { %v3044_v44 = vld [vmem:[#allocation8 + $0x320] sm:$0xf]  ;;  %v3836_v46 = vld [vmem:[#allocation8 + $0x10c] sm:$0xf0]  ;;  %v3818_v22 = vld [vmem:[#allocation8 + $0x84] sm:$0xf]  ;;  %v2857_v25 = vor.u32 %v3854_v17, %v2854_v18 }
  0x42   :  { %1052 = vmatpush.bf16.msrb.mxu0 %v2661_v37  ;;  %v3045_v53 = vor.u32 %v3904_v45, %v3044_v44  ;;  %v2900_v55 = vld [vmem:[#allocation8 + $0x200] sm:$0xf]  ;;  %v3868_v56 = vld [vmem:[#allocation8 + $0x20c] sm:$0xf0]  ;;  %1065 = vmatpush.bf16.msrb.mxu1 %v2789_v42  ;;  %v2773_v58 = vor.u32 %v3836_v46, %v2772_v43  ;;  %v3886_v23 = vld [vmem:[#allocation8 + $0x2a4] sm:$0xf] }
  0x43   :  { %v3028_v57 = vld [vmem:[#allocation8 + $0x300] sm:$0xf]  ;;  %v3900_v60 = vld [vmem:[#allocation8 + $0x30c] sm:$0xf0]  ;;  %v2901_v5 = vor.u32 %v3868_v56, %v2900_v55  ;;  %v2982_v24 = vld [vmem:[#allocation8 + $0x2b0] sm:$0xf0] }
  0x44   :  { %1078 = vmatpush.bf16.msrb.mxu2 %v2917_v51  ;;  %1091 = vmatpush.bf16.msrb.mxu3 %v3045_v53  ;;  %v3029_v6 = vor.u32 %v3900_v60, %v3028_v57  ;;  %v2710_v26 = vld [vmem:[#allocation8 + $0x90] sm:$0xf0]  ;;  %v3918_v27 = vld [vmem:[#allocation8 + $0x3a4] sm:$0xf]  ;;  %v2985_v31 = vor.u32 %v3886_v23, %v2982_v24 }
  0x45   :  { %v3110_v28 = vld [vmem:[#allocation8 + $0x3b0] sm:$0xf0]  ;;  %v3850_v29 = vld [vmem:[#allocation8 + $0x184] sm:$0xf]  ;;  %v2713_v32 = vor.u32 %v3818_v22, %v2710_v26 }
  0x46   :  { %1053 = vmatpush.bf16.msrb.mxu0 %v2645_v52  ;;  %1066 = vmatpush.bf16.msrb.mxu1 %v2773_v58  ;;  %v2838_v30 = vld [vmem:[#allocation8 + $0x190] sm:$0xf0]  ;;  %v3113_v33 = vor.u32 %v3918_v27, %v3110_v28  ;;  %v3814_v34 = vld [vmem:[#allocation8 + $0x64] sm:$0xf] }
  0x47   :  { %v3882_v35 = vld [vmem:[#allocation8 + $0x284] sm:$0xf]  ;;  %v2966_v36 = vld [vmem:[#allocation8 + $0x290] sm:$0xf0]  ;;  %v2841_v37 = vor.u32 %v3850_v29, %v2838_v30 }
  0x48   :  { %1079 = vmatpush.bf16.msrb.mxu2 %v2901_v5  ;;  %1092 = vmatpush.bf16.msrb.mxu3 %v3029_v6  ;;  %v2694_v38 = vld [vmem:[#allocation8 + $0x70] sm:$0xf0]  ;;  %v3914_v39 = vld [vmem:[#allocation8 + $0x384] sm:$0xf]  ;;  %v2969_v43 = vor.u32 %v3882_v35, %v2966_v36  ;;  %v3865_v36 = vld [vmem:[#allocation8 + $0x1f4] sm:$0xf0] }
  0x49   :  { %v3094_v40 = vld [vmem:[#allocation8 + $0x390] sm:$0xf0]  ;;  %v3846_v41 = vld [vmem:[#allocation8 + $0x164] sm:$0xf]  ;;  %v2697_v44 = vor.u32 %v3814_v34, %v2694_v38  ;;  %v2892_v34 = vld [vmem:[#allocation8 + $0x1e8] sm:$0xf] }
  0x4a   :  { %1098 = vmatpush.bf16.msra.mxu0 %v2761_v59  ;;  %1111 = vmatpush.bf16.msra.mxu1 %v2889_v63  ;;  %v2822_v42 = vld [vmem:[#allocation8 + $0x170] sm:$0xf0]  ;;  %v3097_v45 = vor.u32 %v3914_v39, %v3094_v40  ;;  %v3810_v47 = vld [vmem:[#allocation8 + $0x44] sm:$0xf] }
  0x4b   :  { %v2825_v46 = vor.u32 %v3846_v41, %v2822_v42  ;;  %v2678_v48 = vld [vmem:[#allocation8 + $0x50] sm:$0xf0]  ;;  %v3842_v49 = vld [vmem:[#allocation8 + $0x144] sm:$0xf] }
  0x4c   :  { %1124 = vmatpush.bf16.msra.mxu2 %v3017_v7  ;;  %1137 = vmatpush.bf16.msra.mxu3 %v3145_v9  ;;  %v2806_v50 = vld [vmem:[#allocation8 + $0x150] sm:$0xf0]  ;;  %v2681_v51 = vor.u32 %v3810_v47, %v2678_v48  ;;  %v3878_v53 = vld [vmem:[#allocation8 + $0x264] sm:$0xf] }
  0x4d   :  { %v2809_v52 = vor.u32 %v3842_v49, %v2806_v50  ;;  %v2950_v54 = vld [vmem:[#allocation8 + $0x270] sm:$0xf0]  ;;  %v3910_v55 = vld [vmem:[#allocation8 + $0x364] sm:$0xf]  ;;  %v2876_v49 = vld [vmem:[#allocation8 + $0x1c8] sm:$0xf] }
  0x4e   :  { %1099 = vmatpush.bf16.msra.mxu0 %v2745_v8  ;;  %1112 = vmatpush.bf16.msra.mxu1 %v2873_v13  ;;  %v2953_v56 = vor.u32 %v3878_v53, %v2950_v54  ;;  %v3078_v57 = vld [vmem:[#allocation8 + $0x370] sm:$0xf0]  ;;  %v3806_v59 = vld [vmem:[#allocation8 + $0x24] sm:$0xf]  ;;  %v3861_v50 = vld [vmem:[#allocation8 + $0x1d4] sm:$0xf0] }
  0x4f   :  { %v3081_v58 = vor.u32 %v3910_v55, %v3078_v57  ;;  %v2662_v60 = vld [vmem:[#allocation8 + $0x30] sm:$0xf0]  ;;  %v3838_v61 = vld [vmem:[#allocation8 + $0x124] sm:$0xf]  ;;  %v3020_v54 = vld [vmem:[#allocation8 + $0x2e8] sm:$0xf] }
  0x50   :  { %1125 = vmatpush.bf16.msra.mxu2 %v3001_v19  ;;  %1138 = vmatpush.bf16.msra.mxu3 %v3129_v21  ;;  %v2665_v62 = vor.u32 %v3806_v59, %v2662_v60  ;;  %v2790_v63 = vld [vmem:[#allocation8 + $0x130] sm:$0xf0]  ;;  %v3874_v1 = vld [vmem:[#allocation8 + $0x244] sm:$0xf]  ;;  %v3897_v55 = vld [vmem:[#allocation8 + $0x2f4] sm:$0xf0] }
  0x51   :  { %v2793_v0 = vor.u32 %v3838_v61, %v2790_v63  ;;  %v2934_v2 = vld [vmem:[#allocation8 + $0x250] sm:$0xf0]  ;;  %v3906_v3 = vld [vmem:[#allocation8 + $0x344] sm:$0xf]  ;;  %v3929_v60 = vld [vmem:[#allocation8 + $0x3f4] sm:$0xf0] }
  0x52   :  { %1100 = vmatpush.bf16.msra.mxu0 %v2729_v20  ;;  %1113 = vmatpush.bf16.msra.mxu1 %v2857_v25  ;;  %v2937_v4 = vor.u32 %v3874_v1, %v2934_v2  ;;  %v3062_v5 = vld [vmem:[#allocation8 + $0x350] sm:$0xf0]  ;;  %v3802_v7 = vld [vmem:[#allocation8 + $0x4] sm:$0xf]  ;;  %v146_v25 = vld [vmem:[#allocation7] sm:$0xf] }
  0x53   :  { %v3065_v6 = vor.u32 %v3906_v3, %v3062_v5  ;;  %v2646_v8 = vld [vmem:[#allocation8 + $0x10] sm:$0xf0]  ;;  %v3834_v9 = vld [vmem:[#allocation8 + $0x104] sm:$0xf]  ;;  %v148_v26 = vperm.slane %v146_v25, 0  ;;  %v149_v27 = vperm.slane %v146_v25, 1  ;;  %v3021_v5 = vor.u32 %v3897_v55, %v3020_v54 }
  0x54   :  { %1126 = vmatpush.bf16.msra.mxu2 %v2985_v31  ;;  %1139 = vmatpush.bf16.msra.mxu3 %v3113_v33  ;;  %v2649_v10 = vor.u32 %v3802_v7, %v2646_v8  ;;  %v2774_v11 = vld [vmem:[#allocation8 + $0x110] sm:$0xf0]  ;;  %v3870_v13 = vld [vmem:[#allocation8 + $0x224] sm:$0xf]  ;;  %v3833_v33 = vld [vmem:[#allocation8 + $0xf4] sm:$0xf0] }
  0x55   :  { %v2777_v12 = vor.u32 %v3834_v9, %v2774_v11  ;;  %v2918_v14 = vld [vmem:[#allocation8 + $0x230] sm:$0xf0]  ;;  %v3902_v15 = vld [vmem:[#allocation8 + $0x324] sm:$0xf]  ;;  %v150_v38 = vperm.slane %v146_v25, 2  ;;  %v151_v40 = vperm.slane %v146_v25, 3 }
  0x56   :  { %1101 = vmatpush.bf16.msra.mxu0 %v2713_v32  ;;  %1114 = vmatpush.bf16.msra.mxu1 %v2841_v37  ;;  %v2921_v16 = vor.u32 %v3870_v13, %v2918_v14  ;;  %v3046_v17 = vld [vmem:[#allocation8 + $0x330] sm:$0xf0]  ;;  %v3866_v19 = vld [vmem:[#allocation8 + $0x204] sm:$0xf]  ;;  %v2764_v32 = vld [vmem:[#allocation8 + $0xe8] sm:$0xf] }
  0x57   :  { %v3049_v18 = vor.u32 %v3902_v15, %v3046_v17  ;;  %v2902_v20 = vld [vmem:[#allocation8 + $0x210] sm:$0xf0]  ;;  %v3898_v22 = vld [vmem:[#allocation8 + $0x304] sm:$0xf]  ;;  %v2765_v41 = vor.u32 %v3833_v33, %v2764_v32  ;;  %v2732_v61 = vld [vmem:[#allocation8 + $0xa8] sm:$0xf] }
  0x58   :  { %1127 = vmatpush.bf16.msra.mxu2 %v2969_v43  ;;  %1140 = vmatpush.bf16.msra.mxu3 %v3097_v45  ;;  %v2905_v21 = vor.u32 %v3866_v19, %v2902_v20  ;;  %v3030_v23 = vld [vmem:[#allocation8 + $0x310] sm:$0xf0]  ;;  %v2748_v45 = vld [vmem:[#allocation8 + $0xc8] sm:$0xf]  ;;  %v3857_v3 = vld [vmem:[#allocation8 + $0x1b4] sm:$0xf0] }
  0x59   :  { %v3033_v24 = vor.u32 %v3898_v22, %v3030_v23  ;;  %v2860_v1 = vld [vmem:[#allocation8 + $0x1a8] sm:$0xf]  ;;  %v3893_v11 = vld [vmem:[#allocation8 + $0x2d4] sm:$0xf0] }
  0x5a   :  { %1102 = vmatpush.bf16.msra.mxu0 %v2697_v44  ;;  %1115 = vmatpush.bf16.msra.mxu1 %v2825_v46  ;;  %v2893_v44 = vor.u32 %v3865_v36, %v2892_v34  ;;  %v3829_v46 = vld [vmem:[#allocation8 + $0xd4] sm:$0xf0]  ;;  %v2861_v14 = vor.u32 %v3857_v3, %v2860_v1  ;;  %v2844_v19 = vld [vmem:[#allocation8 + $0x188] sm:$0xf] }
  0x5b   :  { %v2749_v59 = vor.u32 %v3829_v46, %v2748_v45  ;;  %v3925_v15 = vld [vmem:[#allocation8 + $0x3d4] sm:$0xf0]  ;;  %v2988_v25 = vld [vmem:[#allocation8 + $0x2a8] sm:$0xf] }
  0x5c   :  { %1128 = vmatpush.bf16.msra.mxu2 %v2953_v56  ;;  %1141 = vmatpush.bf16.msra.mxu3 %v3081_v58  ;;  %v3148_v56 = vld [vmem:[#allocation8 + $0x3e8] sm:$0xf]  ;;  %v3821_v17 = vld [vmem:[#allocation8 + $0x94] sm:$0xf0] }
  0x5d   :  { %v3149_v8 = vor.u32 %v3929_v60, %v3148_v56  ;;  %v3853_v20 = vld [vmem:[#allocation8 + $0x194] sm:$0xf0]  ;;  %v2828_v32 = vld [vmem:[#allocation8 + $0x168] sm:$0xf] }
  0x5e   :  { %1103 = vmatpush.bf16.msra.mxu0 %v2681_v51  ;;  %1116 = vmatpush.bf16.msra.mxu1 %v2809_v52  ;;  %v3849_v33 = vld [vmem:[#allocation8 + $0x174] sm:$0xf0]  ;;  %v2972_v36 = vld [vmem:[#allocation8 + $0x288] sm:$0xf] }
  0x5f   :  { %v2812_v45 = vld [vmem:[#allocation8 + $0x148] sm:$0xf]  ;;  %v3845_v46 = vld [vmem:[#allocation8 + $0x154] sm:$0xf0] }
  0x60   :  { %1129 = vmatpush.bf16.msra.mxu2 %v2937_v4  ;;  %1142 = vmatpush.bf16.msra.mxu3 %v3065_v6  ;;  %v3084_v54 = vld [vmem:[#allocation8 + $0x368] sm:$0xf]  ;;  %v3913_v55 = vld [vmem:[#allocation8 + $0x374] sm:$0xf0] }
  0x61   :  { %v2668_v56 = vld [vmem:[#allocation8 + $0x28] sm:$0xf]  ;;  %v3909_v3 = vld [vmem:[#allocation8 + $0x354] sm:$0xf0] }
  0x62   :  { %1104 = vmatpush.bf16.msra.mxu0 %v2665_v62  ;;  %1117 = vmatpush.bf16.msra.mxu1 %v2793_v0  ;;  %v3825_v62 = vld [vmem:[#allocation8 + $0xb4] sm:$0xf0]  ;;  %v2877_v0 = vor.u32 %v3861_v50, %v2876_v49  ;;  %v2956_v50 = vld [vmem:[#allocation8 + $0x268] sm:$0xf] }
  0x63   :  { %v2733_v9 = vor.u32 %v3825_v62, %v2732_v61  ;;  %v3085_v61 = vor.u32 %v3913_v55, %v3084_v54  ;;  %v2940_v62 = vld [vmem:[#allocation8 + $0x248] sm:$0xf]  ;;  %v3923_v54 = vld [vmem:[#allocation8 + $0x3cc] sm:$0xf]  ;;  %v3134_v55 = vld [vmem:[#allocation8 + $0x3d8] sm:$0xf0] }
  0x64   :  { %1130 = vmatpush.bf16.msra.mxu2 %v2921_v16  ;;  %1143 = vmatpush.bf16.msra.mxu3 %v3049_v18  ;;  %v2716_v16 = vld [vmem:[#allocation8 + $0x88] sm:$0xf] }
  0x66   :  { %1105 = vmatpush.bf16.msra.mxu0 %v2649_v10  ;;  %1118 = vmatpush.bf16.msra.mxu1 %v2777_v12  ;;  %v3004_v10 = vld [vmem:[#allocation8 + $0x2c8] sm:$0xf] }
  0x67   :  { %v3132_v12 = vld [vmem:[#allocation8 + $0x3c8] sm:$0xf]  ;;  %v3005_v22 = vor.u32 %v3893_v11, %v3004_v10  ;;  %v2766_v11 = vld [vmem:[#allocation8 + $0xf8] sm:$0xf0] }
  0x68   :  { %1131 = vmatpush.bf16.msra.mxu2 %v2905_v21  ;;  %1144 = vmatpush.bf16.msra.mxu3 %v3033_v24  ;;  %v3133_v23 = vor.u32 %v3925_v15, %v3132_v12  ;;  %v2717_v24 = vor.u32 %v3821_v17, %v2716_v16  ;;  %v3863_v12 = vld [vmem:[#allocation8 + $0x1ec] sm:$0xf]  ;;  %v2924_v16 = vld [vmem:[#allocation8 + $0x228] sm:$0xf]  ;;  %v3873_v17 = vld [vmem:[#allocation8 + $0x234] sm:$0xf0] }
  0xa6   :  { %v209_v28 = vpop.f32.mrf.mxu0  ;;  %v222_v30 = vpop.f32.mrf.mxu1 }
  0xa7   :  { %v210_v29 = vadd.f32 %v209_v28, %v148_v26  ;;  %v223_v31 = vadd.f32 %v222_v30, %v149_v27  ;;  %v3889_v26 = vld [vmem:[#allocation8 + $0x2b4] sm:$0xf0]  ;;  %v2845_v27 = vor.u32 %v3853_v20, %v2844_v19  ;;  %v3116_v28 = vld [vmem:[#allocation8 + $0x3a8] sm:$0xf] }
  0xa8   :  { %v2700_v30 = vld [vmem:[#allocation8 + $0x68] sm:$0xf]  ;;  %v2989_v34 = vor.u32 %v3889_v26, %v2988_v25  ;;  %v2925_v25 = vor.u32 %v3873_v17, %v2924_v16  ;;  %v2750_v26 = vld [vmem:[#allocation8 + $0xd8] sm:$0xf0]  ;;  %v3915_v16 = vld [vmem:[#allocation8 + $0x38c] sm:$0xf] }
  0xa9   :  { %vm252_vm1 = vcmp.gt.f32.partialorder %v210_v29, 0.0  ;;  %v256_v35 = vmul.f32 0.01, %v210_v29  ;;  %vm253_vm2 = vcmp.gt.f32.partialorder %v223_v31, 0.0  ;;  %v257_v37 = vmul.f32 0.01, %v223_v31 }
  0xaa   :  { %v3052_v20 = vld [vmem:[#allocation8 + $0x328] sm:$0xf]  ;;  %v3102_v17 = vld [vmem:[#allocation8 + $0x398] sm:$0xf0] }
  0xab   :  { %v260_v39 = vsel %vm252_vm1, %v210_v29, %v256_v35  ;;  %v261_v43 = vsel %vm253_vm2, %v223_v31, %v257_v37  ;;  %v3921_v29 = vld [vmem:[#allocation8 + $0x3b4] sm:$0xf0] }
  0xac   :  { %v4394_v42 = vpack.c.bf16 %v260_v39, %v260_v39  ;;  %v4396_v47 = vpack.c.bf16 %v261_v43, %v261_v43  ;;  %v3817_v31 = vld [vmem:[#allocation8 + $0x74] sm:$0xf0]  ;;  %v3117_v35 = vor.u32 %v3921_v29, %v3116_v28  ;;  %v2829_v39 = vor.u32 %v3849_v33, %v2828_v32  ;;  %v2684_v43 = vld [vmem:[#allocation8 + $0x48] sm:$0xf]  ;;  %v2878_v28 = vld [vmem:[#allocation8 + $0x1d8] sm:$0xf0] }
  0xad   :  { %v3885_v37 = vld [vmem:[#allocation8 + $0x294] sm:$0xf0]  ;;  %v3036_v32 = vld [vmem:[#allocation8 + $0x308] sm:$0xf] }
  0xae   :  { %v235_v48 = vpop.f32.mrf.mxu2  ;;  %v248_v52 = vpop.f32.mrf.mxu3  ;;  %1054 = vmatmul.bf16.vlgmr.msrb.gmra.mxu0 %v4394_v42  ;;  %1067 = vmatmul.bf16.vlgmr.msrb.gmra.mxu1 %v4396_v47  ;;  %v3901_v33 = vld [vmem:[#allocation8 + $0x314] sm:$0xf0] }
  0xaf   :  { %v236_v51 = vadd.f32 %v235_v48, %v150_v38  ;;  %v211_v53 = vpop.f32.mrf.mxu0  ;;  %v249_v57 = vadd.f32 %v248_v52, %v151_v40  ;;  %1150 = vmatpush.bf16.msrb.mxu0 %v2765_v41  ;;  %v224_v58 = vpop.f32.mrf.mxu1  ;;  %1163 = vmatpush.bf16.msrb.mxu1 %v2893_v44  ;;  %v2701_v38 = vor.u32 %v3817_v31, %v2700_v30  ;;  %v3100_v40 = vld [vmem:[#allocation8 + $0x388] sm:$0xf]  ;;  %v3917_v41 = vld [vmem:[#allocation8 + $0x394] sm:$0xf0] }
  0xb0   :  { %v3813_v44 = vld [vmem:[#allocation8 + $0x54] sm:$0xf0]  ;;  %v2973_v48 = vor.u32 %v3885_v37, %v2972_v36  ;;  %v3101_v49 = vor.u32 %v3917_v41, %v3100_v40  ;;  %v2813_v53 = vor.u32 %v3845_v46, %v2812_v45  ;;  %v2796_v58 = vld [vmem:[#allocation8 + $0x128] sm:$0xf]  ;;  %v3823_v40 = vld [vmem:[#allocation8 + $0xac] sm:$0xf]  ;;  %v3037_v46 = vor.u32 %v3901_v33, %v3036_v32 }
  0xb1   :  { %vm254_vm3 = vcmp.gt.f32.partialorder %v236_v51, 0.0  ;;  %v258_v63 = vmul.f32 0.01, %v236_v51  ;;  %vm255_vm4 = vcmp.gt.f32.partialorder %v249_v57, 0.0  ;;  %v259_v2 = vmul.f32 0.01, %v249_v57 }
  0xb2   :  { %v2685_v52 = vor.u32 %v3813_v44, %v2684_v43  ;;  %v2908_v30 = vld [vmem:[#allocation8 + $0x208] sm:$0xf]  ;;  %v3869_v31 = vld [vmem:[#allocation8 + $0x214] sm:$0xf0]  ;;  %v2734_v43 = vld [vmem:[#allocation8 + $0xb8] sm:$0xf0] }
  0xb3   :  { %v262_v4 = vsel %vm254_vm3, %v236_v51, %v258_v63  ;;  %v263_v7 = vsel %vm255_vm4, %v249_v57, %v259_v2  ;;  %1151 = vmatpush.bf16.msrb.mxu0 %v2749_v59  ;;  %1164 = vmatpush.bf16.msrb.mxu1 %v2877_v0  ;;  %v3881_v51 = vld [vmem:[#allocation8 + $0x274] sm:$0xf0]  ;;  %v3068_v0 = vld [vmem:[#allocation8 + $0x348] sm:$0xf]  ;;  %v2909_v41 = vor.u32 %v3869_v31, %v2908_v30  ;;  %v3855_v44 = vld [vmem:[#allocation8 + $0x1ac] sm:$0xf] }
  0xb4   :  { %v4400_v6 = vpack.c.bf16 %v262_v4, %v262_v4  ;;  %v4402_v13 = vpack.c.bf16 %v263_v7, %v263_v7  ;;  %v3809_v57 = vld [vmem:[#allocation8 + $0x34] sm:$0xf0]  ;;  %v2957_v60 = vor.u32 %v3881_v51, %v2956_v50  ;;  %v2652_v4 = vld [vmem:[#allocation8 + $0x8] sm:$0xf]  ;;  %v3069_v15 = vor.u32 %v3909_v3, %v3068_v0  ;;  %v2862_v45 = vld [vmem:[#allocation8 + $0x1b8] sm:$0xf0] }
  0xb5   :  { %v3841_v59 = vld [vmem:[#allocation8 + $0x134] sm:$0xf0]  ;;  %v2669_v1 = vor.u32 %v3809_v57, %v2668_v56  ;;  %v2780_v7 = vld [vmem:[#allocation8 + $0x108] sm:$0xf]  ;;  %v3891_v50 = vld [vmem:[#allocation8 + $0x2cc] sm:$0xf] }
  0xb6   :  { %v237_v18 = vpop.f32.mrf.mxu2  ;;  %1080 = vmatmul.bf16.vlgmr.msrb.gmra.mxu2 %v4400_v6  ;;  %v250_v21 = vpop.f32.mrf.mxu3  ;;  %1093 = vmatmul.bf16.vlgmr.msrb.gmra.mxu3 %v4402_v13  ;;  %v3877_v63 = vld [vmem:[#allocation8 + $0x254] sm:$0xf0]  ;;  %v2797_v2 = vor.u32 %v3841_v59, %v2796_v58  ;;  %v3006_v51 = vld [vmem:[#allocation8 + $0x2d8] sm:$0xf0]  ;;  %v3819_v56 = vld [vmem:[#allocation8 + $0x8c] sm:$0xf] }
  0xb7   :  { %1176 = vmatpush.bf16.msrb.mxu2 %v3021_v5  ;;  %1189 = vmatpush.bf16.msrb.mxu3 %v3149_v8  ;;  %v3805_v5 = vld [vmem:[#allocation8 + $0x14] sm:$0xf0]  ;;  %v2941_v10 = vor.u32 %v3877_v63, %v2940_v62  ;;  %v2718_v57 = vld [vmem:[#allocation8 + $0x98] sm:$0xf0]  ;;  %v3851_v58 = vld [vmem:[#allocation8 + $0x18c] sm:$0xf] }
  0xb8   :  { %1152 = vmatpush.bf16.msrb.mxu0 %v2733_v9  ;;  %1165 = vmatpush.bf16.msrb.mxu1 %v2861_v14  ;;  %v3837_v8 = vld [vmem:[#allocation8 + $0x114] sm:$0xf0]  ;;  %v3831_v9 = vld [vmem:[#allocation8 + $0xec] sm:$0xf]  ;;  %v2894_v14 = vld [vmem:[#allocation8 + $0x1f8] sm:$0xf0]  ;;  %v2653_v18 = vor.u32 %v3805_v5, %v2652_v4  ;;  %v2721_v0 = vor.u32 %v3819_v56, %v2718_v57 }
  0xb9   :  { %v2781_v19 = vor.u32 %v3837_v8, %v2780_v7  ;;  %v3905_v21 = vld [vmem:[#allocation8 + $0x334] sm:$0xf0]  ;;  %v2846_v59 = vld [vmem:[#allocation8 + $0x198] sm:$0xf0]  ;;  %v3887_v62 = vld [vmem:[#allocation8 + $0x2ac] sm:$0xf] }
  0xba   :  { %v3053_v29 = vor.u32 %v3905_v21, %v3052_v20  ;;  %v2990_v63 = vld [vmem:[#allocation8 + $0x2b8] sm:$0xf0]  ;;  %v3815_v4 = vld [vmem:[#allocation8 + $0x6c] sm:$0xf] }
  0xbb   :  { %1177 = vmatpush.bf16.msrb.mxu2 %v3005_v22  ;;  %1190 = vmatpush.bf16.msrb.mxu3 %v3133_v23  ;;  %v2769_v22 = vor.u32 %v3831_v9, %v2766_v11  ;;  %v2897_v23 = vor.u32 %v3863_v12, %v2894_v14  ;;  %v3118_v3 = vld [vmem:[#allocation8 + $0x3b8] sm:$0xf0]  ;;  %v3847_v7 = vld [vmem:[#allocation8 + $0x16c] sm:$0xf]  ;;  %v2993_v9 = vor.u32 %v3887_v62, %v2990_v63 }
  0xbc   :  { %1153 = vmatpush.bf16.msrb.mxu0 %v2717_v24  ;;  %1166 = vmatpush.bf16.msrb.mxu1 %v2845_v27  ;;  %v3827_v24 = vld [vmem:[#allocation8 + $0xcc] sm:$0xf]  ;;  %v2702_v5 = vld [vmem:[#allocation8 + $0x78] sm:$0xf0] }
  0xbd   :  { %v3859_v27 = vld [vmem:[#allocation8 + $0x1cc] sm:$0xf]  ;;  %v2753_v36 = vor.u32 %v3827_v24, %v2750_v26  ;;  %v2830_v8 = vld [vmem:[#allocation8 + $0x178] sm:$0xf0]  ;;  %v2705_v14 = vor.u32 %v3815_v4, %v2702_v5 }
  0xbe   :  { %1106 = vmatmul.bf16.vlgmr.msra.gmra.mxu0 %v4394_v42  ;;  %1119 = vmatmul.bf16.vlgmr.msra.gmra.mxu1 %v4396_v47  ;;  %v2881_v37 = vor.u32 %v3859_v27, %v2878_v28  ;;  %v3883_v11 = vld [vmem:[#allocation8 + $0x28c] sm:$0xf]  ;;  %v2974_v12 = vld [vmem:[#allocation8 + $0x298] sm:$0xf0] }
  0xbf   :  { %1178 = vmatpush.bf16.msrb.mxu2 %v2989_v34  ;;  %1191 = vmatpush.bf16.msrb.mxu3 %v3117_v35  ;;  %v3895_v34 = vld [vmem:[#allocation8 + $0x2ec] sm:$0xf]  ;;  %v3022_v35 = vld [vmem:[#allocation8 + $0x2f8] sm:$0xf0] }
  0xc0   :  { %1154 = vmatpush.bf16.msrb.mxu0 %v2701_v38  ;;  %1167 = vmatpush.bf16.msrb.mxu1 %v2829_v39  ;;  %v3927_v38 = vld [vmem:[#allocation8 + $0x3ec] sm:$0xf]  ;;  %v3150_v39 = vld [vmem:[#allocation8 + $0x3f8] sm:$0xf0] }
  0xc1   :  { %v3843_v20 = vld [vmem:[#allocation8 + $0x14c] sm:$0xf]  ;;  %v2814_v21 = vld [vmem:[#allocation8 + $0x158] sm:$0xf0] }
  0xc2   :  { %v3879_v24 = vld [vmem:[#allocation8 + $0x26c] sm:$0xf]  ;;  %v2817_v27 = vor.u32 %v3843_v20, %v2814_v21  ;;  %v2670_v31 = vld [vmem:[#allocation8 + $0x38] sm:$0xf0] }
  0xc3   :  { %1179 = vmatpush.bf16.msrb.mxu2 %v2973_v48  ;;  %1192 = vmatpush.bf16.msrb.mxu3 %v3101_v49  ;;  %v3025_v48 = vor.u32 %v3895_v34, %v3022_v35  ;;  %v3153_v49 = vor.u32 %v3927_v38, %v3150_v39  ;;  %v3911_v28 = vld [vmem:[#allocation8 + $0x36c] sm:$0xf]  ;;  %v2798_v33 = vld [vmem:[#allocation8 + $0x138] sm:$0xf0] }
  0xc4   :  { %1155 = vmatpush.bf16.msrb.mxu0 %v2685_v52  ;;  %1168 = vmatpush.bf16.msrb.mxu1 %v2813_v53  ;;  %v2737_v52 = vor.u32 %v3823_v40, %v2734_v43  ;;  %v2865_v53 = vor.u32 %v3855_v44, %v2862_v45  ;;  %v3807_v30 = vld [vmem:[#allocation8 + $0x2c] sm:$0xf]  ;;  %v2654_v44 = vld [vmem:[#allocation8 + $0x18] sm:$0xf0] }
  0xc5   :  { %v3839_v32 = vld [vmem:[#allocation8 + $0x12c] sm:$0xf]  ;;  %v2673_v39 = vor.u32 %v3807_v30, %v2670_v31  ;;  %v2910_v5 = vld [vmem:[#allocation8 + $0x218] sm:$0xf0]  ;;  %v3976_v30 = vld [vmem:[#allocation11 + $0x16c] sm:$0xf0] }
  0xc6   :  { %1132 = vmatmul.bf16.vlgmr.msra.gmra.mxu2 %v4400_v6  ;;  %1145 = vmatmul.bf16.vlgmr.msra.gmra.mxu3 %v4402_v13  ;;  %v3907_v38 = vld [vmem:[#allocation8 + $0x34c] sm:$0xf]  ;;  %v2801_v40 = vor.u32 %v3839_v32, %v2798_v33  ;;  %v3188_v32 = vld [vmem:[#allocation11 + $0x40] sm:$0xf]  ;;  %v3940_v33 = vld [vmem:[#allocation11 + $0x4c] sm:$0xf0] }
  0xc7   :  { %1180 = vmatpush.bf16.msrb.mxu2 %v2957_v60  ;;  %1193 = vmatpush.bf16.msrb.mxu3 %v3085_v61  ;;  %v3009_v60 = vor.u32 %v3891_v50, %v3006_v51  ;;  %v3137_v61 = vor.u32 %v3923_v54, %v3134_v55  ;;  %v3803_v43 = vld [vmem:[#allocation8 + $0xc] sm:$0xf]  ;;  %v3960_v50 = vld [vmem:[#allocation11 + $0xec] sm:$0xf0]  ;;  %v3396_v51 = vld [vmem:[#allocation11 + $0x1e0] sm:$0xf] }
  0xc8   :  { %1156 = vmatpush.bf16.msrb.mxu0 %v2669_v1  ;;  %1169 = vmatpush.bf16.msrb.mxu1 %v2797_v2  ;;  %v2849_v1 = vor.u32 %v3851_v58, %v2846_v59  ;;  %v3919_v2 = vld [vmem:[#allocation8 + $0x3ac] sm:$0xf]  ;;  %v2926_v55 = vld [vmem:[#allocation8 + $0x238] sm:$0xf0]  ;;  %v2657_v56 = vor.u32 %v3803_v43, %v2654_v44  ;;  %v3954_v44 = vld [vmem:[#allocation11 + $0xc4] sm:$0xf] }
  0xc9   :  { %v3835_v45 = vld [vmem:[#allocation8 + $0x10c] sm:$0xf]  ;;  %v3054_v59 = vld [vmem:[#allocation8 + $0x338] sm:$0xf0] }
  0xca   :  { %v3871_v54 = vld [vmem:[#allocation8 + $0x22c] sm:$0xf] }
  0xcb   :  { %1181 = vmatpush.bf16.msrb.mxu2 %v2941_v10  ;;  %1194 = vmatpush.bf16.msrb.mxu3 %v3069_v15  ;;  %v3121_v10 = vor.u32 %v3919_v2, %v3118_v3  ;;  %v2833_v15 = vor.u32 %v3847_v7, %v2830_v8  ;;  %v3903_v58 = vld [vmem:[#allocation8 + $0x32c] sm:$0xf]  ;;  %v2929_v63 = vor.u32 %v3871_v54, %v2926_v55  ;;  %v3988_v2 = vld [vmem:[#allocation11 + $0x1cc] sm:$0xf0]  ;;  %v3038_v8 = vld [vmem:[#allocation8 + $0x318] sm:$0xf0] }
  0xcc   :  { %1157 = vmatpush.bf16.msrb.mxu0 %v2653_v18  ;;  %1170 = vmatpush.bf16.msrb.mxu1 %v2781_v19  ;;  %v3811_v18 = vld [vmem:[#allocation8 + $0x4c] sm:$0xf]  ;;  %v2686_v19 = vld [vmem:[#allocation8 + $0x58] sm:$0xf0]  ;;  %v3057_v3 = vor.u32 %v3903_v58, %v3054_v59  ;;  %v3238_v54 = vld [vmem:[#allocation11 + $0xb0] sm:$0xf0] }
  0xcd   :  { %v2689_v26 = vor.u32 %v3811_v18, %v2686_v19  ;;  %v3867_v4 = vld [vmem:[#allocation8 + $0x20c] sm:$0xf]  ;;  %v3364_v18 = vld [vmem:[#allocation11 + $0x1a0] sm:$0xf]  ;;  %v3984_v19 = vld [vmem:[#allocation11 + $0x1ac] sm:$0xf0] }
  0xce   :  { %v3899_v7 = vld [vmem:[#allocation8 + $0x30c] sm:$0xf]  ;;  %v3968_v58 = vld [vmem:[#allocation11 + $0x12c] sm:$0xf0]  ;;  %v3492_v59 = vld [vmem:[#allocation11 + $0x2a0] sm:$0xf] }
  0xcf   :  { %1182 = vmatpush.bf16.msrb.mxu2 %v2925_v25  ;;  %1195 = vmatpush.bf16.msrb.mxu3 %v3053_v29  ;;  %v2958_v25 = vld [vmem:[#allocation8 + $0x278] sm:$0xf0] }
  0xd0   :  { %1202 = vmatpush.bf16.msra.mxu0 %v2769_v22  ;;  %1215 = vmatpush.bf16.msra.mxu1 %v2897_v23  ;;  %v2977_v22 = vor.u32 %v3883_v11, %v2974_v12  ;;  %v3105_v23 = vor.u32 %v3915_v16, %v3102_v17  ;;  %v3086_v29 = vld [vmem:[#allocation8 + $0x378] sm:$0xf0]  ;;  %v2961_v34 = vor.u32 %v3879_v24, %v2958_v25  ;;  %v3952_v16 = vld [vmem:[#allocation11 + $0xac] sm:$0xf0]  ;;  %v3348_v25 = vld [vmem:[#allocation11 + $0x180] sm:$0xf] }
  0xd1   :  { %1158 = vmatmul.bf16.vlgmr.msrb.gmra.mxu0 %v4394_v42  ;;  %1171 = vmatmul.bf16.vlgmr.msrb.gmra.mxu1 %v4396_v47  ;;  %v3089_v35 = vor.u32 %v3911_v28, %v3086_v29  ;;  %v3041_v17 = vor.u32 %v3899_v7, %v3038_v8  ;;  %v3365_v24 = vor.u32 %v3984_v19, %v3364_v18  ;;  %v3944_v28 = vld [vmem:[#allocation11 + $0x6c] sm:$0xf0]  ;;  %v3332_v29 = vld [vmem:[#allocation11 + $0x160] sm:$0xf]  ;;  %v3942_v8 = vld [vmem:[#allocation11 + $0x64] sm:$0xf] }
  0xd2   :  { %v4012_v7 = vld [vmem:[#allocation11 + $0x28c] sm:$0xf0]  ;;  %v3938_v19 = vld [vmem:[#allocation11 + $0x44] sm:$0xf] }
  0xd3   :  { %1183 = vmatpush.bf16.msrb.mxu2 %v2909_v41  ;;  %1196 = vmatpush.bf16.msrb.mxu3 %v3037_v46  ;;  %v3070_v41 = vld [vmem:[#allocation8 + $0x358] sm:$0xf0] }
  0xd4   :  { %1203 = vmatpush.bf16.msra.mxu0 %v2753_v36  ;;  %1216 = vmatpush.bf16.msra.mxu1 %v2881_v37  ;;  %v3875_v36 = vld [vmem:[#allocation8 + $0x24c] sm:$0xf]  ;;  %v2942_v37 = vld [vmem:[#allocation8 + $0x258] sm:$0xf0] }
  0xd5   :  { %v2782_v46 = vld [vmem:[#allocation8 + $0x118] sm:$0xf0] }
  0xd6   :  { %1184 = vmatmul.bf16.vlgmr.msrb.gmra.mxu2 %v4400_v6  ;;  %1197 = vmatmul.bf16.vlgmr.msrb.gmra.mxu3 %v4402_v13  ;;  %v2785_v57 = vor.u32 %v3835_v45, %v2782_v46  ;;  %v3254_v45 = vld [vmem:[#allocation11 + $0xd0] sm:$0xf0] }
  0xd7   :  { %1228 = vmatpush.bf16.msra.mxu2 %v3025_v48  ;;  %1241 = vmatpush.bf16.msra.mxu3 %v3153_v49  ;;  %v3268_v48 = vld [vmem:[#allocation11 + $0xe0] sm:$0xf]  ;;  %v2945_v49 = vor.u32 %v3875_v36, %v2942_v37  ;;  %v3257_v46 = vor.u32 %v3954_v44, %v3254_v45  ;;  %v4056_v44 = vld [vmem:[#allocation11 + $0x3ec] sm:$0xf0]  ;;  %v3974_v45 = vld [vmem:[#allocation11 + $0x164] sm:$0xf] }
  0xd8   :  { %1204 = vmatpush.bf16.msra.mxu0 %v2737_v52  ;;  %1217 = vmatpush.bf16.msra.mxu1 %v2865_v53  ;;  %v3992_v52 = vld [vmem:[#allocation11 + $0x1ec] sm:$0xf0]  ;;  %v3073_v53 = vor.u32 %v3907_v38, %v3070_v41  ;;  %v3172_v36 = vld [vmem:[#allocation11 + $0x20] sm:$0xf] }
  0xd9   :  { %v3397_v62 = vor.u32 %v3992_v52, %v3396_v51  ;;  %v3932_v38 = vld [vmem:[#allocation11 + $0xc] sm:$0xf0] }
  0xda   :  { %v4020_v52 = vld [vmem:[#allocation11 + $0x2cc] sm:$0xf0] }
  0xdb   :  { %1229 = vmatpush.bf16.msra.mxu2 %v3009_v60  ;;  %1242 = vmatpush.bf16.msra.mxu3 %v3137_v61  ;;  %v3269_v60 = vor.u32 %v3960_v50, %v3268_v48  ;;  %v3252_v61 = vld [vmem:[#allocation11 + $0xc0] sm:$0xf] }
  0xdc   :  { %1205 = vmatpush.bf16.msra.mxu0 %v2721_v0  ;;  %1218 = vmatpush.bf16.msra.mxu1 %v2849_v1  ;;  %v3956_v0 = vld [vmem:[#allocation11 + $0xcc] sm:$0xf0]  ;;  %v3380_v1 = vld [vmem:[#allocation11 + $0x1c0] sm:$0xf] }
  0xdd   :  { %v3253_v11 = vor.u32 %v3956_v0, %v3252_v61  ;;  %v3381_v12 = vor.u32 %v3988_v2, %v3380_v1  ;;  %v3316_v48 = vld [vmem:[#allocation11 + $0x140] sm:$0xf]  ;;  %v4016_v61 = vld [vmem:[#allocation11 + $0x2ac] sm:$0xf0] }
  0xde   :  { %v3508_v50 = vld [vmem:[#allocation11 + $0x2c0] sm:$0xf]  ;;  %v3493_v0 = vor.u32 %v4016_v61, %v3492_v59 }
  0xdf   :  { %1230 = vmatpush.bf16.msra.mxu2 %v2993_v9  ;;  %1243 = vmatpush.bf16.msra.mxu3 %v3121_v10  ;;  %v3524_v9 = vld [vmem:[#allocation11 + $0x2e0] sm:$0xf]  ;;  %v4024_v10 = vld [vmem:[#allocation11 + $0x2ec] sm:$0xf0]  ;;  %v3509_v55 = vor.u32 %v4020_v52, %v3508_v50  ;;  %v4022_v50 = vld [vmem:[#allocation11 + $0x2e4] sm:$0xf] }
  0xe0   :  { %1206 = vmatpush.bf16.msra.mxu0 %v2705_v14  ;;  %1219 = vmatpush.bf16.msra.mxu1 %v2833_v15  ;;  %v2913_v14 = vor.u32 %v3867_v4, %v2910_v5  ;;  %v3236_v15 = vld [vmem:[#allocation11 + $0xa0] sm:$0xf]  ;;  %v3525_v20 = vor.u32 %v4024_v10, %v3524_v9  ;;  %v3206_v9 = vld [vmem:[#allocation11 + $0x70] sm:$0xf0] }
  0xe1   :  { %v3237_v21 = vor.u32 %v3952_v16, %v3236_v15  ;;  %v3284_v2 = vld [vmem:[#allocation11 + $0x100] sm:$0xf] }
  0xe2   :  { %v3476_v4 = vld [vmem:[#allocation11 + $0x280] sm:$0xf] }
  0xe3   :  { %1231 = vmatpush.bf16.msra.mxu2 %v2977_v22  ;;  %1244 = vmatpush.bf16.msra.mxu3 %v3105_v23  ;;  %v3220_v22 = vld [vmem:[#allocation11 + $0x80] sm:$0xf]  ;;  %v3948_v23 = vld [vmem:[#allocation11 + $0x8c] sm:$0xf0]  ;;  %v3477_v10 = vor.u32 %v4012_v7, %v3476_v4  ;;  %v3966_v4 = vld [vmem:[#allocation11 + $0x124] sm:$0xf] }
  0xe4   :  { %1207 = vmatpush.bf16.msra.mxu0 %v2689_v26  ;;  %1220 = vmatpush.bf16.msra.mxu1 %v2817_v27  ;;  %v3980_v26 = vld [vmem:[#allocation11 + $0x18c] sm:$0xf0]  ;;  %v3204_v27 = vld [vmem:[#allocation11 + $0x60] sm:$0xf]  ;;  %v4014_v7 = vld [vmem:[#allocation11 + $0x2a4] sm:$0xf] }
  0xe5   :  { %v3205_v31 = vor.u32 %v3944_v28, %v3204_v27  ;;  %v3460_v16 = vld [vmem:[#allocation11 + $0x260] sm:$0xf]  ;;  %v3934_v27 = vld [vmem:[#allocation11 + $0x24] sm:$0xf]  ;;  %v3174_v28 = vld [vmem:[#allocation11 + $0x30] sm:$0xf0] }
  0xe7   :  { %1232 = vmatpush.bf16.msra.mxu2 %v2961_v34  ;;  %1245 = vmatpush.bf16.msra.mxu3 %v3089_v35  ;;  %v3333_v34 = vor.u32 %v3976_v30, %v3332_v29  ;;  %v3189_v35 = vor.u32 %v3940_v33, %v3188_v32  ;;  %v3177_v29 = vor.u32 %v3934_v27, %v3174_v28  ;;  %v3366_v30 = vld [vmem:[#allocation11 + $0x1b0] sm:$0xf0]  ;;  %v3428_v32 = vld [vmem:[#allocation11 + $0x220] sm:$0xf]  ;;  %v4000_v33 = vld [vmem:[#allocation11 + $0x22c] sm:$0xf0] }
  0xe8   :  { %1208 = vmatpush.bf16.msra.mxu0 %v2673_v39  ;;  %1221 = vmatpush.bf16.msra.mxu1 %v2801_v40  ;;  %v3958_v39 = vld [vmem:[#allocation11 + $0xe4] sm:$0xf]  ;;  %v3270_v40 = vld [vmem:[#allocation11 + $0xf0] sm:$0xf0] }
  0xe9   :  { %v3273_v43 = vor.u32 %v3958_v39, %v3270_v40  ;;  %v3412_v39 = vld [vmem:[#allocation11 + $0x200] sm:$0xf]  ;;  %v3996_v40 = vld [vmem:[#allocation11 + $0x20c] sm:$0xf0]  ;;  %v4006_v27 = vld [vmem:[#allocation11 + $0x264] sm:$0xf] }
  0xea   :  { %v3462_v28 = vld [vmem:[#allocation11 + $0x270] sm:$0xf0] }
  0xeb   :  { %1233 = vmatpush.bf16.msra.mxu2 %v2945_v49  ;;  %1246 = vmatpush.bf16.msra.mxu3 %v3073_v53  ;;  %v3972_v49 = vld [vmem:[#allocation11 + $0x14c] sm:$0xf0]  ;;  %v3950_v53 = vld [vmem:[#allocation11 + $0xa4] sm:$0xf] }
  0xec   :  { %1209 = vmatpush.bf16.msra.mxu0 %v2657_v56  ;;  %1222 = vmatpush.bf16.msra.mxu1 %v2785_v57  ;;  %v3317_v51 = vor.u32 %v3972_v49, %v3316_v48  ;;  %v3241_v56 = vor.u32 %v3950_v53, %v3238_v54  ;;  %v3300_v57 = vld [vmem:[#allocation11 + $0x120] sm:$0xf]  ;;  %v4052_v54 = vld [vmem:[#allocation11 + $0x3cc] sm:$0xf0] }
  0xed   :  { %v3636_v53 = vld [vmem:[#allocation11 + $0x3c0] sm:$0xf] }
  0xef   :  { %1234 = vmatpush.bf16.msra.mxu2 %v2929_v63  ;;  %1247 = vmatpush.bf16.msra.mxu3 %v3057_v3  ;;  %v3222_v63 = vld [vmem:[#allocation11 + $0x90] sm:$0xf0]  ;;  %v3964_v3 = vld [vmem:[#allocation11 + $0x10c] sm:$0xf0] }
  0xf0   :  { %2048 = vmatpush.bf16.msrb.mxu0 %v3269_v60  ;;  %2061 = vmatpush.bf16.msrb.mxu1 %v3397_v62  ;;  %v3301_v60 = vor.u32 %v3968_v58, %v3300_v57  ;;  %v3946_v62 = vld [vmem:[#allocation11 + $0x84] sm:$0xf]  ;;  %v3285_v5 = vor.u32 %v3964_v3, %v3284_v2  ;;  %v3318_v57 = vld [vmem:[#allocation11 + $0x150] sm:$0xf0] }
  0xf1   :  { %1210 = vmatmul.bf16.vlgmr.msra.gmra.mxu0 %v4394_v42  ;;  %1223 = vmatmul.bf16.vlgmr.msra.gmra.mxu1 %v4396_v47  ;;  %v3221_v42 = vor.u32 %v3948_v23, %v3220_v22  ;;  %v3349_v47 = vor.u32 %v3980_v26, %v3348_v25  ;;  %v3225_v1 = vor.u32 %v3946_v62, %v3222_v63  ;;  %v3382_v23 = vld [vmem:[#allocation11 + $0x1d0] sm:$0xf0]  ;;  %v3444_v25 = vld [vmem:[#allocation11 + $0x240] sm:$0xf]  ;;  %v4004_v26 = vld [vmem:[#allocation11 + $0x24c] sm:$0xf0] }
  0xf2   :  { %v4018_v58 = vld [vmem:[#allocation11 + $0x2c4] sm:$0xf]  ;;  %v4418_v62 = vld [vmem:[#allocation10] sm:$0xf] }
  0xf3   :  { %1235 = vmatpush.bf16.msra.mxu2 %v2913_v14  ;;  %1248 = vmatpush.bf16.msra.mxu3 %v3041_v17  ;;  %v3398_v14 = vld [vmem:[#allocation11 + $0x1f0] sm:$0xf0]  ;;  %v4008_v17 = vld [vmem:[#allocation11 + $0x26c] sm:$0xf0] }
  0xf4   :  { %2049 = vmatpush.bf16.msrb.mxu0 %v3253_v11  ;;  %2062 = vmatpush.bf16.msrb.mxu1 %v3381_v12  ;;  %v3209_v11 = vor.u32 %v3942_v8, %v3206_v9  ;;  %v3990_v12 = vld [vmem:[#allocation11 + $0x1e4] sm:$0xf]  ;;  %v3461_v18 = vor.u32 %v4008_v17, %v3460_v16  ;;  %v3494_v9 = vld [vmem:[#allocation11 + $0x2b0] sm:$0xf0] }
  0xf5   :  { %v3401_v15 = vor.u32 %v3990_v12, %v3398_v14  ;;  %v3604_v12 = vld [vmem:[#allocation11 + $0x380] sm:$0xf]  ;;  %v4044_v14 = vld [vmem:[#allocation11 + $0x38c] sm:$0xf0]  ;;  %v3962_v16 = vld [vmem:[#allocation11 + $0x104] sm:$0xf] }
  0xf6   :  { %1236 = vmatmul.bf16.vlgmr.msra.gmra.mxu2 %v4400_v6  ;;  %1249 = vmatmul.bf16.vlgmr.msra.gmra.mxu3 %v4402_v13  ;;  %v3936_v6 = vld [vmem:[#allocation11 + $0x2c] sm:$0xf0]  ;;  %v3156_v13 = vld [vmem:[#allocation11] sm:$0xf]  ;;  %v3286_v17 = vld [vmem:[#allocation11 + $0x110] sm:$0xf0] }
  0xf7   :  { %2074 = vmatpush.bf16.msrb.mxu2 %v3525_v20  ;;  %v3173_v37 = vor.u32 %v3936_v6, %v3172_v36  ;;  %v3157_v41 = vor.u32 %v3932_v38, %v3156_v13  ;;  %v3190_v20 = vld [vmem:[#allocation11 + $0x50] sm:$0xf0]  ;;  %v3978_v6 = vld [vmem:[#allocation11 + $0x184] sm:$0xf] }
  0xf8   :  { %2050 = vmatpush.bf16.msrb.mxu0 %v3237_v21  ;;  %2063 = vmatpush.bf16.msrb.mxu1 %v3365_v24  ;;  %v3986_v21 = vld [vmem:[#allocation11 + $0x1c4] sm:$0xf]  ;;  %v3193_v22 = vor.u32 %v3938_v19, %v3190_v20  ;;  %v3158_v36 = vld [vmem:[#allocation11 + $0x10] sm:$0xf0]  ;;  %v3289_v19 = vor.u32 %v3962_v16, %v3286_v17 }
  0xf9   :  { %v3385_v24 = vor.u32 %v3986_v21, %v3382_v23  ;;  %v3350_v13 = vld [vmem:[#allocation11 + $0x190] sm:$0xf0] }
  0xfa   :  { %v3353_v38 = vor.u32 %v3978_v6, %v3350_v13  ;;  %v3478_v20 = vld [vmem:[#allocation11 + $0x290] sm:$0xf0] }
  0xfb   :  { %2075 = vmatpush.bf16.msrb.mxu2 %v3509_v55  ;;  %v3637_v55 = vor.u32 %v4052_v54, %v3636_v53  ;;  %v3260_v54 = vld [vmem:[#allocation11 + $0xc8] sm:$0xf] }
  0xfc   :  { %2051 = vmatpush.bf16.msrb.mxu0 %v3221_v42  ;;  %2064 = vmatpush.bf16.msrb.mxu1 %v3349_v47  ;;  %v3445_v42 = vor.u32 %v4004_v26, %v3444_v25  ;;  %v3982_v47 = vld [vmem:[#allocation11 + $0x1a4] sm:$0xf]  ;;  %v4040_v25 = vld [vmem:[#allocation11 + $0x36c] sm:$0xf0] }
  0xff   :  { %2076 = vmatpush.bf16.msrb.mxu2 %v3493_v0  ;;  %v3620_v0 = vld [vmem:[#allocation11 + $0x3a0] sm:$0xf] }
 0x100   :  { %2052 = vmatpush.bf16.msrb.mxu0 %v3205_v31  ;;  %2065 = vmatpush.bf16.msrb.mxu1 %v3333_v34  ;;  %v3369_v31 = vor.u32 %v3982_v47, %v3366_v30  ;;  %v3429_v34 = vor.u32 %v4000_v33, %v3428_v32  ;;  %v3465_v47 = vor.u32 %v4006_v27, %v3462_v28  ;;  %v3572_v30 = vld [vmem:[#allocation11 + $0x340] sm:$0xf]  ;;  %v3212_v27 = vld [vmem:[#allocation11 + $0x68] sm:$0xf]  ;;  %v3945_v28 = vld [vmem:[#allocation11 + $0x74] sm:$0xf0] }
 0x103   :  { %2077 = vmatpush.bf16.msrb.mxu2 %v3477_v10  ;;  %v3497_v10 = vor.u32 %v4014_v7, %v3494_v9  ;;  %v3244_v9 = vld [vmem:[#allocation11 + $0xa8] sm:$0xf] }
 0x104   :  { %2053 = vmatpush.bf16.msrb.mxu0 %v3189_v35  ;;  %2066 = vmatpush.bf16.msrb.mxu1 %v3317_v51  ;;  %v3930_v35 = vld [vmem:[#allocation11 + $0x4] sm:$0xf]  ;;  %v3526_v51 = vld [vmem:[#allocation11 + $0x2f0] sm:$0xf0] }
 0x105   :  { %v3529_v52 = vor.u32 %v4022_v50, %v3526_v51  ;;  %v399_v51 = vperm.slane %v4418_v62, 1 }
 0x107   :  { %2078 = vmatpush.bf16.msrb.mxu2 %v3461_v18  ;;  %v4010_v18 = vld [vmem:[#allocation11 + $0x284] sm:$0xf] }
 0x108   :  { %2054 = vmatpush.bf16.msrb.mxu0 %v3173_v37  ;;  %2067 = vmatpush.bf16.msrb.mxu1 %v3301_v60  ;;  %v3161_v37 = vor.u32 %v3930_v35, %v3158_v36  ;;  %v3510_v60 = vld [vmem:[#allocation11 + $0x2d0] sm:$0xf0]  ;;  %v3481_v21 = vor.u32 %v4010_v18, %v3478_v20  ;;  %v3228_v18 = vld [vmem:[#allocation11 + $0x88] sm:$0xf]  ;;  %v3949_v20 = vld [vmem:[#allocation11 + $0x94] sm:$0xf0] }
 0x109   :  { %v3513_v61 = vor.u32 %v4018_v58, %v3510_v60  ;;  %v3446_v35 = vld [vmem:[#allocation11 + $0x250] sm:$0xf0]  ;;  %v3994_v60 = vld [vmem:[#allocation11 + $0x204] sm:$0xf] }
 0x10b   :  { %2079 = vmatpush.bf16.msrb.mxu2 %v3445_v42 }
 0x10c   :  { %2055 = vmatpush.bf16.msrb.mxu0 %v3157_v41  ;;  %2068 = vmatpush.bf16.msrb.mxu1 %v3285_v5  ;;  %v3652_v41 = vld [vmem:[#allocation11 + $0x3e0] sm:$0xf]  ;;  %v3302_v5 = vld [vmem:[#allocation11 + $0x130] sm:$0xf0] }
 0x10d   :  { %v3653_v48 = vor.u32 %v4056_v44, %v3652_v41  ;;  %v3305_v8 = vor.u32 %v3966_v4, %v3302_v5  ;;  %v4032_v41 = vld [vmem:[#allocation11 + $0x32c] sm:$0xf0]  ;;  %v3961_v44 = vld [vmem:[#allocation11 + $0xf4] sm:$0xf0] }
 0x10f   :  { %2080 = vmatpush.bf16.msrb.mxu2 %v3429_v34  ;;  %2087 = vmatpush.bf16.msrb.mxu3 %v3653_v48  ;;  %v4002_v34 = vld [vmem:[#allocation11 + $0x244] sm:$0xf]  ;;  %v3430_v48 = vld [vmem:[#allocation11 + $0x230] sm:$0xf0] }
 0x110   :  { %2100 = vmatpush.bf16.msra.mxu0 %v3273_v43  ;;  %2113 = vmatpush.bf16.msra.mxu1 %v3401_v15  ;;  %v3413_v43 = vor.u32 %v3996_v40, %v3412_v39  ;;  %v3605_v15 = vor.u32 %v4044_v14, %v3604_v12  ;;  %v3276_v39 = vld [vmem:[#allocation11 + $0xe8] sm:$0xf]  ;;  %v3556_v40 = vld [vmem:[#allocation11 + $0x320] sm:$0xf]  ;;  %v4050_v12 = vld [vmem:[#allocation11 + $0x3c4] sm:$0xf] }
 0x111   :  { %v3277_v53 = vor.u32 %v3961_v44, %v3276_v39  ;;  %v3638_v14 = vld [vmem:[#allocation11 + $0x3d0] sm:$0xf0]  ;;  %v3941_v39 = vld [vmem:[#allocation11 + $0x54] sm:$0xf0] }
 0x112   :  { %v3989_v44 = vld [vmem:[#allocation11 + $0x1d4] sm:$0xf0] }
 0x113   :  { %2081 = vmatpush.bf16.msrb.mxu2 %v3413_v43  ;;  %2088 = vmatpush.bf16.msrb.mxu3 %v3637_v55  ;;  %v3957_v55 = vld [vmem:[#allocation11 + $0xd4] sm:$0xf0] }
 0x114   :  { %2101 = vmatpush.bf16.msra.mxu0 %v3257_v46  ;;  %2114 = vmatpush.bf16.msra.mxu1 %v3385_v24  ;;  %v3334_v46 = vld [vmem:[#allocation11 + $0x170] sm:$0xf0]  ;;  %v3588_v24 = vld [vmem:[#allocation11 + $0x360] sm:$0xf] }
 0x115   :  { %v3337_v49 = vor.u32 %v3974_v45, %v3334_v46  ;;  %v3589_v42 = vor.u32 %v4040_v25, %v3588_v24  ;;  %v3557_v45 = vor.u32 %v4032_v41, %v3556_v40  ;;  %v3998_v46 = vld [vmem:[#allocation11 + $0x224] sm:$0xf]  ;;  %v3388_v40 = vld [vmem:[#allocation11 + $0x1c8] sm:$0xf] }
 0x116   :  { %v3433_v50 = vor.u32 %v3998_v46, %v3430_v48  ;;  %v3590_v46 = vld [vmem:[#allocation11 + $0x370] sm:$0xf0] }
 0x117   :  { %2126 = vmatpush.bf16.msra.mxu2 %v3529_v52 }
 0x118   :  { %2102 = vmatpush.bf16.msra.mxu0 %v3241_v56  ;;  %2115 = vmatpush.bf16.msra.mxu1 %v3369_v31  ;;  %v3970_v56 = vld [vmem:[#allocation11 + $0x144] sm:$0xf]  ;;  %v4036_v31 = vld [vmem:[#allocation11 + $0x34c] sm:$0xf0] }
 0x119   :  { %v3321_v59 = vor.u32 %v3970_v56, %v3318_v57  ;;  %v3573_v33 = vor.u32 %v4036_v31, %v3572_v30  ;;  %v3540_v56 = vld [vmem:[#allocation11 + $0x300] sm:$0xf]  ;;  %v3993_v30 = vld [vmem:[#allocation11 + $0x1f4] sm:$0xf0]  ;;  %v4042_v31 = vld [vmem:[#allocation11 + $0x384] sm:$0xf] }
 0x11b   :  { %2127 = vmatpush.bf16.msra.mxu2 %v3513_v61  ;;  %v3414_v61 = vld [vmem:[#allocation11 + $0x210] sm:$0xf0] }
 0x11c   :  { %2103 = vmatpush.bf16.msra.mxu0 %v3225_v1  ;;  %2116 = vmatpush.bf16.msra.mxu1 %v3353_v38  ;;  %v4048_v1 = vld [vmem:[#allocation11 + $0x3ac] sm:$0xf0] }
 0x11d   :  { %v3621_v3 = vor.u32 %v4048_v1, %v3620_v0  ;;  %v3417_v1 = vor.u32 %v3994_v60, %v3414_v61  ;;  %v3574_v60 = vld [vmem:[#allocation11 + $0x350] sm:$0xf0] }
 0x11f   :  { %2089 = vmatpush.bf16.msrb.mxu3 %v3621_v3  ;;  %2128 = vmatpush.bf16.msra.mxu2 %v3497_v10  ;;  %v3654_v3 = vld [vmem:[#allocation11 + $0x3f0] sm:$0xf0] }
 0x120   :  { %2104 = vmatpush.bf16.msra.mxu0 %v3209_v11  ;;  %2117 = vmatpush.bf16.msra.mxu1 %v3337_v49  ;;  %v398_v11 = vperm.slane %v4418_v62, 0 }
 0x123   :  { %2090 = vmatpush.bf16.msrb.mxu3 %v3605_v15  ;;  %2129 = vmatpush.bf16.msra.mxu2 %v3481_v21  ;;  %v3641_v15 = vor.u32 %v4050_v12, %v3638_v14  ;;  %v4046_v21 = vld [vmem:[#allocation11 + $0x3a4] sm:$0xf]  ;;  %v3959_v12 = vld [vmem:[#allocation11 + $0xec] sm:$0xf]  ;;  %v3278_v14 = vld [vmem:[#allocation11 + $0xf8] sm:$0xf0] }
 0x124   :  { %2105 = vmatpush.bf16.msra.mxu0 %v3193_v22  ;;  %2118 = vmatpush.bf16.msra.mxu1 %v3321_v59  ;;  %v4028_v59 = vld [vmem:[#allocation11 + $0x30c] sm:$0xf0] }
 0x125   :  { %v3541_v0 = vor.u32 %v4028_v59, %v3540_v56  ;;  %v4034_v59 = vld [vmem:[#allocation11 + $0x344] sm:$0xf] }
 0x127   :  { %2091 = vmatpush.bf16.msrb.mxu3 %v3589_v42  ;;  %2130 = vmatpush.bf16.msra.mxu2 %v3465_v47  ;;  %v3229_v42 = vor.u32 %v3949_v20, %v3228_v18  ;;  %v3404_v47 = vld [vmem:[#allocation11 + $0x1e8] sm:$0xf]  ;;  %v3977_v20 = vld [vmem:[#allocation11 + $0x174] sm:$0xf0] }
 0x128   :  { %2106 = vmatpush.bf16.msra.mxu0 %v3177_v29  ;;  %2119 = vmatpush.bf16.msra.mxu1 %v3305_v8  ;;  %v3261_v8 = vor.u32 %v3957_v55, %v3260_v54  ;;  %v3372_v54 = vld [vmem:[#allocation11 + $0x1a8] sm:$0xf] }
 0x12b   :  { %v1055_v63 = vpop.f32.mrf.mxu0  ;;  %v1068_v2 = vpop.f32.mrf.mxu1  ;;  %2092 = vmatpush.bf16.msrb.mxu3 %v3573_v33 }
 0x12c   :  { %2107 = vmatpush.bf16.msra.mxu0 %v3161_v37  ;;  %v1056_v22 = vadd.f32 %v1055_v63, %v398_v11  ;;  %2120 = vmatpush.bf16.msra.mxu1 %v3289_v19  ;;  %v3449_v37 = vor.u32 %v4002_v34, %v3446_v35  ;;  %v3953_v11 = vld [vmem:[#allocation11 + $0xb4] sm:$0xf0] }
 0x12d   :  { %v3245_v17 = vor.u32 %v3953_v11, %v3244_v9  ;;  %v3558_v9 = vld [vmem:[#allocation11 + $0x330] sm:$0xf0] }
 0x12e   :  { %v1069_v29 = vadd.f32 %v1068_v2, %v1056_v22  ;;  %2131 = vmatpush.bf16.msra.mxu2 %v3449_v37  ;;  %v4054_v2 = vld [vmem:[#allocation11 + $0x3e4] sm:$0xf]  ;;  %v3622_v22 = vld [vmem:[#allocation11 + $0x3b0] sm:$0xf0]  ;;  %v3213_v37 = vor.u32 %v3945_v28, %v3212_v27  ;;  %v3262_v27 = vld [vmem:[#allocation11 + $0xd8] sm:$0xf0] }
 0x12f   :  { %2093 = vmatpush.bf16.msrb.mxu3 %v3557_v45  ;;  %v3657_v4 = vor.u32 %v4054_v2, %v3654_v3  ;;  %v3625_v25 = vor.u32 %v4046_v21, %v3622_v22  ;;  %v4038_v45 = vld [vmem:[#allocation11 + $0x364] sm:$0xf]  ;;  %v3164_v2 = vld [vmem:[#allocation11 + $0x8] sm:$0xf]  ;;  %v3933_v3 = vld [vmem:[#allocation11 + $0x14] sm:$0xf0]  ;;  %v3281_v22 = vor.u32 %v3959_v12, %v3278_v14 }
 0x130   :  { %v3198_v12 = vld [vmem:[#allocation11 + $0x58] sm:$0xf0]  ;;  %v3987_v14 = vld [vmem:[#allocation11 + $0x1cc] sm:$0xf] }
 0x132   :  { %2132 = vmatpush.bf16.msra.mxu2 %v3433_v50 }
 0x133   :  { %v1057_v23 = vpop.f32.mrf.mxu0  ;;  %v1070_v26 = vpop.f32.mrf.mxu1  ;;  %2094 = vmatpush.bf16.msrb.mxu3 %v3541_v0 }
 0x136   :  { %2133 = vmatpush.bf16.msra.mxu2 %v3417_v1 }
 0x137   :  { %2139 = vmatpush.bf16.msra.mxu3 %v3657_v4  ;;  %v3356_v4 = vld [vmem:[#allocation11 + $0x188] sm:$0xf] }
 0x139   :  { %v1081_v32 = vpop.f32.mrf.mxu2  ;;  %v1094_v6 = vpop.f32.mrf.mxu3 }
 0x13a   :  { %v1082_v36 = vadd.f32 %v1081_v32, %v1069_v29  ;;  %v3606_v32 = vld [vmem:[#allocation11 + $0x390] sm:$0xf0] }
 0x13b   :  { %v1107_v38 = vpop.f32.mrf.mxu0  ;;  %v1120_v43 = vpop.f32.mrf.mxu1  ;;  %2140 = vmatpush.bf16.msra.mxu3 %v3641_v15  ;;  %v3609_v35 = vor.u32 %v4042_v31, %v3606_v32 }
 0x13c   :  { %v1095_v13 = vadd.f32 %v1094_v6, %v1082_v36  ;;  %v1108_v5 = vadd.f32 %v1107_v38, %v399_v51  ;;  %v400_v36 = vperm.slane %v4418_v62, 2  ;;  %v3196_v38 = vld [vmem:[#allocation11 + $0x48] sm:$0xf]  ;;  %v3389_v51 = vor.u32 %v3989_v44, %v3388_v40 }
 0x13d   :  { %v3197_v50 = vor.u32 %v3941_v39, %v3196_v38  ;;  %v3951_v38 = vld [vmem:[#allocation11 + $0xac] sm:$0xf]  ;;  %v3246_v39 = vld [vmem:[#allocation11 + $0xb8] sm:$0xf0] }
 0x13e   :  { %vm1254_vm5 = vcmp.gt.f32.partialorder %v1095_v13, 0.0  ;;  %v1258_v49 = vmul.f32 0.01, %v1095_v13  ;;  %v1121_v16 = vadd.f32 %v1120_v43, %v1108_v5  ;;  %v3249_v44 = vor.u32 %v3951_v38, %v3246_v39 }
 0x13f   :  { %2141 = vmatpush.bf16.msra.mxu3 %v3625_v25  ;;  %v3542_v25 = vld [vmem:[#allocation11 + $0x310] sm:$0xf0] }
 0x140   :  { %v1262_v52 = vsel %vm1254_vm5, %v1095_v13, %v1258_v49  ;;  %v3405_v13 = vor.u32 %v3993_v30, %v3404_v47  ;;  %v3593_v49 = vor.u32 %v4038_v45, %v3590_v46  ;;  %v3308_v45 = vld [vmem:[#allocation11 + $0x128] sm:$0xf]  ;;  %v3969_v46 = vld [vmem:[#allocation11 + $0x134] sm:$0xf0] }
 0x141   :  { %v4422_v57 = vpack.c.bf16 %v1262_v52, %v1262_v52  ;;  %v1083_v58 = vpop.f32.mrf.mxu2  ;;  %v1096_v63 = vpop.f32.mrf.mxu3  ;;  %v3180_v52 = vld [vmem:[#allocation11 + $0x28] sm:$0xf] }
 0x142   :  { %v3985_v58 = vld [vmem:[#allocation11 + $0x1b4] sm:$0xf0]  ;;  %v3577_v63 = vor.u32 %v4034_v59, %v3574_v60 }
 0x143   :  { %2056 = vmatmul.bf16.vlgmr.msrb.gmra.mxu0 %v4422_v57  ;;  %v1109_v7 = vpop.f32.mrf.mxu0  ;;  %v1122_v10 = vpop.f32.mrf.mxu1  ;;  %2142 = vmatpush.bf16.msra.mxu3 %v3609_v35  ;;  %v3373_v1 = vor.u32 %v3985_v58, %v3372_v54  ;;  %v3516_v35 = vld [vmem:[#allocation11 + $0x2c8] sm:$0xf]  ;;  %v4013_v60 = vld [vmem:[#allocation11 + $0x294] sm:$0xf0] }
 0x144   :  { %2152 = vmatpush.bf16.msrb.mxu0 %v3277_v53  ;;  %v3937_v53 = vld [vmem:[#allocation11 + $0x34] sm:$0xf0]  ;;  %v3484_v58 = vld [vmem:[#allocation11 + $0x288] sm:$0xf] }
 0x145   :  { %v3181_v0 = vor.u32 %v3937_v53, %v3180_v52  ;;  %v3981_v7 = vld [vmem:[#allocation11 + $0x194] sm:$0xf0]  ;;  %v3309_v52 = vor.u32 %v3969_v46, %v3308_v45 }
 0x146   :  { %v3357_v18 = vor.u32 %v3981_v7, %v3356_v4  ;;  %v401_v4 = vperm.slane %v4418_v62, 3  ;;  %v4057_v45 = vld [vmem:[#allocation11 + $0x3f4] sm:$0xf0] }
 0x147   :  { %2143 = vmatpush.bf16.msra.mxu3 %v3593_v49  ;;  %v4017_v49 = vld [vmem:[#allocation11 + $0x2b4] sm:$0xf0] }
 0x148   :  { %2153 = vmatpush.bf16.msrb.mxu0 %v3261_v8  ;;  %v4030_v8 = vld [vmem:[#allocation11 + $0x324] sm:$0xf] }
 0x149   :  { %v1133_v19 = vpop.f32.mrf.mxu2  ;;  %v1146_v24 = vpop.f32.mrf.mxu3  ;;  %v3561_v15 = vor.u32 %v4030_v8, %v3558_v9  ;;  %v3468_v8 = vld [vmem:[#allocation11 + $0x268] sm:$0xf] }
 0x14a   :  { %v1134_v23 = vadd.f32 %v1133_v19, %v1121_v16  ;;  %v3340_v19 = vld [vmem:[#allocation11 + $0x168] sm:$0xf] }
 0x14b   :  { %2144 = vmatpush.bf16.msra.mxu3 %v3577_v63  ;;  %v3214_v63 = vld [vmem:[#allocation11 + $0x78] sm:$0xf0] }
 0x14c   :  { %v1147_v26 = vadd.f32 %v1146_v24, %v1134_v23  ;;  %2154 = vmatpush.bf16.msrb.mxu0 %v3245_v17  ;;  %v3165_v17 = vor.u32 %v3933_v3, %v3164_v2  ;;  %v3532_v23 = vld [vmem:[#allocation11 + $0x2e8] sm:$0xf]  ;;  %v4026_v24 = vld [vmem:[#allocation11 + $0x304] sm:$0xf]  ;;  %v3406_v2 = vld [vmem:[#allocation11 + $0x1f8] sm:$0xf0] }
 0x14d   :  { %v3545_v28 = vor.u32 %v4026_v24, %v3542_v25  ;;  %v3983_v25 = vld [vmem:[#allocation11 + $0x1ac] sm:$0xf] }
 0x14e   :  { %v1159_v29 = vpop.f32.mrf.mxu0  ;;  %vm1255_vm6 = vcmp.gt.f32.partialorder %v1147_v26, 0.0  ;;  %v1259_v33 = vmul.f32 0.01, %v1147_v26  ;;  %v1172_v34 = vpop.f32.mrf.mxu1 }
 0x14f   :  { %v1160_v55 = vadd.f32 %v1159_v29, %v400_v36  ;;  %2145 = vmatpush.bf16.msra.mxu3 %v3561_v15  ;;  %v3341_v29 = vor.u32 %v3977_v20, %v3340_v19  ;;  %v3390_v15 = vld [vmem:[#allocation11 + $0x1d8] sm:$0xf0]  ;;  %v3452_v19 = vld [vmem:[#allocation11 + $0x248] sm:$0xf] }
 0x150   :  { %v1263_v6 = vsel %vm1255_vm6, %v1147_v26, %v1259_v33  ;;  %2155 = vmatpush.bf16.msrb.mxu0 %v3229_v42  ;;  %v4025_v26 = vld [vmem:[#allocation11 + $0x2f4] sm:$0xf0]  ;;  %v3955_v42 = vld [vmem:[#allocation11 + $0xcc] sm:$0xf]  ;;  %v3324_v33 = vld [vmem:[#allocation11 + $0x148] sm:$0xf]  ;;  %v3393_v20 = vor.u32 %v3987_v14, %v3390_v15 }
 0x151   :  { %v4426_v41 = vpack.c.bf16 %v1263_v6, %v1263_v6  ;;  %v1135_v43 = vpop.f32.mrf.mxu2  ;;  %v1148_v48 = vpop.f32.mrf.mxu3  ;;  %v1173_v5 = vadd.f32 %v1172_v34, %v1160_v55  ;;  %v3533_v31 = vor.u32 %v4025_v26, %v3532_v23  ;;  %v3265_v32 = vor.u32 %v3955_v42, %v3262_v27  ;;  %v3973_v34 = vld [vmem:[#allocation11 + $0x154] sm:$0xf0]  ;;  %v3292_v55 = vld [vmem:[#allocation11 + $0x108] sm:$0xf]  ;;  %v3182_v23 = vld [vmem:[#allocation11 + $0x38] sm:$0xf0] }
 0x152   :  { %v3325_v40 = vor.u32 %v3973_v34, %v3324_v33  ;;  %v3500_v48 = vld [vmem:[#allocation11 + $0x2a8] sm:$0xf]  ;;  %v3374_v26 = vld [vmem:[#allocation11 + $0x1b8] sm:$0xf0]  ;;  %v4015_v14 = vld [vmem:[#allocation11 + $0x2ac] sm:$0xf] }
 0x153   :  { %2069 = vmatmul.bf16.vlgmr.msrb.gmra.mxu1 %v4426_v41  ;;  %2108 = vmatmul.bf16.vlgmr.msra.gmra.mxu0 %v4422_v57  ;;  %v3501_v53 = vor.u32 %v4017_v49, %v3500_v48  ;;  %v3166_v33 = vld [vmem:[#allocation11 + $0x18] sm:$0xf0]  ;;  %v3975_v48 = vld [vmem:[#allocation11 + $0x16c] sm:$0xf] }
 0x154   :  { %2156 = vmatpush.bf16.msrb.mxu0 %v3213_v37  ;;  %2165 = vmatpush.bf16.msrb.mxu1 %v3405_v13  ;;  %v4021_v13 = vld [vmem:[#allocation11 + $0x2d4] sm:$0xf0]  ;;  %v3342_v49 = vld [vmem:[#allocation11 + $0x178] sm:$0xf0] }
 0x155   :  { %2146 = vmatpush.bf16.msra.mxu3 %v3545_v28  ;;  %v3517_v43 = vor.u32 %v4021_v13, %v3516_v35  ;;  %v3420_v13 = vld [vmem:[#allocation11 + $0x208] sm:$0xf]  ;;  %v3502_v15 = vld [vmem:[#allocation11 + $0x2b8] sm:$0xf0] }
 0x156   :  { %v1161_v56 = vpop.f32.mrf.mxu0  ;;  %v1174_v61 = vpop.f32.mrf.mxu1 }
 0x157   :  { %v3965_v56 = vld [vmem:[#allocation11 + $0x114] sm:$0xf0]  ;;  %v3943_v61 = vld [vmem:[#allocation11 + $0x6c] sm:$0xf] }
 0x158   :  { %2157 = vmatpush.bf16.msrb.mxu0 %v3197_v50  ;;  %2166 = vmatpush.bf16.msrb.mxu1 %v3389_v51  ;;  %v3947_v50 = vld [vmem:[#allocation11 + $0x8c] sm:$0xf]  ;;  %v3230_v51 = vld [vmem:[#allocation11 + $0x98] sm:$0xf0]  ;;  %v3293_v3 = vor.u32 %v3965_v56, %v3292_v55  ;;  %v3217_v7 = vor.u32 %v3943_v61, %v3214_v63  ;;  %v3644_v61 = vld [vmem:[#allocation11 + $0x3c8] sm:$0xf] }
 0x159   :  { %v1185_v10 = vpop.f32.mrf.mxu2  ;;  %v1198_v11 = vpop.f32.mrf.mxu3  ;;  %v3233_v54 = vor.u32 %v3947_v50, %v3230_v51  ;;  %v4023_v50 = vld [vmem:[#allocation11 + $0x2ec] sm:$0xf]  ;;  %v4053_v63 = vld [vmem:[#allocation11 + $0x3d4] sm:$0xf0] }
 0x15a   :  { %v1186_v16 = vadd.f32 %v1185_v10, %v1173_v5  ;;  %v3485_v5 = vor.u32 %v4013_v60, %v3484_v58  ;;  %v4009_v10 = vld [vmem:[#allocation11 + $0x274] sm:$0xf0] }
 0x15c   :  { %2158 = vmatpush.bf16.msrb.mxu0 %v3181_v0  ;;  %2167 = vmatpush.bf16.msrb.mxu1 %v3373_v1  ;;  %v1199_v21 = vadd.f32 %v1198_v11, %v1186_v16  ;;  %v3991_v1 = vld [vmem:[#allocation11 + $0x1ec] sm:$0xf] }
 0x15d   :  { %v3409_v9 = vor.u32 %v3991_v1, %v3406_v2  ;;  %v3939_v11 = vld [vmem:[#allocation11 + $0x4c] sm:$0xf]  ;;  %v3326_v2 = vld [vmem:[#allocation11 + $0x158] sm:$0xf0] }
 0x15e   :  { %vm1256_vm7 = vcmp.gt.f32.partialorder %v1199_v21, 0.0  ;;  %v1260_v47 = vmul.f32 0.01, %v1199_v21 }
 0x160   :  { %2159 = vmatpush.bf16.msrb.mxu0 %v3165_v17  ;;  %2168 = vmatpush.bf16.msrb.mxu1 %v3357_v18  ;;  %v1264_v30 = vsel %vm1256_vm7, %v1199_v21, %v1260_v47  ;;  %v3469_v17 = vor.u32 %v4009_v10, %v3468_v8  ;;  %v3201_v18 = vor.u32 %v3939_v11, %v3198_v12  ;;  %v4005_v21 = vld [vmem:[#allocation11 + $0x254] sm:$0xf0]  ;;  %v3436_v47 = vld [vmem:[#allocation11 + $0x228] sm:$0xf]  ;;  %v3967_v11 = vld [vmem:[#allocation11 + $0x12c] sm:$0xf] }
 0x161   :  { %v4430_v36 = vpack.c.bf16 %v1264_v30, %v1264_v30  ;;  %v1187_v6 = vpop.f32.mrf.mxu2  ;;  %v1200_v37 = vpop.f32.mrf.mxu3  ;;  %v3453_v27 = vor.u32 %v4005_v21, %v3452_v19  ;;  %v3377_v30 = vor.u32 %v3983_v25, %v3374_v26  ;;  %v4049_v10 = vld [vmem:[#allocation11 + $0x3b4] sm:$0xf0]  ;;  %v3310_v12 = vld [vmem:[#allocation11 + $0x138] sm:$0xf0]  ;;  %v4011_v21 = vld [vmem:[#allocation11 + $0x28c] sm:$0xf] }
 0x162   :  { %v3979_v6 = vld [vmem:[#allocation11 + $0x18c] sm:$0xf]  ;;  %v3358_v37 = vld [vmem:[#allocation11 + $0x198] sm:$0xf0]  ;;  %v4045_v19 = vld [vmem:[#allocation11 + $0x394] sm:$0xf0] }
 0x163   :  { %2121 = vmatmul.bf16.vlgmr.msra.gmra.mxu1 %v4426_v41  ;;  %2160 = vmatmul.bf16.vlgmr.msrb.gmra.mxu0 %v4422_v57  ;;  %v3361_v46 = vor.u32 %v3979_v6, %v3358_v37  ;;  %v3596_v26 = vld [vmem:[#allocation11 + $0x368] sm:$0xf]  ;;  %v4033_v37 = vld [vmem:[#allocation11 + $0x334] sm:$0xf0] }
 0x164   :  { %2204 = vmatpush.bf16.msra.mxu0 %v3281_v22  ;;  %2082 = vmatmul.bf16.vlgmr.msrb.gmra.mxu2 %v4430_v36  ;;  %v3935_v22 = vld [vmem:[#allocation11 + $0x2c] sm:$0xf]  ;;  %v3564_v6 = vld [vmem:[#allocation11 + $0x328] sm:$0xf] }
 0x165   :  { %2169 = vmatpush.bf16.msrb.mxu1 %v3341_v29  ;;  %2178 = vmatpush.bf16.msrb.mxu2 %v3533_v31  ;;  %v3185_v28 = vor.u32 %v3935_v22, %v3182_v23  ;;  %v4001_v31 = vld [vmem:[#allocation11 + $0x234] sm:$0xf0]  ;;  %v3486_v22 = vld [vmem:[#allocation11 + $0x298] sm:$0xf0] }
 0x166   :  { %v3437_v39 = vor.u32 %v4001_v31, %v3436_v47  ;;  %v3489_v25 = vor.u32 %v4011_v21, %v3486_v22  ;;  %v4037_v31 = vld [vmem:[#allocation11 + $0x354] sm:$0xf0] }
 0x167   :  { %v4073_v21 = vld [vmem:[#allocation13 + $0x78] sm:$0xff] }
 0x168   :  { %2205 = vmatpush.bf16.msra.mxu0 %v3265_v32  ;;  %v3931_v32 = vld [vmem:[#allocation11 + $0xc] sm:$0xf]  ;;  %v4061_v22 = vld [vmem:[#allocation13 + $0x18] sm:$0xff] }
 0x169   :  { %2170 = vmatpush.bf16.msrb.mxu1 %v3325_v40  ;;  %2179 = vmatpush.bf16.msrb.mxu2 %v3517_v43  ;;  %v3169_v40 = vor.u32 %v3931_v32, %v3166_v33  ;;  %v3997_v43 = vld [vmem:[#allocation11 + $0x214] sm:$0xf0]  ;;  %v4003_v32 = vld [vmem:[#allocation11 + $0x24c] sm:$0xf]  ;;  %v3454_v33 = vld [vmem:[#allocation11 + $0x258] sm:$0xf0] }
 0x16c   :  { %2206 = vmatpush.bf16.msra.mxu0 %v3249_v44  ;;  %v3660_v44 = vld [vmem:[#allocation11 + $0x3e8] sm:$0xf] }
 0x16d   :  { %2171 = vmatpush.bf16.msrb.mxu1 %v3309_v52  ;;  %2180 = vmatpush.bf16.msrb.mxu2 %v3501_v53  ;;  %v3534_v52 = vld [vmem:[#allocation11 + $0x2f8] sm:$0xf0]  ;;  %v3661_v55 = vor.u32 %v4057_v45, %v3660_v44  ;;  %v4029_v44 = vld [vmem:[#allocation11 + $0x314] sm:$0xf0]  ;;  %v3995_v45 = vld [vmem:[#allocation11 + $0x20c] sm:$0xf] }
 0x16e   :  { %v1211_v59 = vpop.f32.mrf.mxu0  ;;  %v1224_v0 = vpop.f32.mrf.mxu1  ;;  %v3537_v60 = vor.u32 %v4023_v50, %v3534_v52  ;;  %v4051_v52 = vld [vmem:[#allocation11 + $0x3cc] sm:$0xf] }
 0x16f   :  { %v1212_v16 = vadd.f32 %v1211_v59, %v401_v4  ;;  %v3345_v59 = vor.u32 %v3975_v48, %v3342_v49  ;;  %v3518_v4 = vld [vmem:[#allocation11 + $0x2d8] sm:$0xf0]  ;;  %v4055_v48 = vld [vmem:[#allocation11 + $0x3ec] sm:$0xf] }
 0x170   :  { %2207 = vmatpush.bf16.msra.mxu0 %v3233_v54  ;;  %v3421_v54 = vor.u32 %v3997_v43, %v3420_v13  ;;  %v3999_v13 = vld [vmem:[#allocation11 + $0x22c] sm:$0xf]  ;;  %v3548_v43 = vld [vmem:[#allocation11 + $0x308] sm:$0xf]  ;;  %v3662_v49 = vld [vmem:[#allocation11 + $0x3f8] sm:$0xf0] }
 0x171   :  { %2172 = vmatpush.bf16.msrb.mxu1 %v3293_v3  ;;  %2181 = vmatpush.bf16.msrb.mxu2 %v3485_v5  ;;  %v1225_v42 = vadd.f32 %v1224_v0, %v1212_v16  ;;  %v3971_v0 = vld [vmem:[#allocation11 + $0x14c] sm:$0xf]  ;;  %v3645_v5 = vor.u32 %v4053_v63, %v3644_v61  ;;  %v3549_v50 = vor.u32 %v4029_v44, %v3548_v43  ;;  %v3614_v61 = vld [vmem:[#allocation11 + $0x398] sm:$0xf0]  ;;  %v4078_v43 = vld [vmem:[#allocation13 + $0xa0] sm:$0xff] }
 0x172   :  { %v4019_v3 = vld [vmem:[#allocation11 + $0x2cc] sm:$0xf] }
 0x173   :  { %v3521_v8 = vor.u32 %v4019_v3, %v3518_v4  ;;  %v4035_v3 = vld [vmem:[#allocation11 + $0x34c] sm:$0xf]  ;;  %v3582_v4 = vld [vmem:[#allocation11 + $0x358] sm:$0xf0] }
 0x174   :  { %2208 = vmatpush.bf16.msra.mxu0 %v3217_v7  ;;  %2173 = vmatmul.bf16.vlgmr.msrb.gmra.mxu1 %v4426_v41  ;;  %v3329_v7 = vor.u32 %v3971_v0, %v3326_v2  ;;  %v4039_v0 = vld [vmem:[#allocation11 + $0x36c] sm:$0xf] }
 0x175   :  { %2217 = vmatpush.bf16.msra.mxu1 %v3409_v9  ;;  %2134 = vmatmul.bf16.vlgmr.msra.gmra.mxu2 %v4430_v36  ;;  %v3628_v9 = vld [vmem:[#allocation11 + $0x3a8] sm:$0xf] }
 0x176   :  { %v1213_v62 = vpop.f32.mrf.mxu0  ;;  %v1226_v24 = vpop.f32.mrf.mxu1  ;;  %2182 = vmatpush.bf16.msrb.mxu2 %v3469_v17  ;;  %v3629_v16 = vor.u32 %v4049_v10, %v3628_v9  ;;  %v3505_v17 = vor.u32 %v4015_v14, %v3502_v15  ;;  %v4027_v10 = vld [vmem:[#allocation11 + $0x30c] sm:$0xf]  ;;  %v4065_v15 = vld [vmem:[#allocation13 + $0x38] sm:$0xff] }
 0x177   :  { %v3963_v62 = vld [vmem:[#allocation11 + $0x10c] sm:$0xf] }
 0x178   :  { %2209 = vmatpush.bf16.msra.mxu0 %v3201_v18  ;;  %v3612_v18 = vld [vmem:[#allocation11 + $0x388] sm:$0xf] }
 0x179   :  { %2218 = vmatpush.bf16.msra.mxu1 %v3393_v20  ;;  %v1237_v29 = vpop.f32.mrf.mxu2  ;;  %v1250_v35 = vpop.f32.mrf.mxu3  ;;  %v3294_v20 = vld [vmem:[#allocation11 + $0x118] sm:$0xf0]  ;;  %v3613_v23 = vor.u32 %v4045_v19, %v3612_v18  ;;  %v4063_v18 = vld [vmem:[#allocation13 + $0x28] sm:$0xff]  ;;  %v4062_v19 = vld [vmem:[#allocation13 + $0x20] sm:$0xff] }
 0x17a   :  { %v1238_v34 = vadd.f32 %v1237_v29, %v1225_v42  ;;  %2183 = vmatpush.bf16.msrb.mxu2 %v3453_v27  ;;  %v3297_v24 = vor.u32 %v3963_v62, %v3294_v20  ;;  %v4041_v42 = vld [vmem:[#allocation11 + $0x374] sm:$0xf0]  ;;  %v4007_v27 = vld [vmem:[#allocation11 + $0x26c] sm:$0xf] }
 0x17b   :  { %v3597_v47 = vor.u32 %v4041_v42, %v3596_v26  ;;  %v4059_v26 = vld [vmem:[#allocation13 + $0x8] sm:$0xff] }
 0x17c   :  { %v1251_v38 = vadd.f32 %v1250_v35, %v1238_v34  ;;  %2210 = vmatpush.bf16.msra.mxu0 %v3185_v28  ;;  %v3470_v28 = vld [vmem:[#allocation11 + $0x278] sm:$0xf0]  ;;  %v3457_v35 = vor.u32 %v4003_v32, %v3454_v33  ;;  %v4071_v42 = vld [vmem:[#allocation13 + $0x68] sm:$0xff] }
 0x17d   :  { %2219 = vmatpush.bf16.msra.mxu1 %v3377_v30  ;;  %v3473_v29 = vor.u32 %v4007_v27, %v3470_v28  ;;  %v3580_v30 = vld [vmem:[#allocation11 + $0x348] sm:$0xf]  ;;  %v4058_v28 = vld [vmem:[#allocation13] sm:$0xff]  ;;  %v4081_v32 = vld [vmem:[#allocation13 + $0xb8] sm:$0xff] }
 0x17e   :  { %vm1257_vm8 = vcmp.gt.f32.partialorder %v1251_v38, 0.0  ;;  %v1261_v51 = vmul.f32 0.01, %v1251_v38  ;;  %2184 = vmatpush.bf16.msrb.mxu2 %v3437_v39  ;;  %v3581_v34 = vor.u32 %v4037_v31, %v3580_v30  ;;  %v3565_v39 = vor.u32 %v4033_v37, %v3564_v6  ;;  %v4069_v31 = vld [vmem:[#allocation13 + $0x58] sm:$0xff]  ;;  %v4067_v37 = vld [vmem:[#allocation13 + $0x48] sm:$0xff] }
 0x180   :  { %v1265_v53 = vsel %vm1257_vm8, %v1251_v38, %v1261_v51  ;;  %2211 = vmatpush.bf16.msra.mxu0 %v3169_v40  ;;  %v3438_v38 = vld [vmem:[#allocation11 + $0x238] sm:$0xf0]  ;;  %v3665_v51 = vor.u32 %v4055_v48, %v3662_v49  ;;  %v4076_v49 = vld [vmem:[#allocation13 + $0x90] sm:$0xff] }
 0x181   :  { %v4438_v56 = vpack.c.bf16 %v1265_v53, %v1265_v53  ;;  %2220 = vmatpush.bf16.msra.mxu1 %v3361_v46  ;;  %v1239_v58 = vpop.f32.mrf.mxu2  ;;  %v1252_v1 = vpop.f32.mrf.mxu3  ;;  %v3441_v40 = vor.u32 %v3999_v13, %v3438_v38  ;;  %v3422_v46 = vld [vmem:[#allocation11 + $0x218] sm:$0xf0]  ;;  %v4079_v13 = vld [vmem:[#allocation13 + $0xa8] sm:$0xff]  ;;  %v4459_v38 = vld [vmem:[%s4484_s6] sm:$0xf] }
 0x182   :  { %2185 = vmatpush.bf16.msrb.mxu2 %v3421_v54  ;;  %v3646_v53 = vld [vmem:[#allocation11 + $0x3d8] sm:$0xf0] }
 0x183   :  { %2095 = vmatmul.bf16.vlgmr.msrb.gmra.mxu3 %v4438_v56  ;;  %2212 = vmatmul.bf16.vlgmr.msra.gmra.mxu0 %v4422_v57  ;;  %v3313_v57 = vor.u32 %v3967_v11, %v3310_v12  ;;  %v3649_v54 = vor.u32 %v4051_v52, %v3646_v53  ;;  %v3630_v58 = vld [vmem:[#allocation11 + $0x3b8] sm:$0xf0] }
 0x184   :  { %2191 = vmatpush.bf16.msrb.mxu3 %v3661_v55  ;;  %v4047_v55 = vld [vmem:[#allocation11 + $0x3ac] sm:$0xf]  ;;  %v3598_v1 = vld [vmem:[#allocation11 + $0x378] sm:$0xf0]  ;;  %2532 = vmatpush.bf16.msrb.mxu0 %v4065_v15 }
 0x185   :  { %2221 = vmatpush.bf16.msra.mxu1 %v3345_v59  ;;  %2186 = vmatmul.bf16.vlgmr.msrb.gmra.mxu2 %v4430_v36  ;;  %v3633_v59 = vor.u32 %v4047_v55, %v3630_v58  ;;  %v3601_v2 = vor.u32 %v4039_v0, %v3598_v1  ;;  %v4085_v15 = vld [vmem:[#allocation13 + $0xd8] sm:$0xff] }
 0x186   :  { %2230 = vmatpush.bf16.msra.mxu2 %v3537_v60  ;;  %v4043_v60 = vld [vmem:[#allocation11 + $0x38c] sm:$0xf] }
 0x187   :  { %v3617_v63 = vor.u32 %v4043_v60, %v3614_v61  ;;  %v4074_v61 = vld [vmem:[#allocation13 + $0x80] sm:$0xff] }
 0x188   :  { %2192 = vmatpush.bf16.msrb.mxu3 %v3645_v5  ;;  %v3585_v5 = vor.u32 %v4035_v3, %v3582_v4  ;;  %v4088_v4 = vld [vmem:[#allocation13 + $0xf0] sm:$0xff] }
 0x189   :  { %2222 = vmatpush.bf16.msra.mxu1 %v3329_v7  ;;  %v4031_v7 = vld [vmem:[#allocation11 + $0x32c] sm:$0xf] }
 0x18a   :  { %2231 = vmatpush.bf16.msra.mxu2 %v3521_v8  ;;  %v3566_v8 = vld [vmem:[#allocation11 + $0x338] sm:$0xf0] }
 0x18b   :  { %v3569_v9 = vor.u32 %v4031_v7, %v3566_v8 }
 0x18c   :  { %2193 = vmatpush.bf16.msrb.mxu3 %v3629_v16  ;;  %v4064_v16 = vld [vmem:[#allocation13 + $0x30] sm:$0xff] }
 0x18d   :  { %2223 = vmatpush.bf16.msra.mxu1 %v3313_v57  ;;  %2533 = vmatpush.bf16.msrb.mxu0 %v4064_v16 }
 0x18e   :  { %2232 = vmatpush.bf16.msra.mxu2 %v3505_v17 }
 0x190   :  { %2194 = vmatpush.bf16.msrb.mxu3 %v3613_v23  ;;  %v4072_v23 = vld [vmem:[#allocation13 + $0x70] sm:$0xff] }
 0x191   :  { %2224 = vmatpush.bf16.msra.mxu1 %v3297_v24  ;;  %2534 = vmatpush.bf16.msrb.mxu0 %v4063_v18 }
 0x192   :  { %2233 = vmatpush.bf16.msra.mxu2 %v3489_v25 }
 0x193   :  { %2147 = vmatmul.bf16.vlgmr.msra.gmra.mxu3 %v4438_v56 }
 0x194   :  { %2195 = vmatpush.bf16.msrb.mxu3 %v3597_v47  ;;  %2225 = vmatmul.bf16.vlgmr.msra.gmra.mxu1 %v4426_v41  ;;  %v3425_v41 = vor.u32 %v3995_v45, %v3422_v46  ;;  %v4070_v47 = vld [vmem:[#allocation13 + $0x60] sm:$0xff]  ;;  %v1400_v45 = vperm.slane %v4459_v38, 0  ;;  %v4077_v46 = vld [vmem:[#allocation13 + $0x98] sm:$0xff] }
 0x195   :  { %2535 = vmatpush.bf16.msrb.mxu0 %v4062_v19  ;;  %2545 = vmatpush.bf16.msrb.mxu1 %v4073_v21 }
 0x196   :  { %2234 = vmatpush.bf16.msra.mxu2 %v3473_v29 }
 0x198   :  { %2196 = vmatpush.bf16.msrb.mxu3 %v3581_v34  ;;  %v4068_v34 = vld [vmem:[#allocation13 + $0x50] sm:$0xff] }
 0x199   :  { %2536 = vmatpush.bf16.msrb.mxu0 %v4061_v22  ;;  %2546 = vmatpush.bf16.msrb.mxu1 %v4072_v23  ;;  %v4083_v22 = vld [vmem:[#allocation13 + $0xc8] sm:$0xff] }
 0x19a   :  { %2235 = vmatpush.bf16.msra.mxu2 %v3457_v35  ;;  %v4080_v35 = vld [vmem:[#allocation13 + $0xb0] sm:$0xff] }
 0x19c   :  { %2197 = vmatpush.bf16.msrb.mxu3 %v3565_v39 }
 0x19d   :  { %2547 = vmatpush.bf16.msrb.mxu1 %v4071_v42 }
 0x19e   :  { %2236 = vmatpush.bf16.msra.mxu2 %v3441_v40  ;;  %v4066_v40 = vld [vmem:[#allocation13 + $0x40] sm:$0xff] }
 0x1a0   :  { %2198 = vmatpush.bf16.msrb.mxu3 %v3549_v50 }
 0x1a1   :  { %2548 = vmatpush.bf16.msrb.mxu1 %v4070_v47 }
 0x1a2   :  { %2237 = vmatpush.bf16.msra.mxu2 %v3425_v41 }
 0x1a3   :  { %2199 = vmatmul.bf16.vlgmr.msrb.gmra.mxu3 %v4438_v56 }
 0x1a4   :  { %2243 = vmatpush.bf16.msra.mxu3 %v3665_v51 }
 0x1a5   :  { %2238 = vmatmul.bf16.vlgmr.msra.gmra.mxu2 %v4430_v36  ;;  %v3550_v36 = vld [vmem:[#allocation11 + $0x318] sm:$0xf0]  ;;  %2549 = vmatpush.bf16.msrb.mxu1 %v4069_v31 }
 0x1a6   :  { %v3553_v11 = vor.u32 %v4027_v10, %v3550_v36  ;;  %2558 = vmatpush.bf16.msrb.mxu2 %v4081_v32  ;;  %v4086_v36 = vld [vmem:[#allocation13 + $0xe0] sm:$0xff]  ;;  %v1403_v32 = vperm.slane %v4459_v38, 3 }
 0x1a8   :  { %2244 = vmatpush.bf16.msra.mxu3 %v3649_v54  ;;  %v4075_v54 = vld [vmem:[#allocation13 + $0x88] sm:$0xff] }
 0x1a9   :  { %2550 = vmatpush.bf16.msrb.mxu1 %v4068_v34 }
 0x1aa   :  { %2559 = vmatpush.bf16.msrb.mxu2 %v4080_v35 }
 0x1ac   :  { %2245 = vmatpush.bf16.msra.mxu3 %v3633_v59 }
 0x1ad   :  { %2551 = vmatpush.bf16.msrb.mxu1 %v4067_v37 }
 0x1ae   :  { %2560 = vmatpush.bf16.msrb.mxu2 %v4079_v13 }
 0x1b0   :  { %2246 = vmatpush.bf16.msra.mxu3 %v3617_v63  ;;  %v4089_v63 = vld [vmem:[#allocation13 + $0xf8] sm:$0xff] }
 0x1b1   :  { %2552 = vmatpush.bf16.msrb.mxu1 %v4066_v40 }
 0x1b2   :  { %2561 = vmatpush.bf16.msrb.mxu2 %v4078_v43 }
 0x1b4   :  { %2247 = vmatpush.bf16.msra.mxu3 %v3601_v2  ;;  %v1401_v2 = vperm.slane %v4459_v38, 1 }
 0x1b6   :  { %2562 = vmatpush.bf16.msrb.mxu2 %v4077_v46 }
 0x1b8   :  { %2248 = vmatpush.bf16.msra.mxu3 %v3585_v5  ;;  %v4087_v5 = vld [vmem:[#allocation13 + $0xe8] sm:$0xff] }
 0x1ba   :  { %2563 = vmatpush.bf16.msrb.mxu2 %v4076_v49 }
 0x1bc   :  { %2249 = vmatpush.bf16.msra.mxu3 %v3569_v9 }
 0x1be   :  { %2564 = vmatpush.bf16.msrb.mxu2 %v4075_v54 }
 0x1c0   :  { %2250 = vmatpush.bf16.msra.mxu3 %v3553_v11  ;;  %v2057_v12 = vpop.f32.mrf.mxu0 }
 0x1c1   :  { %v2058_v50 = vadd.f32 %v2057_v12, %v1400_v45 }
 0x1c2   :  { %2565 = vmatpush.bf16.msrb.mxu2 %v4074_v61 }
 0x1c3   :  { %2251 = vmatmul.bf16.vlgmr.msra.gmra.mxu3 %v4438_v56  ;;  %v4060_v56 = vld [vmem:[#allocation13 + $0x10] sm:$0xff] }
 0x1c4   :  { %2537 = vmatpush.bf16.msrb.mxu0 %v4060_v56  ;;  %2571 = vmatpush.bf16.msrb.mxu3 %v4089_v63 }
 0x1c8   :  { %v2059_v14 = vpop.f32.mrf.mxu0  ;;  %2538 = vmatpush.bf16.msrb.mxu0 %v4059_v26  ;;  %2572 = vmatpush.bf16.msrb.mxu3 %v4088_v4  ;;  %v4082_v26 = vld [vmem:[#allocation13 + $0xc0] sm:$0xff] }
 0x1cc   :  { %2539 = vmatpush.bf16.msrb.mxu0 %v4058_v28  ;;  %2573 = vmatpush.bf16.msrb.mxu3 %v4087_v5 }
 0x1d0   :  { %v2070_v57 = vpop.f32.mrf.mxu1  ;;  %v4448_v17 = vpop.f32.mrf.mxu0  ;;  %2574 = vmatpush.bf16.msrb.mxu3 %v4086_v36 }
 0x1d1   :  { %v2071_v51 = vadd.f32 %v2070_v57, %v2058_v50  ;;  %v2110_v7 = vadd.f32 %v4448_v17, %v1401_v2  ;;  %v1402_v17 = vperm.slane %v4459_v38, 2  ;;  %v4102_v38 = vld [vmem:[%s4486_s8] ss:$0 sm:$0xff] }
 0x1d4   :  { %2575 = vmatpush.bf16.msrb.mxu3 %v4085_v15 }
 0x1d8   :  { %v2072_v62 = vpop.f32.mrf.mxu1  ;;  %v2111_v20 = vpop.f32.mrf.mxu0 }
 0x1d9   :  { %v4084_v62 = vld [vmem:[#allocation13 + $0xd0] sm:$0xff] }
 0x1da   :  { %2576 = vmatpush.bf16.msrb.mxu3 %v4084_v62 }
 0x1de   :  { %2577 = vmatpush.bf16.msrb.mxu3 %v4083_v22 }
 0x1e0   :  { %v4450_v24 = vpop.f32.mrf.mxu1  ;;  %v4452_v25 = vpop.f32.mrf.mxu0 }
 0x1e1   :  { %v2123_v10 = vadd.f32 %v4450_v24, %v2110_v7  ;;  %v2162_v21 = vadd.f32 %v4452_v25, %v1402_v17 }
 0x1e2   :  { %2578 = vmatpush.bf16.msrb.mxu3 %v4082_v26 }
 0x1e7   :  { %v2083_v27 = vpop.f32.mrf.mxu2 }
 0x1e8   :  { %v2124_v29 = vpop.f32.mrf.mxu1  ;;  %v2163_v30 = vpop.f32.mrf.mxu0  ;;  %v2084_v52 = vadd.f32 %v2083_v27, %v2071_v51 }
 0x1ef   :  { %v2085_v33 = vpop.f32.mrf.mxu2 }
 0x1f1   :  { %v4454_v6 = vpop.f32.mrf.mxu1 }
 0x1f2   :  { %v2175_v56 = vadd.f32 %v4454_v6, %v2162_v21 }
 0x1f8   :  { %v2135_v39 = vpop.f32.mrf.mxu2 }
 0x1f9   :  { %v2176_v44 = vpop.f32.mrf.mxu1  ;;  %v2136_v11 = vadd.f32 %v2135_v39, %v2123_v10 }
 0x200   :  { %v4462_v48 = vpop.f32.mrf.mxu0  ;;  %v2137_v41 = vpop.f32.mrf.mxu2 }
 0x201   :  { %v2214_v25 = vadd.f32 %v4462_v48, %v1403_v32 }
 0x206   :  { %v2096_v53 = vpop.f32.mrf.mxu3 }
 0x207   :  { %v2097_v55 = vadd.f32 %v2096_v53, %v2084_v52 }
 0x208   :  { %v2215_v58 = vpop.f32.mrf.mxu0  ;;  %v2187_v60 = vpop.f32.mrf.mxu2 }
 0x209   :  { %vm2256_vm9 = vcmp.gt.f32.partialorder %v2097_v55, 0.0  ;;  %v2260_v59 = vmul.f32 0.01, %v2097_v55  ;;  %v2188_v23 = vadd.f32 %v2187_v60, %v2175_v56 }
 0x20b   :  { %v2264_v0 = vsel %vm2256_vm9, %v2097_v55, %v2260_v59 }
 0x20c   :  { %v2268_v1 = vpack.c.bf16 %v2264_v0, %v2264_v0 }
 0x20e   :  { %v2098_v3 = vpop.f32.mrf.mxu3  ;;  %2540 = vmatmul.bf16.vlgmr.msrb.gmra.mxu0 %v2268_v1 }
 0x210   :  { %v2189_v9 = vpop.f32.mrf.mxu2 }
 0x211   :  { %v2226_v8 = vpop.f32.mrf.mxu1 }
 0x212   :  { %v2227_v33 = vadd.f32 %v2226_v8, %v2214_v25 }
 0x216   :  { %v2148_v12 = vpop.f32.mrf.mxu3 }
 0x217   :  { %v2149_v14 = vadd.f32 %v2148_v12, %v2136_v11 }
 0x219   :  { %vm2257_vm10 = vcmp.gt.f32.partialorder %v2149_v14, 0.0  ;;  %v2261_v16 = vmul.f32 0.01, %v2149_v14  ;;  %v2228_v57 = vpop.f32.mrf.mxu1 }
 0x21b   :  { %v2265_v18 = vsel %vm2257_vm10, %v2149_v14, %v2261_v16 }
 0x21c   :  { %v2269_v19 = vpack.c.bf16 %v2265_v18, %v2265_v18 }
 0x21e   :  { %v2150_v20 = vpop.f32.mrf.mxu3  ;;  %2553 = vmatmul.bf16.vlgmr.msrb.gmra.mxu1 %v2269_v19 }
 0x226   :  { %v2200_v24 = vpop.f32.mrf.mxu3 }
 0x227   :  { %v2201_v42 = vadd.f32 %v2200_v24, %v2188_v23 }
 0x228   :  { %v2239_v27 = vpop.f32.mrf.mxu2 }
 0x229   :  { %vm2258_vm11 = vcmp.gt.f32.partialorder %v2201_v42, 0.0  ;;  %v2262_v28 = vmul.f32 0.01, %v2201_v42  ;;  %v2240_v34 = vadd.f32 %v2239_v27, %v2227_v33 }
 0x22b   :  { %v2266_v47 = vsel %vm2258_vm11, %v2201_v42, %v2262_v28 }
 0x22c   :  { %v2270_v29 = vpack.c.bf16 %v2266_v47, %v2266_v47 }
 0x22e   :  { %v2202_v30 = vpop.f32.mrf.mxu3  ;;  %2566 = vmatmul.bf16.vlgmr.msrb.gmra.mxu2 %v2270_v29 }
 0x230   :  { %v2241_v31 = vpop.f32.mrf.mxu2 }
 0x246   :  { %v2252_v35 = vpop.f32.mrf.mxu3 }
 0x247   :  { %v2253_v6 = vadd.f32 %v2252_v35, %v2240_v34 }
 0x249   :  { %vm2259_vm12 = vcmp.gt.f32.partialorder %v2253_v6, 0.0  ;;  %v2263_v37 = vmul.f32 0.01, %v2253_v6 }
 0x24b   :  { %v2267_v13 = vsel %vm2259_vm12, %v2253_v6, %v2263_v37 }
 0x24c   :  { %v2271_v39 = vpack.c.bf16 %v2267_v13, %v2267_v13 }
 0x24e   :  { %v2254_v40 = vpop.f32.mrf.mxu3  ;;  %2579 = vmatmul.bf16.vlgmr.msrb.gmra.mxu3 %v2271_v39 }
 0x28b   :  { %v2541_v43 = vpop.f32.mrf.mxu0 }
 0x28c   :  { %v2542_v48 = vadd.f32 %v4102_v38, %v2541_v43 }
 0x293   :  { %v2543_v44 = vpop.f32.mrf.mxu0 }
 0x29b   :  { %v2554_v45 = vpop.f32.mrf.mxu1 }
 0x29c   :  { %v2555_v41 = vadd.f32 %v2554_v45, %v2542_v48 }
 0x2a3   :  { %v2556_v46 = vpop.f32.mrf.mxu1 }
 0x2b1   :  { %v2567_v49 = vpop.f32.mrf.mxu2 }
 0x2b2   :  { %v2568_v51 = vadd.f32 %v2567_v49, %v2555_v41 }
 0x2b9   :  { %v2569_v50 = vpop.f32.mrf.mxu2 }
 0x2d1   :  { %v2580_v52 = vpop.f32.mrf.mxu3 }
 0x2d2   :  { %v2581_v53 = vadd.f32 %v2580_v52, %v2568_v51 }
 0x2d4   :  { %4103 = vtanh.f32 %v2581_v53 }
 0x2d9   :  { %v2582_v54 = vpop.f32.mrf.mxu3 }
 0x2da   :  { %v4104_v55 = vpop.eup %4103 }
 0x2db   :  { %2585 = vst [vmem:[#allocation14] sm:$0xff] %v4104_v55 }
 0x2dc   :  { %2596 = dma.vmem_to_hbm [thread:$0]  %s2592_s1, 128, %s2594_s26, [#allocation4]  }
 0x2dd   :  { %4305 = dma.done.wait [#allocation4], 128  }
 0x2de   :  { %4306 = vsyncadd [#allocation4], 4294967168 }
 0x2df   :  { %2601 = vsyncpa [#allocation3], 1 }
 0x2e0   :  { %2602 = vsyncpa [#allocation6], 1 }
 0x2e1   :  { %2603 = vsyncpa [#allocation9], 1 }
 0x2e2   :  { %2604 = vsyncpa [#allocation12], 1 }
 0x2e3   :  { %2605 = vsyncpa [#allocation4], 1 }

</bundles_post_ra>
